<compile_context>
chip_gen: v6e
topology: v6e:2x2x1
jax: 0.10.0
libtpu: 0.0.40
codegen_flags: <defaults>
</compile_context>

<pallas_src>
import functools

import numpy as np
import jax
import jax.numpy as jnp
from jax.experimental import pallas as pl
from jax.experimental.pallas import tpu as pltpu


# ------------------------------ fused kernel ------------------------------- #

def _fused_forward_kernel(*refs, bt, h0, n_convs, n_fcs):
    """refs = x_ref, (w,b)*convs, (w,b)*fcs, out_ref, conv-slab scratches..., fc-slab."""
    x_ref = refs[0]
    conv_refs = [(refs[1 + 2 * i], refs[2 + 2 * i]) for i in range(n_convs)]
    base = 1 + 2 * n_convs
    fc_refs = [(refs[base + 2 * i], refs[base + 2 * i + 1]) for i in range(n_fcs)]
    base += 2 * n_fcs
    o_ref = refs[base]
    slab_refs = list(refs[base + 1: base + 1 + n_convs])
    hfc_ref = refs[base + 1 + n_convs]

    # ---- conv stack: batch tile fused into the matmul M dimension ----------
    # Layer = KH matmuls of (M, W_in*Cin) @ (W_in*Cin, W_out*Cout), M ~ bt*H.
    # kh-shifted operands are sublane-offset loads of a VMEM ref (input block or
    # previous layer's scratch slab), never register rotates.
    src = x_ref
    for li in range(n_convs):
        w_ref, b_ref = conv_refs[li]
        dst = slab_refs[li]
        m_out, lanes = dst.shape
        kh_total = w_ref.shape[0]
        bias = b_ref[...]                       # weight bands / bias loaded once per layer
        acc = jnp.zeros((m_out, lanes), jnp.float32)
        for kh in range(kh_total):              # one slab-wide matmul per (layer, kh)
            acc = acc + jnp.dot(src[kh:kh + m_out, :], w_ref[kh],
                                preferred_element_type=jnp.float32)
        dst[...] = jnp.maximum(acc + bias, 0.0).astype(dst.dtype)   # bf16 slab, f32 bias/ReLU
        src = dst

    # ---- flatten + first FC as Ho row-band matmuls over the last conv slab --
    w1_ref, b1_ref = fc_refs[0]
    n_bands = w1_ref.shape[0]
    m_fc, f1 = hfc_ref.shape
    acc = jnp.zeros((m_fc, f1), jnp.float32)
    for i in range(n_bands):
        acc = acc + jnp.dot(src[i:i + m_fc, :], w1_ref[i],
                            preferred_element_type=jnp.float32)
    acc = acc + b1_ref[...]
    if n_fcs > 1:
        acc = jnp.maximum(acc, 0.0)
    hfc_ref[...] = acc.astype(hfc_ref.dtype)

    # ---- compact to one row per batch element and finish the FC stack -------
    # Valid rows sit at stride h0 in the slab; gather them with bt single-row
    # ref loads (vlds) + one concatenate.
    h = jnp.concatenate([hfc_ref[n * h0:n * h0 + 1, :] for n in range(bt)], axis=0)
    if n_fcs == 1:
        logits = h.astype(jnp.float32)
    else:
        for (w_ref, b_ref) in fc_refs[1:-1]:
            z = jnp.dot(h, w_ref[...], preferred_element_type=jnp.float32) + b_ref[...]
            h = jnp.maximum(z, 0.0).astype(w_ref.dtype)
        w_ref, b_ref = fc_refs[-1]
        logits = jnp.dot(h, w_ref[...], preferred_element_type=jnp.float32) + b_ref[...]

    # max-stabilized log-softmax in f32; one (bt, classes) store per grid step.
    m = jnp.max(logits, axis=-1, keepdims=True)
    z = logits - m
    lse = jnp.log(jnp.sum(jnp.exp(z), axis=-1, keepdims=True))
    o_ref[...] = (z - lse).astype(o_ref.dtype)


# --------------------------- one-time weight packing ------------------------ #

def pack_params(params, input_size, input_channels, kernel=(5, 5),
                compute_dtype=jnp.bfloat16):
    """Repack torch-layout params into the fused kernel's layouts (host side, once)."""
    KH, KW = kernel
    h, w = input_size
    cin = input_channels
    packed = {"convs": [], "fcs": [], "conv_dims": None, "kernel": (KH, KW),
              "compute_dtype": compute_dtype}
    conv_dims = []

    for (w_oihw, b) in params["convs"]:
        w_np = np.asarray(w_oihw, np.float32)            # (Cout, Cin, KH, KW)
        b_np = np.asarray(b, np.float32)
        cout = w_np.shape[0]
        ho, wo = h - KH + 1, w - KW + 1
        wt = np.transpose(w_np, (2, 3, 1, 0))            # (KH, KW, Cin, Cout)
        wbig = np.zeros((KH, w * cin, wo * cout), np.float32)
        for kh in range(KH):
            blk = wt[kh].reshape(KW * cin, cout)         # rows ordered (kw, cin)
            for wo_i in range(wo):
                wbig[kh,
                     wo_i * cin: wo_i * cin + KW * cin,
                     wo_i * cout:(wo_i + 1) * cout] = blk
        brow = np.tile(b_np, wo).reshape(1, wo * cout)   # bias per (wo, cout) lane
        conv_dims.append((h, w, cin, ho, wo, cout))
        packed["convs"].append((jnp.asarray(wbig, compute_dtype),
                                jnp.asarray(brow, jnp.float32)))
        h, w, cin = ho, wo, cout                         # output dims feed next layer

    # first FC: fold torch NCHW flatten order (c,h,w) into (h) row bands of (w,c) lanes
    w1, b1 = params["fcs"][0]
    w1_np = np.asarray(w1, np.float32)                   # (F1, C*H*W)
    f1 = w1_np.shape[0]
    w1b = np.transpose(w1_np.reshape(f1, cin, h, w), (2, 3, 1, 0)).reshape(h, w * cin, f1)
    packed["fcs"].append((jnp.asarray(w1b, compute_dtype),
                          jnp.asarray(np.asarray(b1, np.float32).reshape(1, -1))))
    # remaining FCs: pre-transpose once (torch Linear is y = x @ W.T + b)
    for (wf, bf) in params["fcs"][1:]:
        packed["fcs"].append((jnp.asarray(np.asarray(wf, np.float32).T.copy(), compute_dtype),
                              jnp.asarray(np.asarray(bf, np.float32).reshape(1, -1))))

    packed["conv_dims"] = tuple(conv_dims)
    return packed


def _const_index(ndim, b):
    """Constant index_map: weight block stays VMEM-resident across grid steps."""
    return (0,) * ndim


def make_forward(packed, batch_tile=8):
    """Build a jitted forward(x_nchw) running the whole network in one pallas_call."""
    conv_dims = packed["conv_dims"]
    KH, _ = packed["kernel"]
    H0, W0, C0 = conv_dims[0][:3]
    ho_last = conv_dims[-1][3]
    n_convs = len(packed["convs"])
    n_fcs = len(packed["fcs"])
    classes = packed["fcs"][-1][0].shape[-1]
    f1 = packed["fcs"][0][0].shape[-1]
    cdt = packed["compute_dtype"]

    param_args = []
    for (wgt, bias) in packed["convs"]:
        param_args += [wgt, bias]
    for (wgt, bias) in packed["fcs"]:
        param_args += [wgt, bias]

    def fwd(x_nchw, *params):
        n = x_nchw.shape[0]
        bt = batch_tile
        n_pad = ((n + bt - 1) // bt) * bt
        if n_pad != n:
            x_nchw = jnp.pad(x_nchw, ((0, n_pad - n), (0, 0), (0, 0), (0, 0)))

        # One boundary relayout: NCHW -> lane-dense (N*H, W*C) slab, cast bf16
        # (native MXU input, half the input DMA bytes).
        # TODO(synk): for very large batches fold this relayout into the kernel
        # (or accept NHWC upstream) to avoid the extra HBM read+write.
        x2d = jnp.transpose(x_nchw, (0, 2, 3, 1)).reshape(n_pad * H0, W0 * C0)
        x2d = x2d.astype(cdt)

        # VMEM scratch slabs (bf16): one per conv output + one for the band FC.
        scratch = []
        m = bt * H0
        for (_, _, _, _, wo, cout) in conv_dims:
            m -= (KH - 1)
            scratch.append(pltpu.VMEM((m, wo * cout), cdt))
        m_fc = m - (ho_last - 1)
        scratch.append(pltpu.VMEM((m_fc, f1), cdt))

        # Input / output are tiled over the batch grid; weights get a constant
        # index_map (resident across grid steps, no re-DMA).
        in_specs = [pl.BlockSpec((bt * H0, W0 * C0), lambda b: (b, 0))]
        for p in params:
            in_specs.append(pl.BlockSpec(p.shape, functools.partial(_const_index, p.ndim)))
        out_spec = pl.BlockSpec((bt, classes), lambda b: (b, 0))

        kernel = functools.partial(_fused_forward_kernel, bt=bt, h0=H0,
                                   n_convs=n_convs, n_fcs=n_fcs)
        out = pl.pallas_call(
            kernel,
            grid=(n_pad // bt,),
            out_shape=jax.ShapeDtypeStruct((n_pad, classes), jnp.float32),
            in_specs=in_specs,
            out_specs=out_spec,
            scratch_shapes=scratch,
            compiler_params=pltpu.CompilerParams(
                dimension_semantics=("parallel",),          # v7x: shard batch across 2 TCs
                vmem_limit_bytes=32 * 1024 * 1024),          # explicit scoped-VMEM budget
        )(x2d, *params)
        return out[:n]

    jitted = jax.jit(fwd)
    return lambda x: jitted(x, *param_args)


# ------------------------------- model setup -------------------------------- #

def init_params(key, input_size, input_channels, classes, convs, fcs, kernel=(5, 5),
                padding=(0, 0)):
    """Deterministic synthetic parameters with PyTorch-default-style uniform init."""
    conv_chs = [input_channels] + list(convs)
    params = {"convs": [], "fcs": []}
    for i in range(len(conv_chs) - 1):
        cin, cout = conv_chs[i], conv_chs[i + 1]
        fan_in = cin * kernel[0] * kernel[1]
        bound = 1.0 / float(np.sqrt(fan_in))
        key, kw_, kb_ = jax.random.split(key, 3)
        w = jax.random.uniform(kw_, (cout, cin, kernel[0], kernel[1]),
                               jnp.float32, -bound, bound)
        b = jax.random.uniform(kb_, (cout,), jnp.float32, -bound, bound)
        params["convs"].append((w, b))

    n_conv_layers = len(conv_chs) - 1
    flattened = 1
    for i in range(len(input_size)):
        flattened *= input_size[i] - (kernel[i] - 1 + padding[i] * 2) * n_conv_layers
    fc_dims = [conv_chs[-1] * flattened] + list(fcs) + [classes]
    for i in range(len(fc_dims) - 1):
        fan_in = fc_dims[i]
        bound = 1.0 / float(np.sqrt(fan_in))
        key, kw_, kb_ = jax.random.split(key, 3)
        w = jax.random.uniform(kw_, (fc_dims[i + 1], fc_dims[i]),
                               jnp.float32, -bound, bound)
        b = jax.random.uniform(kb_, (fc_dims[i + 1],), jnp.float32, -bound, bound)
        params["fcs"].append((w, b))
    return params


def reference_forward(x, params, bf16=False):
    """Plain-JAX reference of the PyTorch module.  With bf16=True it mirrors the
    kernel's numerics (bf16 matmul operands, f32 accumulation) for a tight check."""
    q = (lambda a: a.astype(jnp.bfloat16).astype(jnp.float32)) if bf16 else (lambda a: a)
    hp = jax.lax.Precision.HIGHEST
    h = q(x)
    for (w, b) in params["convs"]:
        h = jax.lax.conv_general_dilated(
            h, q(w), window_strides=(1, 1), padding="VALID",
            dimension_numbers=("NCHW", "OIHW", "NCHW"),
            precision=hp) + b[None, :, None, None]
        h = q(jnp.maximum(h, 0.0))
    h = h.reshape(h.shape[0], -1)
    for (w, b) in params["fcs"][:-1]:
        h = q(jnp.maximum(jnp.dot(h, q(w).T, precision=hp) + b, 0.0))
    w, b = params["fcs"][-1]
    logits = jnp.dot(h, q(w).T, precision=hp) + b
    return jax.nn.log_softmax(logits, axis=1)


# ---------------------------------- main ------------------------------------ #

if __name__ == "__main__":
    # Small config implied by the module: 16x16 input, 4 channels, 2 convs, 1 hidden FC.
    input_size = (16, 16)
    input_channels = 4
    classes = 10
    convs = [8, 8]
    fcs = [32]
    batch = 16            # small, but enough for a 2-step parallel batch grid (tile=8)

    key = jax.random.PRNGKey(0)
    key, kx = jax.random.split(key)
    x = jax.random.normal(kx, (batch, input_channels, *input_size), jnp.float32)

    params = init_params(key, input_size, input_channels, classes, convs, fcs)
    packed = pack_params(params, input_size, input_channels)
    forward = make_forward(packed, batch_tile=8)

    out = jax.block_until_ready(forward(x))
    assert out.shape == (batch, classes), out.shape

    # Strict check vs a reference that mirrors the kernel numerics (bf16 operands,
    # f32 accumulation) — differences are summation-order only.
    ref_bf16 = jax.block_until_ready(reference_forward(x, params, bf16=True))
    assert jnp.allclose(out, ref_bf16, atol=2e-3, rtol=2e-3), "mismatch vs bf16-mirrored reference"

    # Loose check vs the exact f32 module math (difference = bf16 quantization only).
    ref_f32 = jax.block_until_ready(reference_forward(x, params, bf16=False))
    assert jnp.allclose(out, ref_f32, atol=1e-1, rtol=1e-1), "mismatch vs f32 reference"

    # log-softmax rows must exponentiate-sum to 1
    assert jnp.allclose(jnp.sum(jnp.exp(out), axis=1), 1.0, atol=1e-4)

    print("KERNEL_OK")
</pallas_src>

<mosaic_0001>
module attributes {stable_mosaic.version = 11 : i64} {
  func.func @_fused_forward_kernel(%arg0: i32, %arg1: memref<128x64xbf16, #tpu.memory_space<vmem>>, %arg2: memref<5x64x96xbf16, #tpu.memory_space<vmem>>, %arg3: memref<1x96xf32, #tpu.memory_space<vmem>>, %arg4: memref<5x96x64xbf16, #tpu.memory_space<vmem>>, %arg5: memref<1x64xf32, #tpu.memory_space<vmem>>, %arg6: memref<8x64x32xbf16, #tpu.memory_space<vmem>>, %arg7: memref<1x32xf32, #tpu.memory_space<vmem>>, %arg8: memref<32x10xbf16, #tpu.memory_space<vmem>>, %arg9: memref<1x10xf32, #tpu.memory_space<vmem>>, %arg10: memref<8x10xf32, #tpu.memory_space<vmem>>, %arg11: memref<124x96xbf16, #tpu.memory_space<vmem>>, %arg12: memref<120x64xbf16, #tpu.memory_space<vmem>>, %arg13: memref<113x32xbf16, #tpu.memory_space<vmem>>) attributes {dimension_semantics = [#tpu.dimension_semantics<parallel>], iteration_bounds = array<i64: 2>, scalar_prefetch = 0 : i64, scratch_operands = 3 : i64, tpu.core_type = #tpu.core_type<tc>, window_params = [{transform_indices = @transform_0, window_bounds = array<i64: 128, 64>}, {pipeline_mode = #tpu.pipeline_mode<synchronous>, transform_indices = @transform_1, window_bounds = array<i64: 5, 64, 96>}, {pipeline_mode = #tpu.pipeline_mode<synchronous>, transform_indices = @transform_2, window_bounds = array<i64: 1, 96>}, {pipeline_mode = #tpu.pipeline_mode<synchronous>, transform_indices = @transform_3, window_bounds = array<i64: 5, 96, 64>}, {pipeline_mode = #tpu.pipeline_mode<synchronous>, transform_indices = @transform_4, window_bounds = array<i64: 1, 64>}, {pipeline_mode = #tpu.pipeline_mode<synchronous>, transform_indices = @transform_5, window_bounds = array<i64: 8, 64, 32>}, {pipeline_mode = #tpu.pipeline_mode<synchronous>, transform_indices = @transform_6, window_bounds = array<i64: 1, 32>}, {pipeline_mode = #tpu.pipeline_mode<synchronous>, transform_indices = @transform_7, window_bounds = array<i64: 32, 10>}, {pipeline_mode = #tpu.pipeline_mode<synchronous>, transform_indices = @transform_8, window_bounds = array<i64: 1, 10>}, {transform_indices = @transform_9, window_bounds = array<i64: 8, 10>}]} {
    %c0 = arith.constant 0 : index
    %c0_0 = arith.constant 0 : index
    %0 = vector.load %arg3[%c0, %c0_0] : memref<1x96xf32, #tpu.memory_space<vmem>>, vector<1x96xf32>
    %cst = arith.constant 0.000000e+00 : f32
    %1 = vector.broadcast %cst : f32 to vector<124x96xf32>
    %c0_1 = arith.constant 0 : index
    %c0_2 = arith.constant 0 : index
    %2 = vector.load %arg1[%c0_1, %c0_2] : memref<128x64xbf16, #tpu.memory_space<vmem>>, vector<124x64xbf16>
    %c0_3 = arith.constant 0 : index
    %c0_4 = arith.constant 0 : index
    %c0_5 = arith.constant 0 : index
    %3 = vector.load %arg2[%c0_3, %c0_4, %c0_5] : memref<5x64x96xbf16, #tpu.memory_space<vmem>>, vector<1x64x96xbf16>
    %4 = vector.shape_cast %3 : vector<1x64x96xbf16> to vector<64x96xbf16>
    %cst_6 = arith.constant dense<0.000000e+00> : vector<124x96xf32>
    %5 = tpu.matmul %2, %4, %cst_6 {dimension_numbers = #tpu.dot_dimension_numbers<[1], [0], [0], [1], [0, 0, 1, 1], [], []>} : vector<124x64xbf16>, vector<64x96xbf16>, vector<124x96xf32> -> vector<124x96xf32>
    %6 = arith.addf %1, %5 : vector<124x96xf32>
    %c1 = arith.constant 1 : index
    %c0_7 = arith.constant 0 : index
    %7 = vector.load %arg1[%c1, %c0_7] : memref<128x64xbf16, #tpu.memory_space<vmem>>, vector<124x64xbf16>
    %c1_8 = arith.constant 1 : index
    %c0_9 = arith.constant 0 : index
    %c0_10 = arith.constant 0 : index
    %8 = vector.load %arg2[%c1_8, %c0_9, %c0_10] : memref<5x64x96xbf16, #tpu.memory_space<vmem>>, vector<1x64x96xbf16>
    %9 = vector.shape_cast %8 : vector<1x64x96xbf16> to vector<64x96xbf16>
    %cst_11 = arith.constant dense<0.000000e+00> : vector<124x96xf32>
    %10 = tpu.matmul %7, %9, %cst_11 {dimension_numbers = #tpu.dot_dimension_numbers<[1], [0], [0], [1], [0, 0, 1, 1], [], []>} : vector<124x64xbf16>, vector<64x96xbf16>, vector<124x96xf32> -> vector<124x96xf32>
    %11 = arith.addf %6, %10 : vector<124x96xf32>
    %c2 = arith.constant 2 : index
    %c0_12 = arith.constant 0 : index
    %12 = vector.load %arg1[%c2, %c0_12] : memref<128x64xbf16, #tpu.memory_space<vmem>>, vector<124x64xbf16>
    %c2_13 = arith.constant 2 : index
    %c0_14 = arith.constant 0 : index
    %c0_15 = arith.constant 0 : index
    %13 = vector.load %arg2[%c2_13, %c0_14, %c0_15] : memref<5x64x96xbf16, #tpu.memory_space<vmem>>, vector<1x64x96xbf16>
    %14 = vector.shape_cast %13 : vector<1x64x96xbf16> to vector<64x96xbf16>
    %cst_16 = arith.constant dense<0.000000e+00> : vector<124x96xf32>
    %15 = tpu.matmul %12, %14, %cst_16 {dimension_numbers = #tpu.dot_dimension_numbers<[1], [0], [0], [1], [0, 0, 1, 1], [], []>} : vector<124x64xbf16>, vector<64x96xbf16>, vector<124x96xf32> -> vector<124x96xf32>
    %16 = arith.addf %11, %15 : vector<124x96xf32>
    %c3 = arith.constant 3 : index
    %c0_17 = arith.constant 0 : index
    %17 = vector.load %arg1[%c3, %c0_17] : memref<128x64xbf16, #tpu.memory_space<vmem>>, vector<124x64xbf16>
    %c3_18 = arith.constant 3 : index
    %c0_19 = arith.constant 0 : index
    %c0_20 = arith.constant 0 : index
    %18 = vector.load %arg2[%c3_18, %c0_19, %c0_20] : memref<5x64x96xbf16, #tpu.memory_space<vmem>>, vector<1x64x96xbf16>
    %19 = vector.shape_cast %18 : vector<1x64x96xbf16> to vector<64x96xbf16>
    %cst_21 = arith.constant dense<0.000000e+00> : vector<124x96xf32>
    %20 = tpu.matmul %17, %19, %cst_21 {dimension_numbers = #tpu.dot_dimension_numbers<[1], [0], [0], [1], [0, 0, 1, 1], [], []>} : vector<124x64xbf16>, vector<64x96xbf16>, vector<124x96xf32> -> vector<124x96xf32>
    %21 = arith.addf %16, %20 : vector<124x96xf32>
    %c4 = arith.constant 4 : index
    %c0_22 = arith.constant 0 : index
    %22 = vector.load %arg1[%c4, %c0_22] : memref<128x64xbf16, #tpu.memory_space<vmem>>, vector<124x64xbf16>
    %c4_23 = arith.constant 4 : index
    %c0_24 = arith.constant 0 : index
    %c0_25 = arith.constant 0 : index
    %23 = vector.load %arg2[%c4_23, %c0_24, %c0_25] : memref<5x64x96xbf16, #tpu.memory_space<vmem>>, vector<1x64x96xbf16>
    %24 = vector.shape_cast %23 : vector<1x64x96xbf16> to vector<64x96xbf16>
    %cst_26 = arith.constant dense<0.000000e+00> : vector<124x96xf32>
    %25 = tpu.matmul %22, %24, %cst_26 {dimension_numbers = #tpu.dot_dimension_numbers<[1], [0], [0], [1], [0, 0, 1, 1], [], []>} : vector<124x64xbf16>, vector<64x96xbf16>, vector<124x96xf32> -> vector<124x96xf32>
    %26 = arith.addf %21, %25 : vector<124x96xf32>
    %27 = vector.broadcast %0 : vector<1x96xf32> to vector<124x96xf32>
    %28 = arith.addf %26, %27 : vector<124x96xf32>
    %cst_27 = arith.constant 0.000000e+00 : f32
    %29 = vector.broadcast %cst_27 : f32 to vector<124x96xf32>
    %30 = arith.maximumf %28, %29 : vector<124x96xf32>
    %31 = arith.truncf %30 : vector<124x96xf32> to vector<124x96xbf16>
    %c0_28 = arith.constant 0 : index
    %c0_29 = arith.constant 0 : index
    %32 = vector.load %arg11[%c0_28, %c0_29] : memref<124x96xbf16, #tpu.memory_space<vmem>>, vector<124x96xbf16>
    tpu.vector_store %arg11[%c0_28, %c0_29], %31 {strides = array<i32>} : memref<124x96xbf16, #tpu.memory_space<vmem>>, vector<124x96xbf16>,
    %c0_30 = arith.constant 0 : index
    %c0_31 = arith.constant 0 : index
    %33 = vector.load %arg5[%c0_30, %c0_31] : memref<1x64xf32, #tpu.memory_space<vmem>>, vector<1x64xf32>
    %cst_32 = arith.constant 0.000000e+00 : f32
    %34 = vector.broadcast %cst_32 : f32 to vector<120x64xf32>
    %c0_33 = arith.constant 0 : index
    %c0_34 = arith.constant 0 : index
    %35 = vector.load %arg11[%c0_33, %c0_34] : memref<124x96xbf16, #tpu.memory_space<vmem>>, vector<120x96xbf16>
    %c0_35 = arith.constant 0 : index
    %c0_36 = arith.constant 0 : index
    %c0_37 = arith.constant 0 : index
    %36 = vector.load %arg4[%c0_35, %c0_36, %c0_37] : memref<5x96x64xbf16, #tpu.memory_space<vmem>>, vector<1x96x64xbf16>
    %37 = vector.shape_cast %36 : vector<1x96x64xbf16> to vector<96x64xbf16>
    %cst_38 = arith.constant dense<0.000000e+00> : vector<120x64xf32>
    %38 = tpu.matmul %35, %37, %cst_38 {dimension_numbers = #tpu.dot_dimension_numbers<[1], [0], [0], [1], [0, 0, 1, 1], [], []>} : vector<120x96xbf16>, vector<96x64xbf16>, vector<120x64xf32> -> vector<120x64xf32>
    %39 = arith.addf %34, %38 : vector<120x64xf32>
    %c1_39 = arith.constant 1 : index
    %c0_40 = arith.constant 0 : index
    %40 = vector.load %arg11[%c1_39, %c0_40] : memref<124x96xbf16, #tpu.memory_space<vmem>>, vector<120x96xbf16>
    %c1_41 = arith.constant 1 : index
    %c0_42 = arith.constant 0 : index
    %c0_43 = arith.constant 0 : index
    %41 = vector.load %arg4[%c1_41, %c0_42, %c0_43] : memref<5x96x64xbf16, #tpu.memory_space<vmem>>, vector<1x96x64xbf16>
    %42 = vector.shape_cast %41 : vector<1x96x64xbf16> to vector<96x64xbf16>
    %cst_44 = arith.constant dense<0.000000e+00> : vector<120x64xf32>
    %43 = tpu.matmul %40, %42, %cst_44 {dimension_numbers = #tpu.dot_dimension_numbers<[1], [0], [0], [1], [0, 0, 1, 1], [], []>} : vector<120x96xbf16>, vector<96x64xbf16>, vector<120x64xf32> -> vector<120x64xf32>
    %44 = arith.addf %39, %43 : vector<120x64xf32>
    %c2_45 = arith.constant 2 : index
    %c0_46 = arith.constant 0 : index
    %45 = vector.load %arg11[%c2_45, %c0_46] : memref<124x96xbf16, #tpu.memory_space<vmem>>, vector<120x96xbf16>
    %c2_47 = arith.constant 2 : index
    %c0_48 = arith.constant 0 : index
    %c0_49 = arith.constant 0 : index
    %46 = vector.load %arg4[%c2_47, %c0_48, %c0_49] : memref<5x96x64xbf16, #tpu.memory_space<vmem>>, vector<1x96x64xbf16>
    %47 = vector.shape_cast %46 : vector<1x96x64xbf16> to vector<96x64xbf16>
    %cst_50 = arith.constant dense<0.000000e+00> : vector<120x64xf32>
    %48 = tpu.matmul %45, %47, %cst_50 {dimension_numbers = #tpu.dot_dimension_numbers<[1], [0], [0], [1], [0, 0, 1, 1], [], []>} : vector<120x96xbf16>, vector<96x64xbf16>, vector<120x64xf32> -> vector<120x64xf32>
    %49 = arith.addf %44, %48 : vector<120x64xf32>
    %c3_51 = arith.constant 3 : index
    %c0_52 = arith.constant 0 : index
    %50 = vector.load %arg11[%c3_51, %c0_52] : memref<124x96xbf16, #tpu.memory_space<vmem>>, vector<120x96xbf16>
    %c3_53 = arith.constant 3 : index
    %c0_54 = arith.constant 0 : index
    %c0_55 = arith.constant 0 : index
    %51 = vector.load %arg4[%c3_53, %c0_54, %c0_55] : memref<5x96x64xbf16, #tpu.memory_space<vmem>>, vector<1x96x64xbf16>
    %52 = vector.shape_cast %51 : vector<1x96x64xbf16> to vector<96x64xbf16>
    %cst_56 = arith.constant dense<0.000000e+00> : vector<120x64xf32>
    %53 = tpu.matmul %50, %52, %cst_56 {dimension_numbers = #tpu.dot_dimension_numbers<[1], [0], [0], [1], [0, 0, 1, 1], [], []>} : vector<120x96xbf16>, vector<96x64xbf16>, vector<120x64xf32> -> vector<120x64xf32>
    %54 = arith.addf %49, %53 : vector<120x64xf32>
    %c4_57 = arith.constant 4 : index
    %c0_58 = arith.constant 0 : index
    %55 = vector.load %arg11[%c4_57, %c0_58] : memref<124x96xbf16, #tpu.memory_space<vmem>>, vector<120x96xbf16>
    %c4_59 = arith.constant 4 : index
    %c0_60 = arith.constant 0 : index
    %c0_61 = arith.constant 0 : index
    %56 = vector.load %arg4[%c4_59, %c0_60, %c0_61] : memref<5x96x64xbf16, #tpu.memory_space<vmem>>, vector<1x96x64xbf16>
    %57 = vector.shape_cast %56 : vector<1x96x64xbf16> to vector<96x64xbf16>
    %cst_62 = arith.constant dense<0.000000e+00> : vector<120x64xf32>
    %58 = tpu.matmul %55, %57, %cst_62 {dimension_numbers = #tpu.dot_dimension_numbers<[1], [0], [0], [1], [0, 0, 1, 1], [], []>} : vector<120x96xbf16>, vector<96x64xbf16>, vector<120x64xf32> -> vector<120x64xf32>
    %59 = arith.addf %54, %58 : vector<120x64xf32>
    %60 = vector.broadcast %33 : vector<1x64xf32> to vector<120x64xf32>
    %61 = arith.addf %59, %60 : vector<120x64xf32>
    %cst_63 = arith.constant 0.000000e+00 : f32
    %62 = vector.broadcast %cst_63 : f32 to vector<120x64xf32>
    %63 = arith.maximumf %61, %62 : vector<120x64xf32>
    %64 = arith.truncf %63 : vector<120x64xf32> to vector<120x64xbf16>
    %c0_64 = arith.constant 0 : index
    %c0_65 = arith.constant 0 : index
    %65 = vector.load %arg12[%c0_64, %c0_65] : memref<120x64xbf16, #tpu.memory_space<vmem>>, vector<120x64xbf16>
    tpu.vector_store %arg12[%c0_64, %c0_65], %64 {strides = array<i32>} : memref<120x64xbf16, #tpu.memory_space<vmem>>, vector<120x64xbf16>,
    %cst_66 = arith.constant 0.000000e+00 : f32
    %66 = vector.broadcast %cst_66 : f32 to vector<113x32xf32>
    %c0_67 = arith.constant 0 : index
    %c0_68 = arith.constant 0 : index
    %67 = vector.load %arg12[%c0_67, %c0_68] : memref<120x64xbf16, #tpu.memory_space<vmem>>, vector<113x64xbf16>
    %c0_69 = arith.constant 0 : index
    %c0_70 = arith.constant 0 : index
    %c0_71 = arith.constant 0 : index
    %68 = vector.load %arg6[%c0_69, %c0_70, %c0_71] : memref<8x64x32xbf16, #tpu.memory_space<vmem>>, vector<1x64x32xbf16>
    %69 = vector.shape_cast %68 : vector<1x64x32xbf16> to vector<64x32xbf16>
    %cst_72 = arith.constant dense<0.000000e+00> : vector<113x32xf32>
    %70 = tpu.matmul %67, %69, %cst_72 {dimension_numbers = #tpu.dot_dimension_numbers<[1], [0], [0], [1], [0, 0, 1, 1], [], []>} : vector<113x64xbf16>, vector<64x32xbf16>, vector<113x32xf32> -> vector<113x32xf32>
    %71 = arith.addf %66, %70 : vector<113x32xf32>
    %c1_73 = arith.constant 1 : index
    %c0_74 = arith.constant 0 : index
    %72 = vector.load %arg12[%c1_73, %c0_74] : memref<120x64xbf16, #tpu.memory_space<vmem>>, vector<113x64xbf16>
    %c1_75 = arith.constant 1 : index
    %c0_76 = arith.constant 0 : index
    %c0_77 = arith.constant 0 : index
    %73 = vector.load %arg6[%c1_75, %c0_76, %c0_77] : memref<8x64x32xbf16, #tpu.memory_space<vmem>>, vector<1x64x32xbf16>
    %74 = vector.shape_cast %73 : vector<1x64x32xbf16> to vector<64x32xbf16>
    %cst_78 = arith.constant dense<0.000000e+00> : vector<113x32xf32>
    %75 = tpu.matmul %72, %74, %cst_78 {dimension_numbers = #tpu.dot_dimension_numbers<[1], [0], [0], [1], [0, 0, 1, 1], [], []>} : vector<113x64xbf16>, vector<64x32xbf16>, vector<113x32xf32> -> vector<113x32xf32>
    %76 = arith.addf %71, %75 : vector<113x32xf32>
    %c2_79 = arith.constant 2 : index
    %c0_80 = arith.constant 0 : index
    %77 = vector.load %arg12[%c2_79, %c0_80] : memref<120x64xbf16, #tpu.memory_space<vmem>>, vector<113x64xbf16>
    %c2_81 = arith.constant 2 : index
    %c0_82 = arith.constant 0 : index
    %c0_83 = arith.constant 0 : index
    %78 = vector.load %arg6[%c2_81, %c0_82, %c0_83] : memref<8x64x32xbf16, #tpu.memory_space<vmem>>, vector<1x64x32xbf16>
    %79 = vector.shape_cast %78 : vector<1x64x32xbf16> to vector<64x32xbf16>
    %cst_84 = arith.constant dense<0.000000e+00> : vector<113x32xf32>
    %80 = tpu.matmul %77, %79, %cst_84 {dimension_numbers = #tpu.dot_dimension_numbers<[1], [0], [0], [1], [0, 0, 1, 1], [], []>} : vector<113x64xbf16>, vector<64x32xbf16>, vector<113x32xf32> -> vector<113x32xf32>
    %81 = arith.addf %76, %80 : vector<113x32xf32>
    %c3_85 = arith.constant 3 : index
    %c0_86 = arith.constant 0 : index
    %82 = vector.load %arg12[%c3_85, %c0_86] : memref<120x64xbf16, #tpu.memory_space<vmem>>, vector<113x64xbf16>
    %c3_87 = arith.constant 3 : index
    %c0_88 = arith.constant 0 : index
    %c0_89 = arith.constant 0 : index
    %83 = vector.load %arg6[%c3_87, %c0_88, %c0_89] : memref<8x64x32xbf16, #tpu.memory_space<vmem>>, vector<1x64x32xbf16>
    %84 = vector.shape_cast %83 : vector<1x64x32xbf16> to vector<64x32xbf16>
    %cst_90 = arith.constant dense<0.000000e+00> : vector<113x32xf32>
    %85 = tpu.matmul %82, %84, %cst_90 {dimension_numbers = #tpu.dot_dimension_numbers<[1], [0], [0], [1], [0, 0, 1, 1], [], []>} : vector<113x64xbf16>, vector<64x32xbf16>, vector<113x32xf32> -> vector<113x32xf32>
    %86 = arith.addf %81, %85 : vector<113x32xf32>
    %c4_91 = arith.constant 4 : index
    %c0_92 = arith.constant 0 : index
    %87 = vector.load %arg12[%c4_91, %c0_92] : memref<120x64xbf16, #tpu.memory_space<vmem>>, vector<113x64xbf16>
    %c4_93 = arith.constant 4 : index
    %c0_94 = arith.constant 0 : index
    %c0_95 = arith.constant 0 : index
    %88 = vector.load %arg6[%c4_93, %c0_94, %c0_95] : memref<8x64x32xbf16, #tpu.memory_space<vmem>>, vector<1x64x32xbf16>
    %89 = vector.shape_cast %88 : vector<1x64x32xbf16> to vector<64x32xbf16>
    %cst_96 = arith.constant dense<0.000000e+00> : vector<113x32xf32>
    %90 = tpu.matmul %87, %89, %cst_96 {dimension_numbers = #tpu.dot_dimension_numbers<[1], [0], [0], [1], [0, 0, 1, 1], [], []>} : vector<113x64xbf16>, vector<64x32xbf16>, vector<113x32xf32> -> vector<113x32xf32>
    %91 = arith.addf %86, %90 : vector<113x32xf32>
    %c5 = arith.constant 5 : index
    %c0_97 = arith.constant 0 : index
    %92 = vector.load %arg12[%c5, %c0_97] : memref<120x64xbf16, #tpu.memory_space<vmem>>, vector<113x64xbf16>
    %c5_98 = arith.constant 5 : index
    %c0_99 = arith.constant 0 : index
    %c0_100 = arith.constant 0 : index
    %93 = vector.load %arg6[%c5_98, %c0_99, %c0_100] : memref<8x64x32xbf16, #tpu.memory_space<vmem>>, vector<1x64x32xbf16>
    %94 = vector.shape_cast %93 : vector<1x64x32xbf16> to vector<64x32xbf16>
    %cst_101 = arith.constant dense<0.000000e+00> : vector<113x32xf32>
    %95 = tpu.matmul %92, %94, %cst_101 {dimension_numbers = #tpu.dot_dimension_numbers<[1], [0], [0], [1], [0, 0, 1, 1], [], []>} : vector<113x64xbf16>, vector<64x32xbf16>, vector<113x32xf32> -> vector<113x32xf32>
    %96 = arith.addf %91, %95 : vector<113x32xf32>
    %c6 = arith.constant 6 : index
    %c0_102 = arith.constant 0 : index
    %97 = vector.load %arg12[%c6, %c0_102] : memref<120x64xbf16, #tpu.memory_space<vmem>>, vector<113x64xbf16>
    %c6_103 = arith.constant 6 : index
    %c0_104 = arith.constant 0 : index
    %c0_105 = arith.constant 0 : index
    %98 = vector.load %arg6[%c6_103, %c0_104, %c0_105] : memref<8x64x32xbf16, #tpu.memory_space<vmem>>, vector<1x64x32xbf16>
    %99 = vector.shape_cast %98 : vector<1x64x32xbf16> to vector<64x32xbf16>
    %cst_106 = arith.constant dense<0.000000e+00> : vector<113x32xf32>
    %100 = tpu.matmul %97, %99, %cst_106 {dimension_numbers = #tpu.dot_dimension_numbers<[1], [0], [0], [1], [0, 0, 1, 1], [], []>} : vector<113x64xbf16>, vector<64x32xbf16>, vector<113x32xf32> -> vector<113x32xf32>
    %101 = arith.addf %96, %100 : vector<113x32xf32>
    %c7 = arith.constant 7 : index
    %c0_107 = arith.constant 0 : index
    %102 = vector.load %arg12[%c7, %c0_107] : memref<120x64xbf16, #tpu.memory_space<vmem>>, vector<113x64xbf16>
    %c7_108 = arith.constant 7 : index
    %c0_109 = arith.constant 0 : index
    %c0_110 = arith.constant 0 : index
    %103 = vector.load %arg6[%c7_108, %c0_109, %c0_110] : memref<8x64x32xbf16, #tpu.memory_space<vmem>>, vector<1x64x32xbf16>
    %104 = vector.shape_cast %103 : vector<1x64x32xbf16> to vector<64x32xbf16>
    %cst_111 = arith.constant dense<0.000000e+00> : vector<113x32xf32>
    %105 = tpu.matmul %102, %104, %cst_111 {dimension_numbers = #tpu.dot_dimension_numbers<[1], [0], [0], [1], [0, 0, 1, 1], [], []>} : vector<113x64xbf16>, vector<64x32xbf16>, vector<113x32xf32> -> vector<113x32xf32>
    %106 = arith.addf %101, %105 : vector<113x32xf32>
    %c0_112 = arith.constant 0 : index
    %c0_113 = arith.constant 0 : index
    %107 = vector.load %arg7[%c0_112, %c0_113] : memref<1x32xf32, #tpu.memory_space<vmem>>, vector<1x32xf32>
    %108 = vector.broadcast %107 : vector<1x32xf32> to vector<113x32xf32>
    %109 = arith.addf %106, %108 : vector<113x32xf32>
    %cst_114 = arith.constant 0.000000e+00 : f32
    %110 = vector.broadcast %cst_114 : f32 to vector<113x32xf32>
    %111 = arith.maximumf %109, %110 : vector<113x32xf32>
    %112 = arith.truncf %111 : vector<113x32xf32> to vector<113x32xbf16>
    %c0_115 = arith.constant 0 : index
    %c0_116 = arith.constant 0 : index
    %113 = vector.load %arg13[%c0_115, %c0_116] : memref<113x32xbf16, #tpu.memory_space<vmem>>, vector<113x32xbf16>
    tpu.vector_store %arg13[%c0_115, %c0_116], %112 {strides = array<i32>} : memref<113x32xbf16, #tpu.memory_space<vmem>>, vector<113x32xbf16>,
    %c0_117 = arith.constant 0 : index
    %c0_118 = arith.constant 0 : index
    %114 = vector.load %arg13[%c0_117, %c0_118] : memref<113x32xbf16, #tpu.memory_space<vmem>>, vector<1x32xbf16>
    %c16 = arith.constant 16 : index
    %c0_119 = arith.constant 0 : index
    %115 = vector.load %arg13[%c16, %c0_119] : memref<113x32xbf16, #tpu.memory_space<vmem>>, vector<1x32xbf16>
    %c32 = arith.constant 32 : index
    %c0_120 = arith.constant 0 : index
    %116 = vector.load %arg13[%c32, %c0_120] : memref<113x32xbf16, #tpu.memory_space<vmem>>, vector<1x32xbf16>
    %c48 = arith.constant 48 : index
    %c0_121 = arith.constant 0 : index
    %117 = vector.load %arg13[%c48, %c0_121] : memref<113x32xbf16, #tpu.memory_space<vmem>>, vector<1x32xbf16>
    %c64 = arith.constant 64 : index
    %c0_122 = arith.constant 0 : index
    %118 = vector.load %arg13[%c64, %c0_122] : memref<113x32xbf16, #tpu.memory_space<vmem>>, vector<1x32xbf16>
    %c80 = arith.constant 80 : index
    %c0_123 = arith.constant 0 : index
    %119 = vector.load %arg13[%c80, %c0_123] : memref<113x32xbf16, #tpu.memory_space<vmem>>, vector<1x32xbf16>
    %c96 = arith.constant 96 : index
    %c0_124 = arith.constant 0 : index
    %120 = vector.load %arg13[%c96, %c0_124] : memref<113x32xbf16, #tpu.memory_space<vmem>>, vector<1x32xbf16>
    %c112 = arith.constant 112 : index
    %c0_125 = arith.constant 0 : index
    %121 = vector.load %arg13[%c112, %c0_125] : memref<113x32xbf16, #tpu.memory_space<vmem>>, vector<1x32xbf16>
    %122 = tpu.concatenate %114, %115, %116, %117, %118, %119, %120, %121 in 0 : vector<1x32xbf16>, vector<1x32xbf16>, vector<1x32xbf16>, vector<1x32xbf16>, vector<1x32xbf16>, vector<1x32xbf16>, vector<1x32xbf16>, vector<1x32xbf16> -> vector<8x32xbf16>
    %c0_126 = arith.constant 0 : index
    %c0_127 = arith.constant 0 : index
    %123 = vector.load %arg8[%c0_126, %c0_127] : memref<32x10xbf16, #tpu.memory_space<vmem>>, vector<32x10xbf16>
    %cst_128 = arith.constant dense<0.000000e+00> : vector<8x10xf32>
    %124 = tpu.matmul %122, %123, %cst_128 {dimension_numbers = #tpu.dot_dimension_numbers<[1], [0], [0], [1], [0, 0, 1, 1], [], []>} : vector<8x32xbf16>, vector<32x10xbf16>, vector<8x10xf32> -> vector<8x10xf32>
    %c0_129 = arith.constant 0 : index
    %c0_130 = arith.constant 0 : index
    %125 = vector.load %arg9[%c0_129, %c0_130] : memref<1x10xf32, #tpu.memory_space<vmem>>, vector<1x10xf32>
    %126 = vector.broadcast %125 : vector<1x10xf32> to vector<8x10xf32>
    %127 = arith.addf %124, %126 : vector<8x10xf32>
    %cst_131 = arith.constant dense<0xFF800000> : vector<8xf32>
    %128 = vector.multi_reduction <maximumf>, %127, %cst_131 [1] : vector<8x10xf32> to vector<8xf32>
    %129 = vector.shape_cast %128 : vector<8xf32> to vector<8x1xf32>
    %130 = vector.broadcast %129 : vector<8x1xf32> to vector<8x10xf32>
    %131 = arith.subf %127, %130 : vector<8x10xf32>
    %132 = math.exp %131 : vector<8x10xf32>
    %cst_132 = arith.constant dense<0.000000e+00> : vector<8xf32>
    %133 = vector.multi_reduction <add>, %132, %cst_132 [1] : vector<8x10xf32> to vector<8xf32>
    %134 = vector.shape_cast %133 : vector<8xf32> to vector<8x1xf32>
    %135 = math.log %134 : vector<8x1xf32>
    %136 = vector.broadcast %135 : vector<8x1xf32> to vector<8x10xf32>
    %137 = arith.subf %131, %136 : vector<8x10xf32>
    %c0_133 = arith.constant 0 : index
    %c0_134 = arith.constant 0 : index
    %138 = vector.load %arg10[%c0_133, %c0_134] : memref<8x10xf32, #tpu.memory_space<vmem>>, vector<8x10xf32>
    tpu.vector_store %arg10[%c0_133, %c0_134], %137 {strides = array<i32>} : memref<8x10xf32, #tpu.memory_space<vmem>>, vector<8x10xf32>,
    return
  }
  func.func @transform_0(%arg0: i32) -> (i32, i32) {
    %c0_i32 = arith.constant 0 : i32
    %c0_i32_0 = arith.constant 0 : i32
    return %arg0, %c0_i32 : i32, i32
  }
  func.func @transform_1(%arg0: i32) -> (i32, i32, i32) {
    %c0_i32 = arith.constant 0 : i32
    %c0_i32_0 = arith.constant 0 : i32
    %c0_i32_1 = arith.constant 0 : i32
    %c0_i32_2 = arith.constant 0 : i32
    return %c0_i32, %c0_i32_0, %c0_i32_1 : i32, i32, i32
  }
  func.func @transform_2(%arg0: i32) -> (i32, i32) {
    %c0_i32 = arith.constant 0 : i32
    %c0_i32_0 = arith.constant 0 : i32
    %c0_i32_1 = arith.constant 0 : i32
    return %c0_i32, %c0_i32_0 : i32, i32
  }
  func.func @transform_3(%arg0: i32) -> (i32, i32, i32) {
    %c0_i32 = arith.constant 0 : i32
    %c0_i32_0 = arith.constant 0 : i32
    %c0_i32_1 = arith.constant 0 : i32
    %c0_i32_2 = arith.constant 0 : i32
    return %c0_i32, %c0_i32_0, %c0_i32_1 : i32, i32, i32
  }
  func.func @transform_4(%arg0: i32) -> (i32, i32) {
    %c0_i32 = arith.constant 0 : i32
    %c0_i32_0 = arith.constant 0 : i32
    %c0_i32_1 = arith.constant 0 : i32
    return %c0_i32, %c0_i32_0 : i32, i32
  }
  func.func @transform_5(%arg0: i32) -> (i32, i32, i32) {
    %c0_i32 = arith.constant 0 : i32
    %c0_i32_0 = arith.constant 0 : i32
    %c0_i32_1 = arith.constant 0 : i32
    %c0_i32_2 = arith.constant 0 : i32
    return %c0_i32, %c0_i32_0, %c0_i32_1 : i32, i32, i32
  }
  func.func @transform_6(%arg0: i32) -> (i32, i32) {
    %c0_i32 = arith.constant 0 : i32
    %c0_i32_0 = arith.constant 0 : i32
    %c0_i32_1 = arith.constant 0 : i32
    return %c0_i32, %c0_i32_0 : i32, i32
  }
  func.func @transform_7(%arg0: i32) -> (i32, i32) {
    %c0_i32 = arith.constant 0 : i32
    %c0_i32_0 = arith.constant 0 : i32
    %c0_i32_1 = arith.constant 0 : i32
    return %c0_i32, %c0_i32_0 : i32, i32
  }
  func.func @transform_8(%arg0: i32) -> (i32, i32) {
    %c0_i32 = arith.constant 0 : i32
    %c0_i32_0 = arith.constant 0 : i32
    %c0_i32_1 = arith.constant 0 : i32
    return %c0_i32, %c0_i32_0 : i32, i32
  }
  func.func @transform_9(%arg0: i32) -> (i32, i32) {
    %c0_i32 = arith.constant 0 : i32
    %c0_i32_0 = arith.constant 0 : i32
    return %arg0, %c0_i32 : i32, i32
  }
}

</mosaic_0001>

<bundles_post_ra>
// kernel: fwd.1
= control target key start
LH: loop header
LB: loop body
LE: loop exit
PB: predicated region body
PF: predicated region fallthrough
CT: control target
= control target key end

     0   :  { %14 = vsyncpa [#allocation6], 0  ;;  %s7604_s0 = inlined_call_operand.vmem [shape: bf16[256,64], index: 0, kind: input, shape index: {}]   ;;  %s7605_s1 = inlined_call_operand.vmem [shape: bf16[5,64,96], index: 1, kind: input, shape index: {}]   ;;  %s7606_s2 = inlined_call_operand.vmem [shape: f32[1,96], index: 2, kind: input, shape index: {}]   ;;  %s7607_s3 = inlined_call_operand.vmem [shape: bf16[5,96,64], index: 3, kind: input, shape index: {}]   ;;  %s7608_s4 = inlined_call_operand.vmem [shape: f32[1,64], index: 4, kind: input, shape index: {}]   ;;  %s7609_s5 = inlined_call_operand.vmem [shape: bf16[8,64,32], index: 5, kind: input, shape index: {}]   ;;  %s7610_s6 = inlined_call_operand.vmem [shape: f32[1,32], index: 6, kind: input, shape index: {}]   ;;  %s7611_s7 = inlined_call_operand.vmem [shape: bf16[32,10], index: 7, kind: input, shape index: {}]   ;;  %s7612_s8 = inlined_call_operand.vmem [shape: f32[1,10], index: 8, kind: input, shape index: {}]   ;;  %s7613_s9 = inlined_call_operand.hbm [shape: f32[16,10], index: 9, kind: output, shape index: {}]  }
   0x1   :  { %16 = vsyncpa [#allocation6 + $0x1], 0  ;;  %s6136_s30 = smov 0   ;;  %s6138_s10 = smov 0  }
   0x2   :  { %s6140_s11 = smov 0   ;;  %s6142_s12 = smov 0  }
   0x3 LB: > { %s6157_s13 = sadd.s32 4294967295, %s6081_s12   ;;  %s4645_s14 = sadd.s32 4294967294, %s6081_s12   ;;  %s6081_s12 = sphi %s6142_s12, %s7645_s12   ;;  %s6077_s11 = sphi %s6140_s11, %s7644_s11   ;;  %s6073_s10 = sphi %s6138_s10, %s7643_s10   ;;  %s6069_s30 = sphi %s6136_s30, %s7642_s30  }
   0x4   : > { %s6161_s15 = sadd.s32 1, %s6081_s12   ;;  %s223_s16 = sadd.s32 1, %s6077_s11 }
   0x5   : > { %s220_s17 = ssub.s32 %s6081_s12, %s6161_s15  ;;  %p233_p0 = scmp.ne.s32.totalorder %s6077_s11, %s6073_s10 }
   0x6   : > { %p221_p1 = scmp.eq.s32.totalorder %s220_s17, 0  ;;  %p234_p2 = scmp.eq.s32.totalorder %s6157_s13, 1 }
   0x7   : > { %p239_p3 = scmp.ne.s32.totalorder %s6073_s10, %s6069_s30  ;;  %p240_p4 = scmp.eq.s32.totalorder %s4645_s14, 1 }
   0x8   : > { %s6172_s18 = scalar_select %p221_p1, %s6077_s11, %s223_s16  }
   0x9   : > { %p6174_p5 = por %p234_p2, %p233_p0  ;;  %p6178_p6 = por %p240_p4, %p239_p3 }
   0xa   : > { %p4648_p7 = scmp.ge.s32.totalorder %s6081_s12, 1  ;;  %p291_p8 = scmp.lt.s32.totalorder %s6081_s12, 3 }
   0xc   : > { %p292_p9 = pnand %p4648_p7, %p291_p8 }
   0xe   : > { %295 = sbr.rel (%p292_p9) target bundleno = 1481 (0x5c9), region = 56 }
  0x13   : > { %v5892_v0 = vld [vmem:[%s7605_s1 + $0x38] sm:$0xff]   ;;  %s4650_s23 = sshll.u32 %s6157_s13, 4  ;;  %v5894_v2 = vld [vmem:[%s7605_s1 + $0x30] sm:$0xff]   ;;  %v5896_v4 = vld [vmem:[%s7605_s1 + $0x28] sm:$0xff]   ;;  %vm497_vm0 = vcmask 523264   ;;  %vm773_vm2 = vcmask 1046528  }
  0x14   : > { %v5893_v1 = vld [vmem:[%s7605_s1 + $0x18] sm:$0xff]   ;;  %p328_p10 = scmp.lt.s32.totalorder %s4650_s23, 31  ;;  %5391 = vmatprep.subr.bf16.mxu0 %v5892_v0  ;;  %v5895_v3 = vld [vmem:[%s7605_s1 + $0x10] sm:$0xff]   ;;  %v5897_v5 = vld [vmem:[%s7605_s1 + $0x8] sm:$0xff]   ;;  %vm409_vm1 = vsmask.f32 7424 }
  0x15   : > { %5415 = vmatprep.subr.bf16.mxu1 %v5893_v1  ;;  %5392 = vmatpush3.bf16.msra.mxu0 %v5892_v0  ;;  %v5898_v6 = vld [vmem:[%s7605_s1 + $0x20] sm:$0xff]   ;;  %v5903_v18 = vld [vmem:[%s7605_s1 + $0x58] sm:$0xff]   ;;  %v5906_v31 = vld [vmem:[%s7605_s1 + $0x50] sm:$0xff]   ;;  %vm963_vm3 = vsmask.f32 6400  ;;  %vm1179_vm4 = vcmask 1045504  }
  0x16   : > { %s7647_s23 = smov (!%p328_p10, %s4650_s23), 31  ;;  %5416 = vmatpush3.bf16.msra.mxu1 %v5893_v1  ;;  %5393 = vmatprep.subr.bf16.mxu0 %v5894_v2  ;;  %v5899_v7 = vld [vmem:[%s7605_s1] sm:$0xff]   ;;  %v5909_v42 = vld [vmem:[%s7605_s1 + $0x48] sm:$0xff]   ;;  %v5910_v45 = vld [vmem:[%s7605_s1 + $0x78] sm:$0xff]   ;;  %vm1458_vm5 = vcmask 781312   ;;  %vm1657_vm6 = vcmask 785408  }
  0x17   : > { %5417 = vmatprep.subr.bf16.mxu1 %v5895_v3  ;;  %s4651_s22 = sshll.u32 %s7647_s23, 2  ;;  %v5911_v46 = vld [vmem:[%s7605_s1 + $0x70] sm:$0xff]   ;;  %v5914_v57 = vld [vmem:[%s7605_s1 + $0x40] sm:$0xff]   ;;  %v5915_v58 = vld [vmem:[%s7605_s1 + $0x68] sm:$0xff]   ;;  %vm1474_vm7 = vcmask 779264   ;;  %vm2660_vm8 = vcmask 519168  }
  0x18   : > { %s6209_s28 = scalar_lea.vmem %s7604_s0, %s4651_s22  ;;  %v5916_v1 = vld [vmem:[%s7605_s1 + $0x60] sm:$0xff]   ;;  %vm4090_vm9 = vsmask.f32 4352  ;;  %vm3906_vm10 = vcmask 1044480   ;;  %vm3688_vm11 = vsmask.f32 5376 }
  0x19   : > { %5394 = vmatpush3.bf16.msra.mxu0 %v5894_v2  ;;  %v335_v8 = vld [vmem:[%s6209_s28] sm:$0xf]  ;;  %v6216_v9 = vld [vmem:[%s6209_s28 + $0x4] sm:$0xf]  ;;  %v6220_v11 = vld [vmem:[%s6209_s28 + $0x8] sm:$0xff]   ;;  %vm6084_vm12 = vmmov 0  }
  0x1a   : > { %5418 = vmatpush3.bf16.msra.mxu1 %v5895_v3  ;;  %5395 = vmatprep.subr.bf16.mxu0 %v5896_v4  ;;  %v4660_v10 = vcombine.low %v335_v8, %v6216_v9  ;;  %v6223_v12 = vld [vmem:[%s6209_s28 + $0x10] sm:$0xff]   ;;  %v418_v15 = vshll.u32 %v6220_v11, 16  ;;  %v422_v16 = vshrl.u32 %v6220_v11, 16  ;;  %v6233_v21 = vld [vmem:[%s6209_s28 + $0x18] sm:$0xff]   ;;  %v6237_v23 = vld [vmem:[%s6209_s28 + $0x20] sm:$0xff]   ;;  %v775_v2 = vrot.slane %v6220_v11, 1 }
  0x1b   : > { %5419 = vmatprep.subr.bf16.mxu1 %v5897_v5  ;;  %v426_v17 = vshll.u32 %v6223_v12, 16  ;;  %v430_v22 = vshrl.u32 %v6223_v12, 16  ;;  %v434_v27 = vshll.u32 %v6233_v21, 16  ;;  %v438_v29 = vshrl.u32 %v6233_v21, 16  ;;  %v6248_v32 = vld [vmem:[%s6209_s28 + $0x28] sm:$0xff]   ;;  %v6264_v40 = vld [vmem:[%s6209_s28 + $0x30] sm:$0xff]  }
  0x1c   : > { %v411_v13 = vshrl.u32 %v4660_v10, 16  ;;  %v413_v14 = vshll.u32 %v4660_v10, 16  ;;  %5423 = vmatprep.mubr.msk.bf16.mxu1 %vm497_vm0, %v4660_v10  ;;  %v420_v20 = vrot.slane %v418_v15, 1  ;;  %v442_v30 = vshll.u32 %v6237_v23, 16  ;;  %v6285_v47 = vld [vmem:[%s6209_s28 + $0x38] sm:$0xf] }
  0x1d   : > { %5396 = vmatpush3.bf16.msra.mxu0 %v5896_v4  ;;  %v428_v24 = vrot.slane %v426_v17, 1  ;;  %v436_v35 = vrot.slane %v434_v27, 1  ;;  %v446_v36 = vshrl.u32 %v6237_v23, 16  ;;  %v450_v37 = vshll.u32 %v6248_v32, 16  ;;  %v359_v48 = vld [vmem:[%s6209_s28 + $0x3c] sm:$0x7] }
  0x1e   : > { %5420 = vmatpush3.bf16.msra.mxu1 %v5897_v5  ;;  %5397 = vmatprep.subr.bf16.mxu0 %v5898_v6  ;;  %v415_v19 = vrot.slane %v413_v14, 1  ;;  %v424_v26 = vor.u32 %v422_v16, %v420_v20  ;;  %v444_v39 = vrot.slane %v442_v30, 1  ;;  %v454_v49 = vshrl.u32 %v6248_v32, 16  ;;  %v760_v59 = vld [vmem:[%s6209_s28] sm:$0xe]  ;;  %s324_s24 = sand.u32 1, %s6073_s10  }
  0x1f   : > { %5421 = vmatprep.subr.bf16.mxu1 %v5899_v7  ;;  %v432_v28 = vor.u32 %v430_v22, %v428_v24  ;;  %v440_v41 = vor.u32 %v438_v29, %v436_v35  ;;  %v452_v44 = vrot.slane %v450_v37, 1  ;;  %v458_v50 = vshll.u32 %v6264_v40, 16  ;;  %s4649_s25 = sshll.u32 %s324_s24, 3  ;;  %s4573_s16 = scalar_lea.sflag [#allocation6], %s324_s24 }
  0x20   : > { %v416_v25 = vor.u32 %v415_v19, %v411_v13  ;;  %v429_v34 = vsel %vm409_vm1, %v424_v26, %v428_v24  ;;  %v448_v43 = vor.u32 %v446_v36, %v444_v39  ;;  %v6291_v51 = vcombine.low %v6285_v47, %v359_v48  ;;  %v950_v26 = vld [vmem:[%s6209_s28 + $0x3c] sm:$0xf]  ;;  %s326_s26 = scalar_lea.vmem [#allocation5], %s4649_s25  ;;  %s6085_s21 = smov [#allocation5]  }
  0x21   : > { %5398 = vmatpush3.bf16.msra.mxu0 %v5898_v6  ;;  %v437_v38 = vsel %vm409_vm1, %v432_v28, %v436_v35  ;;  %v973_v52 = vrot.slane %v418_v15, 2  ;;  %v445_v53 = vsel %vm409_vm1, %v440_v41, %v444_v39  ;;  %v462_v55 = vshrl.u32 %v6264_v40, 16  ;;  %v350_v15 = vld [vmem:[%s6209_s28 + $0x3c] sm:$0x3]  ;;  %v1166_v28 = vld [vmem:[%s6209_s28] sm:$0xc] }
  0x22   : > { %5422 = vmatpush3.bf16.msra.mxu1 %v5899_v7  ;;  %5439 = vmatprep.subr.bf16.mxu0 %v5903_v18  ;;  %v421_v33 = vsel %vm409_vm1, %v416_v25, %v420_v20  ;;  %v453_v54 = vsel %vm409_vm1, %v448_v43, %v452_v44  ;;  %v466_v56 = vshll.u32 %v6291_v51, 16  ;;  %v6304_v60 = vrot.slane %v426_v17, 2  ;;  %v6329_v7 = vld [vmem:[%s7605_s1 + $0x98] sm:$0xff]   ;;  %s5113_s28 = sshll.u32 %s6157_s13, 7  ;;  %s4586_s27 = sshll.u32 %s326_s26, 4  ;;  %s4587_s27 = int_to_ptr.vmem [resolvable:$true] %s4586_s27 }
  0x23   : > { %5399 = vmatprep.mubr.msk.bf16.mxu0 %vm497_vm0, %v421_v33  ;;  %5463 = vmatprep.subr.bf16.mxu1 %v5910_v45  ;;  %v456_v61 = vor.u32 %v454_v49, %v452_v44  ;;  %v460_v62 = vrot.slane %v458_v50, 1  ;;  %v4701_v63 = vcombine.low %v760_v59, %v6216_v9  ;;  %v6314_v0 = vrot.slane %v430_v22, 1  ;;  %s4584_s23 = scalar_lea.hbm %s7613_s9, %s5113_s28  ;;  %s6021_s17 = scalar_lea.vmem %s4587_s27, 128 }
  0x24   : > { %5400 = vmatmul.mubr.msk.bf16.vlgmr.msra.gmra.mxu0 %vm497_vm0, %v429_v34  ;;  %v777_v3 = vrot.slane %v6223_v12, 1  ;;  %v468_v5 = vrot.slane %v466_v56, 1  ;;  %v470_v13 = vshrl.u32 %v6291_v51, 16  ;;  %v972_v14 = vrot.slane %v422_v16, 1  ;;  %p6022_p11 = scmp.ne.s32.totalorder %s4587_s27, %s6021_s17  ;;  %s6025_s22 = sshll.u32 %s6085_s21, 4  ;;  %s6026_s22 = int_to_ptr.vmem [resolvable:$false] %s6025_s22 }
  0x25   : > { %5424 = vmatmul.mubr.msk.bf16.vlgmr.msra.gmra.mxu1 %vm497_vm0, %v6220_v11  ;;  %5440 = vmatpush3.bf16.msra.mxu0 %v5903_v18  ;;  %v464_v4 = vor.u32 %v462_v55, %v460_v62  ;;  %v965_v6 = vshrl.u32 %v4701_v63, 16  ;;  %v968_v8 = vshll.u32 %v4701_v63, 16  ;;  %v461_v10 = vsel %vm409_vm1, %v456_v61, %v460_v62  ;;  %s6027_s13 = scalar_lea.vmem %s6026_s22, 256  ;;  %p6028_p0 = scmp.lt.s32.totalorder %s4587_s27, %s6026_s22 }
  0x26   : > { %5403 = vmatprep.mubr.msk.bf16.mxu0 %vm497_vm0, %v437_v38  ;;  %5427 = vmatprep.mubr.msk.bf16.mxu1 %vm497_vm0, %v6223_v12  ;;  %v779_v19 = vrot.slane %v6233_v21, 1  ;;  %v781_v20 = vrot.slane %v6237_v23, 1  ;;  %v774_v24 = vrot.slane %v4701_v63, 1  ;;  %v980_v25 = vrot.slane %v438_v29, 1  ;;  %p6023_p12 = pnand %p6022_p11, %p6174_p5  ;;  %p6029_p1 = scmp.lt.s32.totalorder %s6027_s13, %s6021_s17 }
  0x27   : > { %5441 = vmatprep.subr.bf16.mxu0 %v5906_v31  ;;  %5464 = vmatpush3.bf16.msra.mxu1 %v5910_v45  ;;  %v967_v17 = vrot.slane %v965_v6, 1  ;;  %v970_v18 = vrot.slane %v968_v8, 2  ;;  %v469_v22 = vsel %vm409_vm1, %v464_v4, %v468_v5  ;;  %v981_v16 = vrot.slane %v434_v27, 2 }
  0x28   : > { %5465 = vmatprep.subr.bf16.mxu1 %v5911_v46  ;;  %v984_v33 = vrot.slane %v446_v36, 1  ;;  %v985_v29 = vrot.slane %v442_v30, 2  ;;  %v974_v34 = vor.u32 %v973_v52, %v972_v14  ;;  %v783_v35 = vrot.slane %v6248_v32, 1  ;;  %p6024_p13 = pneg %p6023_p12  ;;  %p6030_p2 = por %p6029_p1, %p6028_p0 }
  0x29   : > { %5442 = vmatpush3.bf16.msra.mxu0 %v5906_v31  ;;  %v4680_v31 = vcombine.low %v6285_v47, %v350_v15  ;;  %v971_v27 = vor.u32 %v970_v18, %v967_v17  ;;  %v785_v38 = vrot.slane %v6264_v40, 1  ;;  %v988_v39 = vrot.slane %v454_v49, 1 }
  0x2a   : > { %5443 = vmatprep.subr.bf16.mxu0 %v5909_v42  ;;  %v989_v36 = vrot.slane %v450_v37, 2  ;;  %v6364_v30 = vcombine.low %v6285_v47, %v950_v26  ;;  %v4743_v41 = vcombine.low %v1166_v28, %v6216_v9  ;;  %v776_v43 = vsel %vm773_vm2, %v774_v24, %v775_v2  ;;  %v5927_v24 = vld [vmem:[%s7607_s3 + $0x18] sm:$0xff]   ;;  %v5928_v26 = vld [vmem:[%s7607_s3 + $0x50] sm:$0xff]   ;;  %v5931_v28 = vld [vmem:[%s7607_s3 + $0x8] sm:$0xff]   ;;  %p6031_p3 = pnand %p6030_p2, %p6024_p13 }
  0x2b   : > { %5466 = vmatpush3.bf16.msra.mxu1 %v5911_v46  ;;  %v1183_v44 = vrot.slane %v6223_v12, 2  ;;  %v1185_v45 = vrot.slane %v6233_v21, 2  ;;  %v992_v46 = vrot.slane %v462_v55, 1  ;;  %v993_v37 = vrot.slane %v458_v50, 2  ;;  %v5924_v12 = vld [vmem:[%s7607_s3 + $0x28] sm:$0xff]  }
  0x2c   : > { %5404 = vmatmul.mubr.msk.bf16.gmra.mxu0 %vm497_vm0, %v445_v53  ;;  %5467 = vmatprep.subr.bf16.mxu1 %v5915_v58  ;;  %v997_v47 = vshrl.u32 %v6364_v30, 16  ;;  %v1000_v48 = vshll.u32 %v6364_v30, 16  ;;  %v975_v9 = vsel %vm963_vm3, %v971_v27, %v974_v34  ;;  %v1187_v52 = vrot.slane %v6237_v23, 2  ;;  %v5937_v27 = vld [vmem:[%s7607_s3 + $0x38] sm:$0xff]  }
  0x2d   : > { %5428 = vmatmul.mubr.msk.bf16.gmra.mxu1 %vm497_vm0, %v6233_v21  ;;  %5407 = vmatprep.mubr.msk.bf16.mxu0 %vm497_vm0, %v453_v54  ;;  %v1186_v49 = vsel %vm1179_vm4, %v1183_v44, %v1185_v45  ;;  %v1189_v53 = vrot.slane %v6248_v32, 2  ;;  %v787_v54 = vrot.slane %v6291_v51, 1  ;;  %v1180_v55 = vrot.slane %v4743_v41, 2 }
  0x2e   : > { %5431 = vmatprep.mubr.msk.bf16.mxu1 %vm497_vm0, %v6237_v23  ;;  %5444 = vmatpush3.bf16.msra.mxu0 %v5909_v42  ;;  %v472_v42 = vor.u32 %v470_v13, %v468_v5  ;;  %v1181_v56 = vrot.slane %v6220_v11, 2  ;;  %v1191_v50 = vrot.slane %v6264_v40, 2  ;;  %v1188_v59 = vsel %vm1179_vm4, %v1185_v45, %v1187_v52  ;;  %v5920_v11 = vld [vmem:[%s7605_s1 + $0x88] sm:$0xff]  }
  0x2f   : > { %5445 = vmatprep.subr.bf16.mxu0 %v5914_v57  ;;  %5468 = vmatpush3.bf16.msra.mxu1 %v5915_v58  ;;  %v1002_v58 = vrot.slane %v1000_v48, 2  ;;  %v1190_v61 = vsel %vm1179_vm4, %v1187_v52, %v1189_v53  ;;  %v978_v51 = vor.u32 %v6304_v60, %v6314_v0  ;;  %v982_v63 = vor.u32 %v981_v16, %v980_v25  ;;  %v5925_v25 = vld [vmem:[%s7607_s3 + $0x58] sm:$0xff]   ;;  %v5929_v16 = vld [vmem:[%s7607_s3 + $0x10] sm:$0xff]  }
  0x30   : > { %5469 = vmatprep.subr.bf16.mxu1 %v5916_v1  ;;  %v1192_v62 = vsel %vm1179_vm4, %v1189_v53, %v1191_v50  ;;  %v778_v4 = vsel %vm773_vm2, %v775_v2, %v777_v3  ;;  %v780_v6 = vsel %vm773_vm2, %v777_v3, %v779_v19  ;;  %v986_v0 = vor.u32 %v985_v29, %v984_v33  ;;  %v5933_v33 = vld [vmem:[%s7607_s3] sm:$0xff]  }
  0x31   : > { %v979_v5 = vsel %vm963_vm3, %v974_v34, %v978_v51  ;;  %v983_v60 = vsel %vm963_vm3, %v978_v51, %v982_v63  ;;  %v990_v2 = vor.u32 %v989_v36, %v988_v39  ;;  %v782_v3 = vsel %vm773_vm2, %v779_v19, %v781_v20  ;;  %v5932_v29 = vld [vmem:[%s7607_s3 + $0x40] sm:$0xff]   ;;  %v5938_v34 = vld [vmem:[%s7607_s3 + $0x30] sm:$0xff]  }
  0x32   : > { %5446 = vmatpush3.bf16.msra.mxu0 %v5914_v57  ;;  %v999_v57 = vrot.slane %v997_v47, 1  ;;  %v987_v8 = vsel %vm963_vm3, %v982_v63, %v986_v0  ;;  %v994_v21 = vor.u32 %v993_v37, %v992_v46  ;;  %v786_v23 = vsel %vm773_vm2, %v783_v35, %v785_v38 }
  0x33   : > { %5487 = vmatprep.subr.bf16.mxu0 %v6329_v7  ;;  %5470 = vmatpush3.bf16.msra.mxu1 %v5916_v1  ;;  %v5919_v1 = vld [vmem:[%s7605_s1 + $0x90] sm:$0xff]   ;;  %v991_v13 = vsel %vm963_vm3, %v986_v0, %v990_v2  ;;  %v788_v17 = vsel %vm773_vm2, %v785_v38, %v787_v54  ;;  %v1193_v19 = vrot.slane %v6364_v30, 2  ;;  %v6513_v38 = vld [vmem:[%s7607_s3 + $0x88] sm:$0xff]   ;;  %vm4389_vm13 = vcmask 257024  }
  0x34   : > { %5408 = vmatmul.mubr.msk.bf16.gmra.mxu0 %vm497_vm0, %v461_v10  ;;  %v784_v10 = vsel %vm773_vm2, %v781_v20, %v783_v35  ;;  %v1003_v14 = vor.u32 %v1002_v58, %v999_v57  ;;  %v995_v15 = vsel %vm963_vm3, %v990_v2, %v994_v21  ;;  %5511 = vmatprep.subr.bf16.mxu1 %v5925_v25  ;;  %v6507_v35 = vld [vmem:[%s7607_s3 + $0xb8] sm:$0xff]   ;;  %vm4404_vm14 = vcmask 253952  }
  0x35   : > { %5432 = vmatmul.mubr.msk.bf16.gmra.mxu1 %vm497_vm0, %v6248_v32  ;;  %5411 = vmatprep.mubr.msk.bf16.mxu0 %vm497_vm0, %v469_v22  ;;  %v1182_v32 = vsel %vm1179_vm4, %v1180_v55, %v1181_v56  ;;  %v1194_v20 = vsel %vm1179_vm4, %v1191_v50, %v1193_v19  ;;  %v5926_v22 = vld [vmem:[%s7607_s3 + $0x20] sm:$0xff]   ;;  %7620 = vst [vmem:[#allocation8_spill] sm:$0xff] %v6507_v35  ;;  %7621 = vst [vmem:[#allocation9_spill] sm:$0xff] %v6513_v38  ;;  %vm4405_vm15 = vsmask.f32 256 }
  0x36   : > { %5435 = vmatprep.mubr.msk.bf16.mxu1 %vm497_vm0, %v6264_v40  ;;  %v1004_v18 = vsel %vm963_vm3, %v994_v21, %v1003_v14  ;;  %v1184_v40 = vsel %vm1179_vm4, %v1181_v56, %v1183_v44 }
  0x3c   : > { %5412 = vmatmul.mubr.msk.bf16.gmra.mxu0 %vm497_vm0, %v472_v42 }
  0x3d   : > { %5436 = vmatmul.mubr.msk.bf16.gmra.mxu1 %vm497_vm0, %v4680_v31  ;;  %5447 = vmatprep.mubr.msk.bf16.mxu0 %vm497_vm0, %v776_v43  ;;  %v5930_v31 = vld [vmem:[%s7607_s3 + $0x48] sm:$0xff]  }
  0x3e   : > { %5471 = vmatprep.mubr.msk.bf16.mxu1 %vm497_vm0, %v975_v9 }
  0x44   : > { %5448 = vmatmul.mubr.msk.bf16.vlgmr.msra.gmra.mxu0 %vm497_vm0, %v778_v4 }
  0x45   : > { %5472 = vmatmul.mubr.msk.bf16.vlgmr.msra.gmra.mxu1 %vm497_vm0, %v979_v5  ;;  %5488 = vmatpush3.bf16.msra.mxu0 %v6329_v7  ;;  %v5921_v7 = vld [vmem:[%s7605_s1 + $0x80] sm:$0xff]  }
  0x46   : > { %5451 = vmatprep.mubr.msk.bf16.mxu0 %vm497_vm0, %v780_v6  ;;  %5489 = vmatprep.subr.bf16.mxu0 %v5919_v1 }
  0x47   : > { %5475 = vmatprep.mubr.msk.bf16.mxu1 %vm497_vm0, %v983_v60  ;;  %5512 = vmatpush3.bf16.msra.mxu1 %v5925_v25 }
  0x48   : > { %5513 = vmatprep.subr.bf16.mxu1 %v5928_v26 }
  0x49   : > { %5490 = vmatpush3.bf16.msra.mxu0 %v5919_v1 }
  0x4a   : > { %5491 = vmatprep.subr.bf16.mxu0 %v5920_v11 }
  0x4b   : > { %5514 = vmatpush3.bf16.msra.mxu1 %v5928_v26 }
  0x4c   : > { %5452 = vmatmul.mubr.msk.bf16.gmra.mxu0 %vm497_vm0, %v782_v3  ;;  %5515 = vmatprep.subr.bf16.mxu1 %v5930_v31 }
  0x4d   : > { %5476 = vmatmul.mubr.msk.bf16.gmra.mxu1 %vm497_vm0, %v987_v8  ;;  %5455 = vmatprep.mubr.msk.bf16.mxu0 %vm497_vm0, %v784_v10 }
  0x4e   : > { %5479 = vmatprep.mubr.msk.bf16.mxu1 %vm497_vm0, %v991_v13  ;;  %5492 = vmatpush3.bf16.msra.mxu0 %v5920_v11 }
  0x4f   : > { %5493 = vmatprep.subr.bf16.mxu0 %v5921_v7  ;;  %5516 = vmatpush3.bf16.msra.mxu1 %v5930_v31 }
  0x50   : > { %5517 = vmatprep.subr.bf16.mxu1 %v5932_v29 }
  0x52   : > { %5494 = vmatpush3.bf16.msra.mxu0 %v5921_v7 }
  0x53   : > { %5539 = vmatprep.subr.bf16.mxu0 %v5924_v12  ;;  %5518 = vmatpush3.bf16.msra.mxu1 %v5932_v29 }
  0x54   : > { %5456 = vmatmul.mubr.msk.bf16.gmra.mxu0 %vm497_vm0, %v786_v23  ;;  %5519 = vmatprep.subr.bf16.mxu1 %v5937_v27 }
  0x55   : > { %5480 = vmatmul.mubr.msk.bf16.gmra.mxu1 %vm497_vm0, %v995_v15  ;;  %5459 = vmatprep.mubr.msk.bf16.mxu0 %vm497_vm0, %v788_v17 }
  0x56   : > { %5483 = vmatprep.mubr.msk.bf16.mxu1 %vm497_vm0, %v1004_v18 }
  0x57   : > { %5520 = vmatpush3.bf16.msra.mxu1 %v5937_v27 }
  0x58   : > { %5521 = vmatprep.subr.bf16.mxu1 %v5938_v34 }
  0x5b   : > { %5522 = vmatpush3.bf16.msra.mxu1 %v5938_v34 }
  0x5c   : > { %5460 = vmatmul.mubr.msk.bf16.gmra.mxu0 %vm497_vm0, %v787_v54  ;;  %5567 = vmatprep.subr.bf16.mxu1 %v6513_v38 }
  0x5d   : > { %5484 = vmatmul.mubr.msk.bf16.gmra.mxu1 %vm497_vm0, %v1003_v14  ;;  %5495 = vmatprep.mubr.msk.bf16.mxu0 %vm497_vm0, %v1182_v32 }
  0x64   : > { %5496 = vmatmul.mubr.msk.bf16.vlgmr.msra.gmra.mxu0 %vm497_vm0, %v1184_v40 }
  0x65   : > { %5499 = vmatprep.mubr.msk.bf16.mxu0 %vm497_vm0, %v1186_v49  ;;  %5540 = vmatpush3.bf16.msra.mxu0 %v5924_v12 }
  0x66   : > { %5541 = vmatprep.subr.bf16.mxu0 %v5926_v22 }
  0x69   : > { %5542 = vmatpush3.bf16.msra.mxu0 %v5926_v22 }
  0x6a   : > { %5543 = vmatprep.subr.bf16.mxu0 %v5927_v24 }
  0x6c   : > { %5500 = vmatmul.mubr.msk.bf16.gmra.mxu0 %vm497_vm0, %v1188_v59 }
  0x6d   : > { %5503 = vmatprep.mubr.msk.bf16.mxu0 %vm497_vm0, %v1190_v61  ;;  %5544 = vmatpush3.bf16.msra.mxu0 %v5927_v24 }
  0x6e   : > { %5545 = vmatprep.subr.bf16.mxu0 %v5929_v16 }
  0x71   : > { %5546 = vmatpush3.bf16.msra.mxu0 %v5929_v16 }
  0x72   : > { %5547 = vmatprep.subr.bf16.mxu0 %v5931_v28 }
  0x74   : > { %5504 = vmatmul.mubr.msk.bf16.gmra.mxu0 %vm497_vm0, %v1192_v62 }
  0x75   : > { %5507 = vmatprep.mubr.msk.bf16.mxu0 %vm497_vm0, %v1194_v20  ;;  %5548 = vmatpush3.bf16.msra.mxu0 %v5931_v28 }
  0x76   : > { %5549 = vmatprep.subr.bf16.mxu0 %v5933_v33 }
  0x79   : > { %5550 = vmatpush3.bf16.msra.mxu0 %v5933_v33 }
  0x7a   : > { %5595 = vmatprep.subr.bf16.mxu0 %v6507_v35 }
  0x7c   : > { %5508 = vmatmul.mubr.msk.bf16.gmra.mxu0 %vm497_vm0, %v1193_v19 }
  0xe4   : > { %v5401_v39 = vpop.f32.mrf.mxu0 }
  0xe5   : > { %v5425_v36 = vpop.f32.mrf.mxu1 }
  0xe6   : > { %v556_v30 = vpop.f32.mrf.mxu0  ;;  %v706_v24 = vadd.f32 %v5425_v36, %v5401_v39  ;;  %v6575_v39 = vld [vmem:[%s7606_s2] ss:$0 sm:$0xff] }
  0xe7   : > { %v697_v41 = vpop.f32.mrf.mxu1 }
  0xe8   : > { %v5402_v42 = vpop.f32.mrf.mxu0  ;;  %v698_v26 = vadd.f32 %v697_v41, %v556_v30 }
  0xe9   : > { %v5426_v43 = vpop.f32.mrf.mxu1 }
  0xea   : > { %v559_v44 = vpop.f32.mrf.mxu0  ;;  %v709_v33 = vadd.f32 %v5426_v43, %v5402_v42 }
  0xeb   : > { %v700_v45 = vpop.f32.mrf.mxu1 }
  0xec   : > { %v5405_v46 = vpop.f32.mrf.mxu0  ;;  %v701_v38 = vadd.f32 %v700_v45, %v559_v44 }
  0xed   : > { %v5429_v37 = vpop.f32.mrf.mxu1 }
  0xee   : > { %v572_v47 = vpop.f32.mrf.mxu0 }
  0xef   : > { %v713_v48 = vpop.f32.mrf.mxu1 }
  0xf0   : > { %v6516_v9 = vpop.f32.mrf.mxu0  ;;  %v714_v43 = vadd.f32 %v713_v48, %v572_v47 }
  0xf1   : > { %v6518_v49 = vpop.f32.mrf.mxu1 }
  0xf2   : > { %v6520_v52 = vpop.f32.mrf.mxu0 }
  0xf3   : > { %v6522_v53 = vpop.f32.mrf.mxu1 }
  0xf4   : > { %v6524_v54 = vpop.f32.mrf.mxu0 }
  0xf5   : > { %v6526_v55 = vpop.f32.mrf.mxu1 }
  0xf6   : > { %v6528_v56 = vpop.f32.mrf.mxu0 }
  0xf7   : > { %v6530_v50 = vpop.f32.mrf.mxu1 }
  0xf8   : > { %v6532_v57 = vpop.f32.mrf.mxu0 }
  0xf9   : > { %v6534_v58 = vpop.f32.mrf.mxu1 }
  0xfa   : > { %v6536_v59 = vpop.f32.mrf.mxu0 }
  0xfb   : > { %v6538_v61 = vpop.f32.mrf.mxu1 }
  0xfc   : > { %v6540_v62 = vpop.f32.mrf.mxu0 }
  0xfd   : > { %v6542_v51 = vpop.f32.mrf.mxu1 }
  0xfe   : > { %v6544_v63 = vpop.f32.mrf.mxu0 }
  0xff   : > { %v6546_v1 = vpop.f32.mrf.mxu1 }
 0x100   : > { %v6548_v4 = vpop.f32.mrf.mxu0 }
 0x101   : > { %v6550_v5 = vpop.f32.mrf.mxu1 }
 0x102   : > { %v6552_v6 = vpop.f32.mrf.mxu0 }
 0x103   : > { %7622 = vst [vmem:[#allocation10_spill] sm:$0xff] %v6552_v6  ;;  %v6554_v60 = vpop.f32.mrf.mxu1  ;;  %v722_v6 = vadd.f32 %v5429_v37, %v5405_v46  ;;  %v725_v46 = vadd.f32 %v6518_v49, %v6516_v9  ;;  %v738_v49 = vadd.f32 %v6526_v55, %v6524_v54 }
 0x104   : > { %7623 = vst [vmem:[#allocation11_spill] sm:$0xff] %v6554_v60  ;;  %v5449_v11 = vpop.f32.mrf.mxu0 }
 0x105   : > { %v5473_v0 = vpop.f32.mrf.mxu1  ;;  %v936_v28 = vadd.f32 %v5449_v11, %v706_v24 }
 0x106   : > { %v871_v2 = vpop.f32.mrf.mxu0 }
 0x107   : > { %v1087_v3 = vpop.f32.mrf.mxu1  ;;  %v934_v29 = vadd.f32 %v871_v2, %v698_v26  ;;  %v1152_v35 = vadd.f32 %v5473_v0, %v936_v28 }
 0x108   : > { %v5450_v8 = vpop.f32.mrf.mxu0 }
 0x109   : > { %v5474_v7 = vpop.f32.mrf.mxu1  ;;  %v937_v60 = vadd.f32 %v5450_v8, %v709_v33  ;;  %v1150_v30 = vadd.f32 %v1087_v3, %v934_v29 }
 0x10a   : > { %v874_v10 = vpop.f32.mrf.mxu0 }
 0x10b   : > { %v1090_v21 = vpop.f32.mrf.mxu1  ;;  %v935_v41 = vadd.f32 %v874_v10, %v701_v38  ;;  %v1153_v26 = vadd.f32 %v5474_v7, %v937_v60 }
 0x10c   : > { %v5453_v13 = vpop.f32.mrf.mxu0 }
 0x10d   : > { %v5477_v15 = vpop.f32.mrf.mxu1  ;;  %v940_v2 = vadd.f32 %v5453_v13, %v722_v6  ;;  %v1151_v8 = vadd.f32 %v1090_v21, %v935_v41 }
 0x10e   : > { %v887_v14 = vpop.f32.mrf.mxu0 }
 0x10f   : > { %v1103_v32 = vpop.f32.mrf.mxu1  ;;  %v938_v37 = vadd.f32 %v887_v14, %v714_v43  ;;  %v1156_v47 = vadd.f32 %v5477_v15, %v940_v2  ;;  %v730_v15 = vadd.f32 %v6530_v50, %v6528_v56  ;;  %v741_v43 = vadd.f32 %v6534_v58, %v6532_v57 }
 0x110   : > { %v5454_v23 = vpop.f32.mrf.mxu0 }
 0x111   : > { %v5478_v20 = vpop.f32.mrf.mxu1  ;;  %v941_v48 = vadd.f32 %v5454_v23, %v725_v46  ;;  %v1154_v13 = vadd.f32 %v1103_v32, %v938_v37 }
 0x112   : > { %v890_v17 = vpop.f32.mrf.mxu0 }
 0x113   : > { %v1106_v25 = vpop.f32.mrf.mxu1 }
 0x114   : > { %v5457_v18 = vpop.f32.mrf.mxu0 }
 0x115   : > { %v6568_v27 = vpop.f32.mrf.mxu1  ;;  %v944_v41 = vadd.f32 %v5457_v18, %v738_v49 }
 0x116   : > { %v6556_v40 = vpop.f32.mrf.mxu0 }
 0x117   : > { %v6577_v11 = vpop.f32.mrf.mxu1  ;;  %v1160_v46 = vadd.f32 %v6568_v27, %v944_v41 }
 0x118   : > { %v6558_v19 = vpop.f32.mrf.mxu0 }
 0x119   : > { %v5482_v28 = vpop.f32.mrf.mxu1  ;;  %v945_v37 = vadd.f32 %v6558_v19, %v741_v43 }
 0x11a   : > { %v6560_v12 = vpop.f32.mrf.mxu0 }
 0x11b   : > { %v1122_v29 = vpop.f32.mrf.mxu1 }
 0x11c   : > { %v6562_v22 = vpop.f32.mrf.mxu0 }
 0x11e   : > { %v6564_v16 = vpop.f32.mrf.mxu0 }
 0x120   : > { %v6566_v31 = vpop.f32.mrf.mxu0 }
 0x122   : > { %v6570_v34 = vpop.f32.mrf.mxu0 }
 0x124   : > { %v5497_v36 = vpop.f32.mrf.mxu0 }
 0x125   : > { %v1342_v42 = vadd.f32 %v5497_v36, %v1152_v35  ;;  %v717_v35 = vadd.f32 %v6522_v53, %v6520_v52 }
 0x126   : > { %v1277_v24 = vpop.f32.mrf.mxu0 }
 0x127   : > { %v1364_v44 = vadd.f32 %v6575_v39, %v1342_v42  ;;  %v1340_v45 = vadd.f32 %v1277_v24, %v1150_v30  ;;  %v939_v21 = vadd.f32 %v890_v17, %v717_v35  ;;  %v1157_v30 = vadd.f32 %v5478_v20, %v941_v48 }
 0x128   : > { %v5498_v0 = vpop.f32.mrf.mxu0  ;;  %v942_v24 = vadd.f32 %v6556_v40, %v730_v15  ;;  %v1161_v48 = vadd.f32 %v5482_v28, %v945_v37 }
 0x129   : > { %v1380_v33 = vmax.f32 %v1364_v44, 0.0  ;;  %v1362_v38 = vadd.f32 %v6575_v39, %v1340_v45  ;;  %v1343_v3 = vadd.f32 %v5498_v0, %v1153_v26  ;;  %v1155_v2 = vadd.f32 %v1106_v25, %v939_v21  ;;  %v5485_v44 = vpop.f32.mrf.mxu1  ;;  %v7624_v21 = vld [vmem:[#allocation10_spill] sm:$0xff] }
 0x12a   : > { %v1280_v6 = vpop.f32.mrf.mxu0  ;;  %v733_v45 = vadd.f32 %v6538_v61, %v6536_v59 }
 0x12b   : > { %v5118_v60 = vpack.c.bf16 %v1380_v33, %v1380_v33  ;;  %v1378_v7 = vmax.f32 %v1362_v38, 0.0  ;;  %v1365_v10 = vadd.f32 %v6575_v39, %v1343_v3  ;;  %v1341_v9 = vadd.f32 %v1280_v6, %v1151_v8  ;;  %v1135_v61 = vpop.f32.mrf.mxu1 }
 0x12c   : > { %v5501_v14 = vpop.f32.mrf.mxu0  ;;  %v754_v8 = vadd.f32 %v6542_v51, %v6540_v62  ;;  %v1158_v33 = vadd.f32 %v6577_v11, %v942_v24  ;;  %v943_v38 = vadd.f32 %v6560_v12, %v733_v45 }
 0x12d   : > { %1461 = vst.msk [vmem:[#allocation2 + $0x8] sm:$0xf] %vm1458_vm5, %v5118_v60  ;;  %v5116_v36 = vpack.c.bf16 %v1378_v7, %v1378_v7  ;;  %v1381_v52 = vmax.f32 %v1365_v10, 0.0  ;;  %v1363_v53 = vadd.f32 %v6575_v39, %v1341_v9  ;;  %v1346_v23 = vadd.f32 %v5501_v14, %v1156_v47  ;;  %v7625_v14 = vld [vmem:[#allocation11_spill] sm:$0xff] }
 0x12e   : > { %v1293_v42 = vpop.f32.mrf.mxu0  ;;  %v746_v47 = vadd.f32 %v6546_v1, %v6544_v63  ;;  %v948_v6 = vadd.f32 %v6562_v22, %v754_v8  ;;  %v757_v7 = vadd.f32 %v6550_v5, %v6548_v4  ;;  %v1159_v10 = vadd.f32 %v1122_v29, %v943_v38 }
 0x12f   : > { %1459 = vst.msk [vmem:[#allocation2] sm:$0xf] %vm1458_vm5, %v5116_v36  ;;  %v5119_v54 = vpack.c.bf16 %v1381_v52, %v1381_v52  ;;  %v1379_v55 = vmax.f32 %v1363_v53, 0.0  ;;  %v1368_v17 = vadd.f32 %v6575_v39, %v1346_v23  ;;  %v1344_v32 = vadd.f32 %v1293_v42, %v1154_v13  ;;  %v5486_v13 = vpop.f32.mrf.mxu1 }
 0x130   : > { %v5502_v26 = vpop.f32.mrf.mxu0  ;;  %v946_v9 = vadd.f32 %v6564_v16, %v746_v47  ;;  %v749_v36 = vadd.f32 %v7625_v14, %v7624_v21  ;;  %v1164_v52 = vadd.f32 %v5485_v44, %v948_v6  ;;  %v949_v53 = vadd.f32 %v6566_v31, %v757_v7  ;;  %v5947_v14 = vld [vmem:[%s7607_s3 + $0x80] sm:$0xff]  }
 0x131   : > { %1462 = vst.msk [vmem:[#allocation2 + $0xc] sm:$0xf] %vm1458_vm5, %v5119_v54  ;;  %v5117_v56 = vpack.c.bf16 %v1379_v55, %v1379_v55  ;;  %v1384_v50 = vmax.f32 %v1368_v17, 0.0  ;;  %v1366_v18 = vadd.f32 %v6575_v39, %v1344_v32  ;;  %v1347_v20 = vadd.f32 %v5502_v26, %v1157_v30  ;;  %v1138_v17 = vpop.f32.mrf.mxu1  ;;  %v5943_v26 = vld [vmem:[%s7607_s3 + $0xb0] sm:$0xff]  }
 0x132   : > { %v1296_v57 = vpop.f32.mrf.mxu0  ;;  %v1162_v42 = vadd.f32 %v1135_v61, %v946_v9  ;;  %v947_v54 = vadd.f32 %v6570_v34, %v749_v36  ;;  %v1165_v44 = vadd.f32 %v5486_v13, %v949_v53  ;;  %v5946_v61 = vld [vmem:[%s7607_s3 + $0xa8] sm:$0xff]  }
 0x133   : > { %1460 = vst.msk [vmem:[#allocation2 + $0x4] sm:$0xf] %vm1458_vm5, %v5117_v56  ;;  %v5122_v58 = vpack.c.bf16 %v1384_v50, %v1384_v50  ;;  %v1382_v40 = vmax.f32 %v1366_v18, 0.0  ;;  %v1369_v25 = vadd.f32 %v6575_v39, %v1347_v20  ;;  %v1345_v0 = vadd.f32 %v1296_v57, %v1155_v2 }
 0x134   : > { %v5505_v59 = vpop.f32.mrf.mxu0  ;;  %v1163_v37 = vadd.f32 %v1138_v17, %v947_v54 }
 0x135   : > { %1465 = vst.msk [vmem:[#allocation2 + $0x18] sm:$0xf] %vm1458_vm5, %v5122_v58  ;;  %v5120_v19 = vpack.c.bf16 %v1382_v40, %v1382_v40  ;;  %v1385_v27 = vmax.f32 %v1369_v25, 0.0  ;;  %v1367_v3 = vadd.f32 %v6575_v39, %v1345_v0  ;;  %v1350_v35 = vadd.f32 %v5505_v59, %v1160_v46  ;;  %v7626_v0 = vld [vmem:[#allocation8_spill] sm:$0xff] }
 0x136   : > { %v1309_v62 = vpop.f32.mrf.mxu0  ;;  %v1477_v41 = vld [vmem:[#allocation2] sm:$0xf] }
 0x137   : > { %1463 = vst.msk [vmem:[#allocation2 + $0x10] sm:$0xf] %vm1458_vm5, %v5120_v19  ;;  %v5123_v51 = vpack.c.bf16 %v1385_v27, %v1385_v27  ;;  %v1383_v12 = vmax.f32 %v1367_v3, 0.0  ;;  %v1372_v11 = vadd.f32 %v6575_v39, %v1350_v35  ;;  %v1348_v60 = vadd.f32 %v1309_v62, %v1158_v33  ;;  %v1928_v13 = vld [vmem:[#allocation2] sm:$0xe] }
 0x138   : > { %v5506_v49 = vpop.f32.mrf.mxu0  ;;  %v6626_v5 = vld [vmem:[#allocation2 + $0x8] sm:$0xff]  }
 0x139   : > { %1466 = vst.msk [vmem:[#allocation2 + $0x1c] sm:$0xf] %vm1458_vm5, %v5123_v51  ;;  %v5121_v63 = vpack.c.bf16 %v1383_v12, %v1383_v12  ;;  %v1388_v1 = vmax.f32 %v1372_v11, 0.0  ;;  %v1370_v22 = vadd.f32 %v6575_v39, %v1348_v60  ;;  %v1351_v28 = vadd.f32 %v5506_v49, %v1161_v48  ;;  %v5948_v49 = vld [vmem:[%s7607_s3 + $0xa0] sm:$0xff]  }
 0x13a   : > { %v1312_v23 = vpop.f32.mrf.mxu0  ;;  %v6624_v4 = vld [vmem:[#allocation2 + $0x4] sm:$0xf]  ;;  %v1566_v50 = vshll.u32 %v6626_v5, 16  ;;  %v1570_v12 = vshrl.u32 %v6626_v5, 16 }
 0x13b   : > { %1464 = vst.msk [vmem:[#allocation2 + $0x14] sm:$0xf] %vm1458_vm5, %v5121_v63  ;;  %v5126_v16 = vpack.c.bf16 %v1388_v1, %v1388_v1  ;;  %v1386_v29 = vmax.f32 %v1370_v22, 0.0  ;;  %v1373_v15 = vadd.f32 %v6575_v39, %v1351_v28  ;;  %v1349_v30 = vadd.f32 %v1312_v23, %v1159_v10 }
 0x13c   : > { %v5509_v55 = vpop.f32.mrf.mxu0  ;;  %v4785_v31 = vcombine.low %v1477_v41, %v6624_v4  ;;  %v1568_v3 = vrot.slane %v1566_v50, 1  ;;  %v6675_v28 = vcombine.low %v1928_v13, %v6624_v4 }
 0x13d   : > { %1469 = vst.msk [vmem:[#allocation2 + $0x28] sm:$0xf] %vm1458_vm5, %v5126_v16  ;;  %v5124_v32 = vpack.c.bf16 %v1386_v29, %v1386_v29  ;;  %v1389_v43 = vmax.f32 %v1373_v15, 0.0  ;;  %v1371_v2 = vadd.f32 %v6575_v39, %v1349_v30  ;;  %v1354_v24 = vadd.f32 %v5509_v55, %v1164_v52  ;;  %v5954_v29 = vld [vmem:[%s7607_s3 + $0x98] sm:$0xff]   ;;  %v7627_v15 = vld [vmem:[#allocation9_spill] sm:$0xff] }
 0x13e   : > { %5551 = vmatprep.mubr.msk.bf16.mxu0 %vm1657_vm6, %v4785_v31  ;;  %v1325_v56 = vpop.f32.mrf.mxu0  ;;  %v1561_v34 = vshll.u32 %v4785_v31, 16  ;;  %v1559_v58 = vshrl.u32 %v4785_v31, 16  ;;  %v1572_v63 = vor.u32 %v1570_v12, %v1568_v3  ;;  %v2149_v54 = vshrl.u32 %v6675_v28, 16 }
 0x13f   : > { %1467 = vst.msk [vmem:[#allocation2 + $0x20] sm:$0xf] %vm1458_vm5, %v5124_v32  ;;  %v5127_v18 = vpack.c.bf16 %v1389_v43, %v1389_v43  ;;  %v1387_v20 = vmax.f32 %v1371_v2, 0.0  ;;  %v1376_v45 = vadd.f32 %v6575_v39, %v1354_v24  ;;  %v1352_v46 = vadd.f32 %v1325_v56, %v1162_v42  ;;  %5552 = vmatmul.mubr.msk.bf16.vlgmr.msra.gmra.mxu0 %vm1657_vm6, %v6626_v5  ;;  %v5950_v42 = vld [vmem:[%s7607_s3 + $0x78] sm:$0xff]   ;;  %v2360_v43 = vld [vmem:[#allocation2] sm:$0xc] }
 0x140   : > { %v5510_v57 = vpop.f32.mrf.mxu0  ;;  %v1563_v40 = vrot.slane %v1561_v34, 1  ;;  %v6643_v25 = vld [vmem:[#allocation2 + $0x18] sm:$0xff]   ;;  %5596 = vmatpush3.bf16.msra.mxu0 %v7626_v0  ;;  %v2152_v55 = vshll.u32 %v6675_v28, 16  ;;  %v5956_v2 = vld [vmem:[%s7607_s3 + $0x90] sm:$0xff]   ;;  %v4888_v24 = vcombine.low %v2360_v43, %v6624_v4  ;;  %v2151_v34 = vrot.slane %v2149_v54, 1 }
 0x141   : > { %1470 = vst.msk [vmem:[#allocation2 + $0x2c] sm:$0xf] %vm1458_vm5, %v5127_v18  ;;  %v5125_v8 = vpack.c.bf16 %v1387_v20, %v1387_v20  ;;  %v1392_v33 = vmax.f32 %v1376_v45, 0.0  ;;  %v1374_v38 = vadd.f32 %v6575_v39, %v1352_v46  ;;  %v1355_v59 = vadd.f32 %v5510_v57, %v1165_v44  ;;  %5597 = vmatprep.subr.bf16.mxu0 %v5943_v26  ;;  %v5955_v20 = vld [vmem:[%s7607_s3 + $0x70] sm:$0xff]  }
 0x142   : > { %v1328_v19 = vpop.f32.mrf.mxu0  ;;  %v1564_v27 = vor.u32 %v1563_v40, %v1559_v58  ;;  %v6653_v35 = vld [vmem:[#allocation2 + $0x10] sm:$0xff]   ;;  %v1582_v60 = vshll.u32 %v6643_v25, 16  ;;  %v1586_v31 = vshrl.u32 %v6643_v25, 16  ;;  %v2154_v18 = vrot.slane %v2152_v55, 2 }
 0x143   : > { %1468 = vst.msk [vmem:[#allocation2 + $0x24] sm:$0xf] %vm1458_vm5, %v5125_v8  ;;  %v5130_v47 = vpack.c.bf16 %v1392_v33, %v1392_v33  ;;  %v1390_v48 = vmax.f32 %v1374_v38, 0.0  ;;  %v1377_v6 = vadd.f32 %v6575_v39, %v1355_v59  ;;  %v1353_v62 = vadd.f32 %v1328_v19, %v1163_v37  ;;  %5555 = vmatprep.mubr.msk.bf16.mxu0 %vm1657_vm6, %v6653_v35 }
 0x144   : > { %v1569_v51 = vsel %vm409_vm1, %v1564_v27, %v1568_v3  ;;  %v1574_v11 = vshll.u32 %v6653_v35, 16  ;;  %5598 = vmatpush3.bf16.msra.mxu0 %v5943_v26  ;;  %v1578_v22 = vshrl.u32 %v6653_v35, 16  ;;  %v1584_v53 = vrot.slane %v1582_v60, 1 }
 0x145   : > { %1473 = vst.msk [vmem:[#allocation2 + $0x38] sm:$0xf] %vm1458_vm5, %v5130_v47  ;;  %v5128_v7 = vpack.c.bf16 %v1390_v48, %v1390_v48  ;;  %v1393_v10 = vmax.f32 %v1377_v6, 0.0  ;;  %v1375_v9 = vadd.f32 %v6575_v39, %v1353_v62  ;;  %5523 = vmatprep.mubr.msk.bf16.mxu1 %vm1657_vm6, %v1569_v51  ;;  %5599 = vmatprep.subr.bf16.mxu0 %v5946_v61  ;;  %v2156_v40 = vrot.slane %v1570_v12, 1 }
 0x146   : > { %v1576_v1 = vrot.slane %v1574_v11, 1  ;;  %v1588_v26 = vor.u32 %v1586_v31, %v1584_v53  ;;  %v2157_v0 = vrot.slane %v1566_v50, 2  ;;  %v2377_v8 = vrot.slane %v4888_v24, 2 }
 0x147   : > { %1471 = vst.msk [vmem:[#allocation2 + $0x30] sm:$0xf] %vm1458_vm5, %v5128_v7  ;;  %v5131_v39 = vpack.c.bf16 %v1393_v10, %v1393_v10  ;;  %v1391_v21 = vmax.f32 %v1375_v9, 0.0  ;;  %5556 = vmatmul.mubr.msk.bf16.gmra.mxu0 %vm1657_vm6, %v6643_v25  ;;  %v2155_v59 = vor.u32 %v2154_v18, %v2151_v34  ;;  %v2378_v19 = vrot.slane %v6626_v5, 2 }
 0x148   : > { %v1577_v36 = vsel %vm409_vm1, %v1572_v63, %v1576_v1  ;;  %v1580_v52 = vor.u32 %v1578_v22, %v1576_v1  ;;  %v6688_v23 = vld [vmem:[#allocation2 + $0x28] sm:$0xff]   ;;  %5600 = vmatpush3.bf16.msra.mxu0 %v5946_v61  ;;  %v2380_v47 = vrot.slane %v6653_v35, 2  ;;  %v2160_v48 = vrot.slane %v1578_v22, 1  ;;  %v5958_v1 = vld [vmem:[%s7607_s3 + $0x60] sm:$0xff]  }
 0x149   : > { %1475 = vst.msk [vmem:[#allocation2 + $0x3c] sm:$0x3] %vm1474_vm7, %v5131_v39  ;;  %v5129_v16 = vpack.c.bf16 %v1391_v21, %v1391_v21  ;;  %5524 = vmatmul.mubr.msk.bf16.vlgmr.msra.gmra.mxu1 %vm1657_vm6, %v1577_v36  ;;  %5601 = vmatprep.subr.bf16.mxu0 %v5948_v49  ;;  %v1598_v32 = vshll.u32 %v6688_v23, 16  ;;  %v5957_v61 = vld [vmem:[%s7607_s3 + $0x68] sm:$0xff]   ;;  %v1602_v50 = vshrl.u32 %v6688_v23, 16  ;;  %v2158_v62 = vor.u32 %v2157_v0, %v2156_v40 }
 0x14a   : > { %5568 = vmatpush3.bf16.msra.mxu1 %v7627_v15  ;;  %v1585_v30 = vsel %vm409_vm1, %v1580_v52, %v1584_v53  ;;  %v6697_v41 = vld [vmem:[#allocation2 + $0x20] sm:$0xff]   ;;  %v6757_v51 = vsel %vm1179_vm4, %v2377_v8, %v2378_v19  ;;  %v2161_v9 = vrot.slane %v1574_v11, 2  ;;  %v2164_v13 = vrot.slane %v1586_v31, 1  ;;  %v5959_v15 = vld [vmem:[%s7607_s3 + $0xe8] sm:$0xff]  }
 0x14b   : > { %1472 = vst.msk [vmem:[#allocation2 + $0x34] sm:$0xf] %vm1458_vm5, %v5129_v16  ;;  %5527 = vmatprep.mubr.msk.bf16.mxu1 %vm1657_vm6, %v1585_v30  ;;  %5569 = vmatprep.subr.bf16.mxu1 %v5947_v14  ;;  %v1590_v17 = vshll.u32 %v6697_v41, 16  ;;  %v1594_v56 = vshrl.u32 %v6697_v41, 16  ;;  %v1600_v46 = vrot.slane %v1598_v32, 1  ;;  %v2165_v63 = vrot.slane %v1582_v60, 2 }
 0x14c   : > { %5559 = vmatprep.mubr.msk.bf16.mxu0 %vm1657_vm6, %v6697_v41  ;;  %5602 = vmatpush3.bf16.msra.mxu0 %v5948_v49  ;;  %v6728_v37 = vld [vmem:[#allocation2 + $0x38] sm:$0xf]  ;;  %v2159_v49 = vsel %vm963_vm3, %v2155_v59, %v2158_v62  ;;  %v2382_v22 = vrot.slane %v6643_v25, 2  ;;  %v2384_v36 = vrot.slane %v6697_v41, 2  ;;  %v2386_v52 = vrot.slane %v6688_v23, 2 }
 0x14d   : > { %5603 = vmatprep.subr.bf16.mxu0 %v5954_v29  ;;  %v1592_v44 = vrot.slane %v1590_v17, 1  ;;  %v4807_v6 = vcombine.low %v6728_v37, %v6728_v37  ;;  %v1604_v12 = vor.u32 %v1602_v50, %v1600_v46  ;;  %v2166_v31 = vor.u32 %v2165_v63, %v2164_v13 }
 0x14e   : > { %5570 = vmatpush3.bf16.msra.mxu1 %v5947_v14  ;;  %v6775_v14 = vsel %vm1179_vm4, %v2378_v19, %v2380_v47  ;;  %v6779_v60 = vsel %vm1179_vm4, %v2380_v47, %v2382_v22  ;;  %v6790_v30 = vsel %vm1179_vm4, %v2382_v22, %v2384_v36  ;;  %v5960_v19 = vld [vmem:[%s7607_s3 + $0xe0] sm:$0xff]   ;;  %v1952_v47 = vrot.slane %v6697_v41, 1  ;;  %v5966_v22 = vld [vmem:[%s7609_s5 + $0x18] sm:$0xff]  }
 0x14f   : > { %5560 = vmatmul.mubr.msk.bf16.gmra.mxu0 %vm1657_vm6, %v6688_v23  ;;  %5571 = vmatprep.subr.bf16.mxu1 %v5950_v42  ;;  %v1593_v45 = vsel %vm409_vm1, %v1588_v26, %v1592_v44  ;;  %v1596_v4 = vor.u32 %v1594_v56, %v1592_v44  ;;  %v2168_v26 = vrot.slane %v1594_v56, 1  ;;  %v2169_v44 = vrot.slane %v1590_v17, 2 }
 0x150   : > { %v1504_v57 = vld [vmem:[#allocation2 + $0x3c] sm:$0x1]  ;;  %5604 = vmatpush3.bf16.msra.mxu0 %v5954_v29  ;;  %v2162_v29 = vor.u32 %v2161_v9, %v2160_v48  ;;  %v2172_v56 = vrot.slane %v1602_v50, 1  ;;  %v2173_v17 = vrot.slane %v1598_v32, 2  ;;  %vm4479_vm7 = vsmask.f32 2304 }
 0x151   : > { %5528 = vmatmul.mubr.msk.bf16.gmra.mxu1 %vm1657_vm6, %v1593_v45  ;;  %v6732_v58 = vcombine.low %v6728_v37, %v1504_v57  ;;  %5605 = vmatprep.subr.bf16.mxu0 %v5956_v2  ;;  %v1601_v33 = vsel %vm409_vm1, %v1596_v4, %v1600_v46  ;;  %v2131_v55 = vld [vmem:[#allocation2 + $0x3c] sm:$0x3]  ;;  %v1946_v45 = vrot.slane %v6626_v5, 1  ;;  %v2170_v4 = vor.u32 %v2169_v44, %v2168_v26 }
 0x152   : > { %v6739_v38 = vld [vmem:[#allocation2 + $0x30] sm:$0xff]   ;;  %5572 = vmatpush3.bf16.msra.mxu1 %v5950_v42  ;;  %5531 = vmatprep.mubr.msk.bf16.mxu1 %vm1657_vm6, %v1601_v33  ;;  %v6793_v42 = vsel %vm1179_vm4, %v2384_v36, %v2386_v52  ;;  %v2163_v24 = vsel %vm963_vm3, %v2158_v62, %v2162_v29  ;;  %v6808_v34 = vcombine.low %v6728_v37, %v2131_v55  ;;  %v1948_v5 = vrot.slane %v6653_v35, 1  ;;  %v6911_v36 = vld [vmem:[%s7609_s5 + $0x58] sm:$0xff]  }
 0x153   : > { %5573 = vmatprep.subr.bf16.mxu1 %v5955_v20  ;;  %5563 = vmatprep.mubr.msk.bf16.mxu0 %vm1657_vm6, %v6739_v38  ;;  %v1606_v27 = vshll.u32 %v6739_v38, 16  ;;  %v1614_v3 = vshll.u32 %v6732_v58, 16  ;;  %v1610_v10 = vshrl.u32 %v6739_v38, 16  ;;  %v2388_v53 = vrot.slane %v6739_v38, 2  ;;  %7628 = vst [vmem:[#allocation10_spill] sm:$0xff] %v6911_v36 }
 0x154   : > { %5606 = vmatpush3.bf16.msra.mxu0 %v5956_v2  ;;  %v1618_v43 = vshrl.u32 %v6732_v58, 16  ;;  %v1945_v2 = vrot.slane %v6675_v28, 1  ;;  %v2167_v18 = vsel %vm963_vm3, %v2162_v29, %v2166_v31  ;;  %v2181_v46 = vshrl.u32 %v6808_v34, 16 }
 0x155   : > { %v1608_v7 = vrot.slane %v1606_v27, 1  ;;  %v1616_v21 = vrot.slane %v1614_v3, 1  ;;  %v6798_v54 = vsel %vm1179_vm4, %v2386_v52, %v2388_v53  ;;  %v2184_v37 = vshll.u32 %v6808_v34, 16  ;;  %v6916_v52 = vld [vmem:[%s7609_s5 + $0x78] sm:$0xff]  }
 0x156   : > { %5574 = vmatpush3.bf16.msra.mxu1 %v5955_v20  ;;  %v1947_v28 = vsel %vm773_vm2, %v1945_v2, %v1946_v45  ;;  %v2174_v57 = vor.u32 %v2173_v17, %v2172_v56  ;;  %v2171_v40 = vsel %vm963_vm3, %v2166_v31, %v2170_v4  ;;  %v2176_v0 = vrot.slane %v1610_v10, 1  ;;  %7629 = vst [vmem:[#allocation11_spill] sm:$0xff] %v6916_v52 }
 0x157   : > { %5564 = vmatmul.mubr.msk.bf16.gmra.mxu0 %vm1657_vm6, %v4807_v6  ;;  %5575 = vmatprep.subr.bf16.mxu1 %v5957_v61  ;;  %v1609_v39 = vsel %vm409_vm1, %v1604_v12, %v1608_v7  ;;  %v1612_v11 = vor.u32 %v1610_v10, %v1608_v7  ;;  %v1620_v20 = vor.u32 %v1618_v43, %v1616_v21  ;;  %v2177_v8 = vrot.slane %v1606_v27, 2  ;;  %v5962_v12 = vld [vmem:[%s7607_s3 + $0xd0] sm:$0xff]  }
 0x158   : > { %5607 = vmatprep.mubr.msk.bf16.mxu0 %vm1657_vm6, %v2159_v49  ;;  %v2175_v32 = vsel %vm963_vm3, %v2170_v4, %v2174_v57  ;;  %v1950_v33 = vrot.slane %v6643_v25, 1  ;;  %v2183_v59 = vrot.slane %v2181_v46, 1  ;;  %v1949_v35 = vsel %vm773_vm2, %v1946_v45, %v1948_v5  ;;  %v5961_v25 = vld [vmem:[%s7607_s3 + $0xd8] sm:$0xff]   ;;  %v5964_v49 = vld [vmem:[%s7607_s3 + $0xc0] sm:$0xff]  }
 0x159   : > { %5532 = vmatmul.mubr.msk.bf16.gmra.mxu1 %vm1657_vm6, %v1609_v39  ;;  %v1617_v16 = vsel %vm409_vm1, %v1612_v11, %v1616_v21  ;;  %v2178_v27 = vor.u32 %v2177_v8, %v2176_v0  ;;  %v1954_v62 = vrot.slane %v6688_v23, 1  ;;  %v5963_v23 = vld [vmem:[%s7607_s3 + $0xc8] sm:$0xff]   ;;  %v1956_v10 = vrot.slane %v6739_v38, 1  ;;  %v5967_v38 = vld [vmem:[%s7609_s5 + $0x30] sm:$0xff]  }
 0x15a   : > { %5576 = vmatpush3.bf16.msra.mxu1 %v5957_v61  ;;  %5535 = vmatprep.mubr.msk.bf16.mxu1 %vm1657_vm6, %v1617_v16  ;;  %v2186_v61 = vrot.slane %v2184_v37, 2  ;;  %v1951_v50 = vsel %vm773_vm2, %v1948_v5, %v1950_v33  ;;  %v1953_v7 = vsel %vm773_vm2, %v1950_v33, %v1952_v47  ;;  %v1958_v9 = vrot.slane %v6732_v58, 1  ;;  %v5968_v39 = vld [vmem:[%s7609_s5 + $0x10] sm:$0xff]   ;;  %v5969_v11 = vld [vmem:[%s7609_s5 + $0x8] sm:$0xff]  }
 0x15b   : > { %5577 = vmatprep.subr.bf16.mxu1 %v5958_v1  ;;  %v2179_v48 = vsel %vm963_vm3, %v2174_v57, %v2178_v27  ;;  %v1955_v41 = vsel %vm773_vm2, %v1952_v47, %v1954_v62  ;;  %v1957_v13 = vsel %vm773_vm2, %v1954_v62, %v1956_v10  ;;  %v2390_v58 = vrot.slane %v6808_v34, 2  ;;  %v5970_v21 = vld [vmem:[%s7609_s5 + $0x28] sm:$0xff]  }
 0x15c   : > { %v2187_v3 = vor.u32 %v2186_v61, %v2183_v59  ;;  %v1959_v63 = vsel %vm773_vm2, %v1956_v10, %v1958_v9 }
 0x15e   : > { %5578 = vmatpush3.bf16.msra.mxu1 %v5958_v1  ;;  %v2188_v6 = vsel %vm963_vm3, %v2178_v27, %v2187_v3  ;;  %v5965_v1 = vld [vmem:[%s7609_s5 + $0x38] sm:$0xff]  }
 0x15f   : > { %5608 = vmatmul.mubr.msk.bf16.vlgmr.msra.gmra.mxu0 %vm1657_vm6, %v2163_v24  ;;  %5623 = vmatprep.subr.bf16.mxu1 %v5959_v15 }
 0x160   : > { %5611 = vmatprep.mubr.msk.bf16.mxu0 %vm1657_vm6, %v2167_v18  ;;  %5651 = vmatprep.subr.bf16.mxu0 %v5965_v1 }
 0x161   : > { %5536 = vmatmul.mubr.msk.bf16.gmra.mxu1 %vm1657_vm6, %v1620_v20  ;;  %5652 = vmatpush3.bf16.msra.mxu0 %v5965_v1 }
 0x162   : > { %5579 = vmatprep.mubr.msk.bf16.mxu1 %vm1657_vm6, %v1947_v28  ;;  %5653 = vmatprep.subr.bf16.mxu0 %v5967_v38 }
 0x165   : > { %5654 = vmatpush3.bf16.msra.mxu0 %v5967_v38 }
 0x166   : > { %5655 = vmatprep.subr.bf16.mxu0 %v5970_v21 }
 0x167   : > { %5612 = vmatmul.mubr.msk.bf16.gmra.mxu0 %vm1657_vm6, %v2171_v40 }
 0x168   : > { %5615 = vmatprep.mubr.msk.bf16.mxu0 %vm1657_vm6, %v2175_v32 }
 0x169   : > { %5580 = vmatmul.mubr.msk.bf16.vlgmr.msra.gmra.mxu1 %vm1657_vm6, %v1949_v35  ;;  %5656 = vmatpush3.bf16.msra.mxu0 %v5970_v21 }
 0x16a   : > { %5583 = vmatprep.mubr.msk.bf16.mxu1 %vm1657_vm6, %v1951_v50  ;;  %5624 = vmatpush3.bf16.msra.mxu1 %v5959_v15 }
 0x16b   : > { %5625 = vmatprep.subr.bf16.mxu1 %v5960_v19 }
 0x16e   : > { %5626 = vmatpush3.bf16.msra.mxu1 %v5960_v19 }
 0x16f   : > { %5616 = vmatmul.mubr.msk.bf16.gmra.mxu0 %vm1657_vm6, %v2179_v48  ;;  %5627 = vmatprep.subr.bf16.mxu1 %v5961_v25 }
 0x170   : > { %5619 = vmatprep.mubr.msk.bf16.mxu0 %vm1657_vm6, %v2188_v6 }
 0x171   : > { %5584 = vmatmul.mubr.msk.bf16.gmra.mxu1 %vm1657_vm6, %v1953_v7 }
 0x172   : > { %5587 = vmatprep.mubr.msk.bf16.mxu1 %vm1657_vm6, %v1955_v41  ;;  %5628 = vmatpush3.bf16.msra.mxu1 %v5961_v25 }
 0x173   : > { %5629 = vmatprep.subr.bf16.mxu1 %v5962_v12 }
 0x176   : > { %5630 = vmatpush3.bf16.msra.mxu1 %v5962_v12 }
 0x177   : > { %5620 = vmatmul.mubr.msk.bf16.gmra.mxu0 %vm1657_vm6, %v2187_v3  ;;  %5631 = vmatprep.subr.bf16.mxu1 %v5963_v23 }
 0x179   : > { %5588 = vmatmul.mubr.msk.bf16.gmra.mxu1 %vm1657_vm6, %v1957_v13 }
 0x17a   : > { %5591 = vmatprep.mubr.msk.bf16.mxu1 %vm1657_vm6, %v1959_v63  ;;  %5632 = vmatpush3.bf16.msra.mxu1 %v5963_v23 }
 0x17b   : > { %5633 = vmatprep.subr.bf16.mxu1 %v5964_v49 }
 0x17e   : > { %5634 = vmatpush3.bf16.msra.mxu1 %v5964_v49 }
 0x17f   : > { %5675 = vmatprep.subr.bf16.mxu1 %v5966_v22 }
 0x181   : > { %5592 = vmatmul.mubr.msk.bf16.gmra.mxu1 %vm1657_vm6, %v1958_v9 }
 0x182   : > { %5635 = vmatprep.mubr.msk.bf16.mxu1 %vm1657_vm6, %v6757_v51  ;;  %v2391_v51 = vsel %vm1179_vm4, %v2388_v53, %v2390_v58 }
 0x189   : > { %5636 = vmatmul.mubr.msk.bf16.vlgmr.msra.gmra.mxu1 %vm1657_vm6, %v6775_v14  ;;  %v5971_v14 = vld [vmem:[%s7609_s5] sm:$0xff]  }
 0x18a   : > { %5639 = vmatprep.mubr.msk.bf16.mxu1 %vm1657_vm6, %v6779_v60  ;;  %5676 = vmatpush3.bf16.msra.mxu1 %v5966_v22  ;;  %v5974_v60 = vld [vmem:[%s7609_s5 + $0x20] sm:$0xff]  }
 0x18b   : > { %5677 = vmatprep.subr.bf16.mxu1 %v5968_v39  ;;  %5657 = vmatprep.subr.bf16.mxu0 %v5974_v60 }
 0x18c   : > { %5658 = vmatpush3.bf16.msra.mxu0 %v5974_v60 }
 0x18d   : > { %5699 = vmatprep.subr.bf16.mxu0 %v6911_v36 }
 0x18e   : > { %5678 = vmatpush3.bf16.msra.mxu1 %v5968_v39 }
 0x18f   : > { %5679 = vmatprep.subr.bf16.mxu1 %v5969_v11 }
 0x191   : > { %5640 = vmatmul.mubr.msk.bf16.gmra.mxu1 %vm1657_vm6, %v6790_v30 }
 0x192   : > { %5643 = vmatprep.mubr.msk.bf16.mxu1 %vm1657_vm6, %v6793_v42  ;;  %5680 = vmatpush3.bf16.msra.mxu1 %v5969_v11 }
 0x193   : > { %5681 = vmatprep.subr.bf16.mxu1 %v5971_v14 }
 0x196   : > { %5682 = vmatpush3.bf16.msra.mxu1 %v5971_v14 }
 0x197   : > { %5723 = vmatprep.subr.bf16.mxu1 %v6916_v52 }
 0x199   : > { %5644 = vmatmul.mubr.msk.bf16.gmra.mxu1 %vm1657_vm6, %v6798_v54 }
 0x19a   : > { %5647 = vmatprep.mubr.msk.bf16.mxu1 %vm1657_vm6, %v2391_v51 }
 0x1a1   : > { %5648 = vmatmul.mubr.msk.bf16.gmra.mxu1 %vm1657_vm6, %v2390_v58  ;;  %vm4478_vm6 = vcmask 1042432  }
 0x1ff   : > { %v5553_v53 = vpop.f32.mrf.mxu0 }
 0x201   : > { %v1866_v16 = vpop.f32.mrf.mxu0 }
 0x203   : > { %v6920_v29 = vpop.f32.mrf.mxu0 }
 0x205   : > { %v6922_v15 = vpop.f32.mrf.mxu0 }
 0x207   : > { %v6924_v30 = vpop.f32.mrf.mxu0 }
 0x209   : > { %v6926_v42 = vpop.f32.mrf.mxu0  ;;  %v5525_v54 = vpop.f32.mrf.mxu1 }
 0x20a   : > { %v1875_v14 = vadd.f32 %v5553_v53, %v5525_v54  ;;  %v6998_v53 = vld [vmem:[%s7608_s4] ss:$0 sm:$0xff] }
 0x20b   : > { %v6928_v55 = vpop.f32.mrf.mxu0  ;;  %v1716_v31 = vpop.f32.mrf.mxu1 }
 0x20d   : > { %v6930_v43 = vpop.f32.mrf.mxu0  ;;  %v5526_v2 = vpop.f32.mrf.mxu1 }
 0x20e   : > { %v1878_v52 = vadd.f32 %v6920_v29, %v5526_v2 }
 0x20f   : > { %v6932_v24 = vpop.f32.mrf.mxu0  ;;  %v1719_v26 = vpop.f32.mrf.mxu1 }
 0x211   : > { %v6934_v44 = vpop.f32.mrf.mxu0  ;;  %v5529_v34 = vpop.f32.mrf.mxu1 }
 0x213   : > { %v6936_v18 = vpop.f32.mrf.mxu0  ;;  %v1732_v20 = vpop.f32.mrf.mxu1 }
 0x214   : > { %v1883_v29 = vadd.f32 %v6926_v42, %v1732_v20 }
 0x215   : > { %v6938_v45 = vpop.f32.mrf.mxu0  ;;  %v6940_v28 = vpop.f32.mrf.mxu1 }
 0x217   : > { %v6942_v56 = vpop.f32.mrf.mxu0  ;;  %v6944_v17 = vpop.f32.mrf.mxu1 }
 0x219   : > { %v6946_v4 = vpop.f32.mrf.mxu0  ;;  %v6948_v46 = vpop.f32.mrf.mxu1 }
 0x21b   : > { %v5566_v37 = vpop.f32.mrf.mxu0  ;;  %v6950_v5 = vpop.f32.mrf.mxu1 }
 0x21c   : > { %v1867_v37 = vadd.f32 %v1866_v16, %v1716_v31 }
 0x21d   : > { %v6952_v57 = vpop.f32.mrf.mxu0  ;;  %v6954_v40 = vpop.f32.mrf.mxu1 }
 0x21e   : > { %7630 = vst [vmem:[#allocation8_spill] sm:$0xff] %v6952_v57 }
 0x21f   : > { %v5609_v0 = vpop.f32.mrf.mxu0  ;;  %v6956_v8 = vpop.f32.mrf.mxu1 }
 0x221   : > { %v2283_v32 = vpop.f32.mrf.mxu0  ;;  %v6958_v33 = vpop.f32.mrf.mxu1 }
 0x223   : > { %v5610_v59 = vpop.f32.mrf.mxu0  ;;  %v6960_v61 = vpop.f32.mrf.mxu1 }
 0x225   : > { %v2286_v19 = vpop.f32.mrf.mxu0  ;;  %v5538_v35 = vpop.f32.mrf.mxu1 }
 0x227   : > { %v5613_v50 = vpop.f32.mrf.mxu0  ;;  %v6962_v27 = vpop.f32.mrf.mxu1 }
 0x228   : > { %7631 = vst [vmem:[#allocation9_spill] sm:$0xff] %v6962_v27 }
 0x229   : > { %v6964_v3 = vpop.f32.mrf.mxu0  ;;  %v5581_v25 = vpop.f32.mrf.mxu1 }
 0x22a   : > { %v2118_v35 = vadd.f32 %v5581_v25, %v1875_v14 }
 0x22b   : > { %v6966_v47 = vpop.f32.mrf.mxu0  ;;  %v2054_v48 = vpop.f32.mrf.mxu1 }
 0x22c   : > { %v2347_v27 = vadd.f32 %v5609_v0, %v2118_v35 }
 0x22d   : > { %v6968_v6 = vpop.f32.mrf.mxu0  ;;  %v5582_v62 = vpop.f32.mrf.mxu1 }
 0x22f   : > { %v6970_v12 = vpop.f32.mrf.mxu0  ;;  %v2057_v7 = vpop.f32.mrf.mxu1 }
 0x231   : > { %v6972_v41 = vpop.f32.mrf.mxu0  ;;  %v5585_v23 = vpop.f32.mrf.mxu1 }
 0x233   : > { %v6974_v10 = vpop.f32.mrf.mxu0  ;;  %v2070_v9 = vpop.f32.mrf.mxu1 }
 0x235   : > { %v6976_v49 = vpop.f32.mrf.mxu0  ;;  %v5586_v13 = vpop.f32.mrf.mxu1 }
 0x236   : > { %7632 = vst [vmem:[#allocation12_spill] sm:$0xff] %v6976_v49  ;;  %v1891_v49 = vadd.f32 %v6924_v30, %v5529_v34  ;;  %v1894_v30 = vadd.f32 %v6928_v55, %v6940_v28  ;;  %v1907_v55 = vadd.f32 %v6932_v24, %v6948_v46 }
 0x237   : > { %v6978_v63 = vpop.f32.mrf.mxu0  ;;  %v2073_v58 = vpop.f32.mrf.mxu1 }
 0x238   : > { %7633 = vst [vmem:[#allocation13_spill] sm:$0xff] %v6978_v63  ;;  %v2116_v63 = vadd.f32 %v2054_v48, %v1867_v37  ;;  %v2122_v2 = vadd.f32 %v5585_v23, %v1891_v49  ;;  %v2123_v42 = vadd.f32 %v5586_v13, %v1894_v30 }
 0x239   : > { %v6980_v51 = vpop.f32.mrf.mxu0  ;;  %v5589_v1 = vpop.f32.mrf.mxu1 }
 0x23a   : > { %7634 = vst [vmem:[#allocation14_spill] sm:$0xff] %v6980_v51  ;;  %v2119_v51 = vadd.f32 %v5582_v62, %v1878_v52  ;;  %v2126_v37 = vadd.f32 %v5589_v1, %v1907_v55 }
 0x23b   : > { %v5622_v22 = vpop.f32.mrf.mxu0  ;;  %v2086_v38 = vpop.f32.mrf.mxu1 }
 0x23c   : > { %v1870_v22 = vadd.f32 %v6922_v15, %v1719_v26  ;;  %v2348_v52 = vadd.f32 %v5610_v59, %v2119_v51  ;;  %v2120_v26 = vadd.f32 %v2070_v9, %v1883_v29  ;;  %v1902_v29 = vadd.f32 %v6938_v45, %v6956_v8 }
 0x23d   : > { %v6982_v39 = vpop.f32.mrf.mxu1 }
 0x23e   : > { %v2117_v16 = vadd.f32 %v2057_v7, %v1870_v22  ;;  %v2349_v51 = vadd.f32 %v6964_v3, %v2120_v26  ;;  %v2352_v22 = vadd.f32 %v6966_v47, %v2123_v42  ;;  %v7635_v42 = vld [vmem:[#allocation12_spill] sm:$0xff] }
 0x23f   : > { %v6984_v11 = vpop.f32.mrf.mxu1 }
 0x240   : > { %v2346_v7 = vadd.f32 %v2286_v19, %v2117_v16 }
 0x241   : > { %v6986_v21 = vpop.f32.mrf.mxu1 }
 0x243   : > { %v6988_v60 = vpop.f32.mrf.mxu1 }
 0x245   : > { %v5594_v36 = vpop.f32.mrf.mxu1 }
 0x246   : > { %v2345_v36 = vadd.f32 %v2283_v32, %v2116_v63  ;;  %v1886_v32 = vadd.f32 %v6930_v43, %v6944_v17 }
 0x247   : > { %v6991_v57 = vpop.f32.mrf.mxu1 }
 0x248   : > { %v2121_v28 = vadd.f32 %v2073_v58, %v1886_v32 }
 0x249   : > { %v5637_v54 = vpop.f32.mrf.mxu1 }
 0x24a   : > { %v2550_v31 = vadd.f32 %v5637_v54, %v2347_v27  ;;  %v2351_v27 = vadd.f32 %v5613_v50, %v2122_v2  ;;  %v1899_v50 = vadd.f32 %v6934_v44, %v6950_v5  ;;  %v1910_v54 = vadd.f32 %v6936_v18, %v6954_v40 }
 0x24b   : > { %v2486_v25 = vpop.f32.mrf.mxu1 }
 0x24c   : > { %v2571_v48 = vadd.f32 %v6998_v53, %v2550_v31  ;;  %v2548_v15 = vadd.f32 %v2486_v25, %v2345_v36  ;;  %v2124_v16 = vadd.f32 %v2086_v38, %v1899_v50  ;;  %v2350_v36 = vadd.f32 %v6968_v6, %v2121_v28 }
 0x24d   : > { %v5638_v34 = vpop.f32.mrf.mxu1  ;;  %v2127_v2 = vadd.f32 %v6982_v39, %v1910_v54  ;;  %v5982_v54 = vld [vmem:[%s7609_s5 + $0x70] sm:$0xff]  }
 0x24e   : > { %v2586_v0 = vmax.f32 %v2571_v48, 0.0  ;;  %v2569_v62 = vadd.f32 %v6998_v53, %v2548_v15  ;;  %v2551_v14 = vadd.f32 %v5638_v34, %v2348_v52  ;;  %v2355_v48 = vadd.f32 %v6970_v12, %v2126_v37 }
 0x24f   : > { %v2489_v20 = vpop.f32.mrf.mxu1  ;;  %v1923_v15 = vadd.f32 %v6942_v56, %v6958_v33  ;;  %v2125_v52 = vadd.f32 %v6984_v11, %v1902_v29  ;;  %v2353_v45 = vadd.f32 %v6972_v41, %v2124_v16  ;;  %v1915_v34 = vadd.f32 %v6946_v4, %v6960_v61 }
 0x250   : > { %v5134_v23 = vpack.c.bf16 %v2586_v0, %v2586_v0  ;;  %v2584_v49 = vmax.f32 %v2569_v62, 0.0  ;;  %v2572_v59 = vadd.f32 %v6998_v53, %v2551_v14  ;;  %v2549_v63 = vadd.f32 %v2489_v20, %v2346_v7 }
 0x251   : > { %v5641_v9 = vpop.f32.mrf.mxu1  ;;  %v2130_v0 = vadd.f32 %v6986_v21, %v1923_v15  ;;  %v2356_v56 = vadd.f32 %v6974_v10, %v2127_v2  ;;  %v2128_v7 = vadd.f32 %v6988_v60, %v1915_v34  ;;  %v2354_v20 = vadd.f32 %v7635_v42, %v2125_v52  ;;  %v7636_v10 = vld [vmem:[#allocation9_spill] sm:$0xff]  ;;  %v5985_v52 = vld [vmem:[%s7609_s5 + $0x68] sm:$0xff]  }
 0x252   : > { %2663 = vst.msk [vmem:[#allocation3 + $0x8] sm:$0xf] %vm2660_vm8, %v5134_v23  ;;  %v5132_v19 = vpack.c.bf16 %v2584_v49, %v2584_v49  ;;  %v2587_v43 = vmax.f32 %v2572_v59, 0.0  ;;  %v2570_v17 = vadd.f32 %v6998_v53, %v2549_v63  ;;  %v2554_v13 = vadd.f32 %v5641_v9, %v2351_v27  ;;  %v7637_v23 = vld [vmem:[#allocation8_spill] sm:$0xff]  ;;  %v7638_v63 = vld [vmem:[#allocation13_spill] sm:$0xff] }
 0x253   : > { %v2502_v35 = vpop.f32.mrf.mxu1  ;;  %v1918_v49 = vadd.f32 %v7637_v23, %v7636_v10  ;;  %v2359_v55 = vadd.f32 %v7638_v63, %v2130_v0  ;;  %v7641_v63 = vld [vmem:[#allocation10_spill] sm:$0xff] }
 0x254   : > { %2661 = vst.msk [vmem:[#allocation3] sm:$0xf] %vm2660_vm8, %v5132_v19  ;;  %v5135_v24 = vpack.c.bf16 %v2587_v43, %v2587_v43  ;;  %v2585_v46 = vmax.f32 %v2570_v17, 0.0  ;;  %v2575_v3 = vadd.f32 %v6998_v53, %v2554_v13  ;;  %v2552_v58 = vadd.f32 %v2502_v35, %v2349_v51  ;;  %v7639_v35 = vld [vmem:[#allocation14_spill] sm:$0xff] }
 0x255   : > { %v5642_v31 = vpop.f32.mrf.mxu1  ;;  %v2129_v13 = vadd.f32 %v6991_v57, %v1918_v49 }
 0x256   : > { %2664 = vst.msk [vmem:[#allocation3 + $0xc] sm:$0xf] %vm2660_vm8, %v5135_v24  ;;  %v5133_v44 = vpack.c.bf16 %v2585_v46, %v2585_v46  ;;  %v2590_v5 = vmax.f32 %v2575_v3, 0.0  ;;  %v2573_v47 = vadd.f32 %v6998_v53, %v2552_v58  ;;  %v2555_v1 = vadd.f32 %v5642_v31, %v2352_v22 }
 0x257   : > { %v2505_v25 = vpop.f32.mrf.mxu1  ;;  %v2357_v22 = vadd.f32 %v7639_v35, %v2128_v7 }
 0x258   : > { %2662 = vst.msk [vmem:[#allocation3 + $0x4] sm:$0xf] %vm2660_vm8, %v5133_v44  ;;  %v5138_v18 = vpack.c.bf16 %v2590_v5, %v2590_v5  ;;  %v2588_v40 = vmax.f32 %v2573_v47, 0.0  ;;  %v2576_v6 = vadd.f32 %v6998_v53, %v2555_v1  ;;  %v2553_v38 = vadd.f32 %v2505_v25, %v2350_v36  ;;  %v2334_v1 = vpop.f32.mrf.mxu0 }
 0x259   : > { %v5645_v30 = vpop.f32.mrf.mxu1  ;;  %v2358_v15 = vadd.f32 %v2334_v1, %v2129_v13 }
 0x25a   : > { %2667 = vst.msk [vmem:[#allocation3 + $0x18] sm:$0xf] %vm2660_vm8, %v5138_v18  ;;  %v5136_v8 = vpack.c.bf16 %v2588_v40, %v2588_v40  ;;  %v2591_v39 = vmax.f32 %v2576_v6, 0.0  ;;  %v2574_v12 = vadd.f32 %v6998_v53, %v2553_v38  ;;  %v2558_v26 = vadd.f32 %v5645_v30, %v2355_v48  ;;  %v7640_v18 = vld [vmem:[#allocation11_spill] sm:$0xff] }
 0x25b   : > { %v2518_v62 = vpop.f32.mrf.mxu1  ;;  %v2676_v17 = vld [vmem:[#allocation3] sm:$0xf] }
 0x25c   : > { %2665 = vst.msk [vmem:[#allocation3 + $0x10] sm:$0xf] %vm2660_vm8, %v5136_v8  ;;  %v5139_v33 = vpack.c.bf16 %v2591_v39, %v2591_v39  ;;  %v2589_v11 = vmax.f32 %v2574_v12, 0.0  ;;  %v2579_v41 = vadd.f32 %v6998_v53, %v2558_v26  ;;  %v2556_v14 = vadd.f32 %v2518_v62, %v2353_v45 }
 0x25d   : > { %v5646_v32 = vpop.f32.mrf.mxu1  ;;  %v7050_v9 = vld [vmem:[#allocation3 + $0x8] sm:$0xff]  }
 0x25e   : > { %2668 = vst.msk [vmem:[#allocation3 + $0x1c] sm:$0xf] %vm2660_vm8, %v5139_v33  ;;  %v5137_v4 = vpack.c.bf16 %v2589_v11, %v2589_v11  ;;  %v2594_v61 = vmax.f32 %v2579_v41, 0.0  ;;  %v2577_v21 = vadd.f32 %v6998_v53, %v2556_v14  ;;  %v2559_v27 = vadd.f32 %v5646_v32, %v2356_v56  ;;  %v5987_v14 = vld [vmem:[%s7609_s5 + $0x60] sm:$0xff]  }
 0x25f   : > { %v2521_v59 = vpop.f32.mrf.mxu1  ;;  %v7048_v28 = vld [vmem:[#allocation3 + $0x4] sm:$0xf]  ;;  %v7064_v31 = vshll.u32 %v7050_v9, 16  ;;  %v7084_v62 = vshrl.u32 %v7050_v9, 16 }
 0x260   : > { %2666 = vst.msk [vmem:[#allocation3 + $0x14] sm:$0xf] %vm2660_vm8, %v5137_v4  ;;  %v5142_v60 = vpack.c.bf16 %v2594_v61, %v2594_v61  ;;  %v2592_v51 = vmax.f32 %v2577_v21, 0.0  ;;  %v2580_v19 = vadd.f32 %v6998_v53, %v2559_v27  ;;  %v2557_v43 = vadd.f32 %v2521_v59, %v2354_v20  ;;  %v3088_v20 = vld [vmem:[#allocation3] sm:$0xe]  ;;  %v7123_v59 = vld [vmem:[%s7609_s5 + $0xb8] sm:$0xff]  }
 0x261   : > { %v5649_v50 = vpop.f32.mrf.mxu1  ;;  %v4927_v37 = vcombine.low %v2676_v17, %v7048_v28  ;;  %v2756_v8 = vrot.slane %v7064_v31, 1  ;;  %v7112_v61 = vcombine.low %v3088_v20, %v7048_v28  ;;  %v3106_v20 = vrot.slane %v7050_v9, 1 }
 0x262   : > { %2671 = vst.msk [vmem:[#allocation3 + $0x28] sm:$0xf] %vm2660_vm8, %v5142_v60  ;;  %v5140_v24 = vpack.c.bf16 %v2592_v51, %v2592_v51  ;;  %v2595_v46 = vmax.f32 %v2580_v19, 0.0  ;;  %v2578_v3 = vadd.f32 %v6998_v53, %v2557_v43  ;;  %v2562_v58 = vadd.f32 %v5649_v50, %v2359_v55  ;;  %v5986_v43 = vld [vmem:[%s7609_s5 + $0x48] sm:$0xff]  }
 0x263   : > { %5683 = vmatprep.mubr.msk.bf16.mxu1 %vm497_vm0, %v4927_v37  ;;  %v2534_v16 = vpop.f32.mrf.mxu1  ;;  %v2749_v57 = vshll.u32 %v4927_v37, 16  ;;  %v2747_v2 = vshrl.u32 %v4927_v37, 16  ;;  %v2760_v7 = vor.u32 %v7084_v62, %v2756_v8  ;;  %v3289_v51 = vshrl.u32 %v7112_v61, 16 }
 0x264   : > { %2669 = vst.msk [vmem:[#allocation3 + $0x20] sm:$0xf] %vm2660_vm8, %v5140_v24  ;;  %v5143_v36 = vpack.c.bf16 %v2595_v46, %v2595_v46  ;;  %v2593_v44 = vmax.f32 %v2578_v3, 0.0  ;;  %v2583_v5 = vadd.f32 %v6998_v53, %v2562_v58  ;;  %v2560_v47 = vadd.f32 %v2534_v16, %v2357_v22  ;;  %5684 = vmatmul.mubr.msk.bf16.vlgmr.msra.gmra.mxu1 %vm497_vm0, %v7050_v9  ;;  %v5988_v3 = vld [vmem:[%s7609_s5 + $0x40] sm:$0xff]  }
 0x265   : > { %v5650_v29 = vpop.f32.mrf.mxu1  ;;  %v2751_v25 = vrot.slane %v2749_v57, 1  ;;  %v7070_v48 = vld [vmem:[#allocation3 + $0x18] sm:$0xff]   ;;  %5724 = vmatpush3.bf16.msra.mxu1 %v7640_v18  ;;  %v3292_v19 = vshll.u32 %v7112_v61, 16  ;;  %v3291_v24 = vrot.slane %v3289_v51, 1 }
 0x266   : > { %2672 = vst.msk [vmem:[#allocation3 + $0x2c] sm:$0xf] %vm2660_vm8, %v5143_v36  ;;  %v5141_v40 = vpack.c.bf16 %v2593_v44, %v2593_v44  ;;  %v2598_v6 = vmax.f32 %v2583_v5, 0.0  ;;  %v2581_v38 = vadd.f32 %v6998_v53, %v2560_v47  ;;  %5725 = vmatprep.subr.bf16.mxu1 %v5982_v54  ;;  %v7092_v33 = vshll.u32 %v7070_v48, 16  ;;  %v7173_v29 = vld [vmem:[%s7609_s5 + $0x98] sm:$0xff]  }
 0x267   : > { %v2537_v30 = vpop.f32.mrf.mxu1  ;;  %v2752_v45 = vor.u32 %v2751_v25, %v2747_v2  ;;  %v7079_v39 = vld [vmem:[#allocation3 + $0x10] sm:$0xff]   ;;  %v7139_v17 = vshrl.u32 %v7070_v48, 16  ;;  %v3294_v46 = vrot.slane %v3292_v19, 2  ;;  %v3296_v36 = vrot.slane %v7084_v62, 1 }
 0x268   : > { %2670 = vst.msk [vmem:[#allocation3 + $0x24] sm:$0xf] %vm2660_vm8, %v5141_v40  ;;  %v5146_v12 = vpack.c.bf16 %v2598_v6, %v2598_v6  ;;  %v2596_v26 = vmax.f32 %v2581_v38, 0.0  ;;  %v2561_v34 = vadd.f32 %v2537_v30, %v2358_v15  ;;  %5687 = vmatprep.mubr.msk.bf16.mxu1 %vm497_vm0, %v7079_v39  ;;  %v7089_v56 = vshll.u32 %v7079_v39, 16 }
 0x269   : > { %v2757_v0 = vsel %vm409_vm1, %v2752_v45, %v2756_v8  ;;  %5726 = vmatpush3.bf16.msra.mxu1 %v5982_v54  ;;  %v7103_v42 = vshrl.u32 %v7079_v39, 16  ;;  %v2772_v10 = vrot.slane %v7092_v33, 1  ;;  %v3297_v44 = vrot.slane %v7064_v31, 2 }
 0x26a   : > { %2675 = vst.msk [vmem:[#allocation3 + $0x38] sm:$0xf] %vm2660_vm8, %v5146_v12  ;;  %v5144_v11 = vpack.c.bf16 %v2596_v26, %v2596_v26  ;;  %v2582_v41 = vadd.f32 %v6998_v53, %v2561_v34  ;;  %5659 = vmatprep.mubr.msk.bf16.mxu0 %vm497_vm0, %v2757_v0  ;;  %5727 = vmatprep.subr.bf16.mxu1 %v5985_v52  ;;  %v2764_v32 = vrot.slane %v7089_v56, 1  ;;  %v5981_v53 = vld [vmem:[%s7609_s5 + $0x50] sm:$0xff]   ;;  %v3301_v38 = vrot.slane %v7089_v56, 2 }
 0x26b   : > { %v2776_v37 = vor.u32 %v7139_v17, %v2772_v10  ;;  %v3295_v1 = vor.u32 %v3294_v46, %v3291_v24  ;;  %v3298_v40 = vor.u32 %v3297_v44, %v3296_v36  ;;  %v3300_v6 = vrot.slane %v7103_v42, 1  ;;  %v5993_v46 = vld [vmem:[%s7609_s5 + $0xb0] sm:$0xff]  }
 0x26c   : > { %2673 = vst.msk [vmem:[#allocation3 + $0x30] sm:$0xf] %vm2660_vm8, %v5144_v11  ;;  %v2597_v4 = vmax.f32 %v2582_v41, 0.0  ;;  %5688 = vmatmul.mubr.msk.bf16.gmra.mxu1 %vm497_vm0, %v7070_v48  ;;  %v2765_v21 = vsel %vm409_vm1, %v2760_v7, %v2764_v32  ;;  %v2768_v27 = vor.u32 %v7103_v42, %v2764_v32  ;;  %v3304_v45 = vrot.slane %v7139_v17, 1 }
 0x26d   : > { %v7117_v23 = vld [vmem:[#allocation3 + $0x28] sm:$0xff]   ;;  %5728 = vmatpush3.bf16.msra.mxu1 %v5985_v52  ;;  %5660 = vmatmul.mubr.msk.bf16.vlgmr.msra.gmra.mxu0 %vm497_vm0, %v2765_v21  ;;  %v3299_v8 = vsel %vm963_vm3, %v3295_v1, %v3298_v40  ;;  %v3305_v12 = vrot.slane %v7092_v33, 2  ;;  %v3105_v26 = vrot.slane %v7112_v61, 1  ;;  %v3302_v7 = vor.u32 %v3301_v38, %v3300_v6 }
 0x26e   : > { %v5145_v49 = vpack.c.bf16 %v2597_v4, %v2597_v4  ;;  %5729 = vmatprep.subr.bf16.mxu1 %v5987_v14  ;;  %5700 = vmatpush3.bf16.msra.mxu0 %v7641_v63  ;;  %v2773_v55 = vsel %vm409_vm1, %v2768_v27, %v2772_v10  ;;  %v7145_v50 = vshll.u32 %v7117_v23, 16  ;;  %v7178_v2 = vshrl.u32 %v7117_v23, 16  ;;  %v3889_v63 = vld [vmem:[#allocation3] sm:$0x8] }
 0x26f   : > { %v7127_v60 = vld [vmem:[#allocation3 + $0x20] sm:$0xff]   ;;  %5663 = vmatprep.mubr.msk.bf16.mxu0 %vm497_vm0, %v2773_v55  ;;  %5701 = vmatprep.subr.bf16.mxu0 %v5981_v53  ;;  %v3108_v4 = vrot.slane %v7079_v39, 1  ;;  %v3506_v61 = vrot.slane %v7050_v9, 2  ;;  %v3306_v21 = vor.u32 %v3305_v12, %v3304_v45  ;;  %v3107_v55 = vsel %vm773_vm2, %v3105_v26, %v3106_v20 }
 0x270   : > { %2674 = vst.msk [vmem:[#allocation3 + $0x34] sm:$0xf] %vm2660_vm8, %v5145_v49  ;;  %5691 = vmatprep.mubr.msk.bf16.mxu1 %vm497_vm0, %v7127_v60  ;;  %v7142_v13 = vshll.u32 %v7127_v60, 16  ;;  %v7151_v22 = vshrl.u32 %v7127_v60, 16  ;;  %v2788_v16 = vrot.slane %v7145_v50, 1  ;;  %v3312_v27 = vrot.slane %v7178_v2, 1 }
 0x271   : > { %5730 = vmatpush3.bf16.msra.mxu1 %v5987_v14  ;;  %v7161_v57 = vld [vmem:[#allocation3 + $0x38] ss:$0 sps:$4 sm:$0x11]   ;;  %v3313_v10 = vrot.slane %v7145_v50, 2  ;;  %v3110_v19 = vrot.slane %v7070_v48, 1  ;;  %v3307_v24 = vsel %vm963_vm3, %v3302_v7, %v3306_v21  ;;  %v3512_v1 = vrot.slane %v7127_v60, 2 }
 0x272   : > { %5771 = vmatprep.subr.bf16.mxu1 %v7123_v59  ;;  %v2780_v35 = vrot.slane %v7142_v13, 1  ;;  %5702 = vmatpush3.bf16.msra.mxu0 %v5981_v53  ;;  %v2802_v18 = vshll.u32 %v7161_v57, 16  ;;  %v2792_v15 = vor.u32 %v7178_v2, %v2788_v16  ;;  %v3308_v34 = vrot.slane %v7151_v22, 1  ;;  %v3488_v53 = vld [vmem:[#allocation3] sm:$0xc] }
 0x273   : > { %5703 = vmatprep.subr.bf16.mxu0 %v5986_v43  ;;  %v3309_v14 = vrot.slane %v7142_v13, 2  ;;  %v7212_v49 = vcombine.low %v3488_v53, %v7048_v28  ;;  %v7233_v36 = vsel %vm773_vm2, %v3108_v4, %v3110_v19  ;;  %v3514_v38 = vrot.slane %v7117_v23, 2 }
 0x274   : > { %5692 = vmatmul.mubr.msk.bf16.gmra.mxu1 %vm497_vm0, %v7117_v23  ;;  %v2781_v58 = vsel %vm409_vm1, %v2776_v37, %v2780_v35  ;;  %v2784_v54 = vor.u32 %v7151_v22, %v2780_v35  ;;  %v2804_v41 = vrot.slane %v2802_v18, 1  ;;  %v3508_v37 = vrot.slane %v7079_v39, 2 }
 0x275   : > { %5664 = vmatmul.mubr.msk.bf16.gmra.mxu0 %vm497_vm0, %v2781_v58  ;;  %v3310_v51 = vor.u32 %v3309_v14, %v3308_v34  ;;  %v3303_v35 = vsel %vm963_vm3, %v3298_v40, %v3302_v7  ;;  %v7226_v58 = vcombine.low %v3889_v63, %v7048_v28  ;;  %v3690_v28 = vshrl.u32 %v7212_v49, 16 }
 0x276   : > { %v2789_v5 = vsel %vm409_vm1, %v2784_v54, %v2788_v16  ;;  %5704 = vmatpush3.bf16.msra.mxu0 %v5986_v43  ;;  %v7216_v43 = vld [vmem:[#allocation3 + $0x38] ss:$0 sps:$4 sm:$0x33]   ;;  %v2806_v54 = vshrl.u32 %v7161_v57, 16  ;;  %v3109_v16 = vsel %vm773_vm2, %v3106_v20, %v3108_v4  ;;  %v7238_v44 = vsel %vm1179_vm4, %v3506_v61, %v3508_v37 }
 0x277   : > { %v7167_v47 = vld [vmem:[#allocation3 + $0x30] sm:$0xff]   ;;  %5667 = vmatprep.mubr.msk.bf16.mxu0 %vm497_vm0, %v2789_v5  ;;  %5705 = vmatprep.subr.bf16.mxu0 %v5988_v3  ;;  %v7241_v5 = vor.u32 %v3313_v10, %v3312_v27  ;;  %v3311_v18 = vsel %vm963_vm3, %v3306_v21, %v3310_v51  ;;  %v3321_v40 = vshrl.u32 %v7216_v43, 16  ;;  %v3324_v6 = vshll.u32 %v7216_v43, 16  ;;  %v5996_v27 = vld [vmem:[%s7609_s5 + $0xa0] sm:$0xff]  }
 0x278   : > { %5695 = vmatprep.mubr.msk.bf16.mxu1 %vm497_vm0, %v7167_v47  ;;  %v7181_v25 = vshll.u32 %v7167_v47, 16  ;;  %v7189_v30 = vshrl.u32 %v7167_v47, 16  ;;  %v7267_v26 = vsel %vm1179_vm4, %v3512_v1, %v3514_v38  ;;  %v4099_v34 = vrot.slane %v7084_v62, 3 }
 0x279   : > { %v3516_v7 = vrot.slane %v7167_v47, 2  ;;  %v4103_v4 = vrot.slane %v7103_v42, 3  ;;  %v4104_v53 = vrot.slane %v7089_v56, 4  ;;  %v3326_v21 = vrot.slane %v3324_v6, 2 }
 0x27a   : > { %v2796_v52 = vrot.slane %v7181_v25, 1  ;;  %5706 = vmatpush3.bf16.msra.mxu0 %v5988_v3  ;;  %v3510_v3 = vrot.slane %v7070_v48, 2  ;;  %v3317_v12 = vrot.slane %v7181_v25, 2  ;;  %v4115_v6 = vrot.slane %v7178_v2, 3 }
 0x27b   : > { %5747 = vmatprep.subr.bf16.mxu0 %v7173_v29  ;;  %v7284_v63 = vsel %vm1179_vm4, %v3514_v38, %v3516_v7  ;;  %v4116_v38 = vrot.slane %v7145_v50, 4  ;;  %vm4487_vm8 = vcmask 1043456  }
 0x27c   : > { %5696 = vmatmul.mubr.msk.bf16.gmra.mxu1 %vm497_vm0, %v7161_v57  ;;  %v2797_v0 = vsel %vm409_vm1, %v2792_v15, %v2796_v52  ;;  %v2800_v11 = vor.u32 %v7189_v30, %v2796_v52  ;;  %v7245_v57 = vsel %vm1179_vm4, %v3508_v37, %v3510_v3  ;;  %v3316_v15 = vrot.slane %v7189_v30, 1  ;;  %v5994_v52 = vld [vmem:[%s7609_s5 + $0xa8] sm:$0xff]  }
 0x27d   : > { %5731 = vmatprep.mubr.msk.bf16.mxu1 %vm497_vm0, %v3299_v8  ;;  %5668 = vmatmul.mubr.msk.bf16.gmra.mxu0 %vm497_vm0, %v2797_v0  ;;  %v7260_v45 = vsel %vm1179_vm4, %v3510_v3, %v3512_v1  ;;  %v4095_v8 = vshll.u32 %v7226_v58, 16  ;;  %v4100_v0 = vrot.slane %v7064_v31, 4  ;;  %v4105_v37 = vor.u32 %v4104_v53, %v4103_v4 }
 0x27e   : > { %v2805_v32 = vsel %vm409_vm1, %v2800_v11, %v2804_v41  ;;  %v3315_v11 = vsel %vm963_vm3, %v3310_v51, %v7241_v5  ;;  %v3318_v51 = vor.u32 %v3317_v12, %v3316_v15  ;;  %v4111_v1 = vrot.slane %v7151_v22, 3  ;;  %v7309_v15 = vld [vmem:[%s7609_s5 + $0xf8] sm:$0xff]  }
 0x27f   : > { %5671 = vmatprep.mubr.msk.bf16.mxu0 %vm497_vm0, %v2805_v32  ;;  %v4097_v14 = vrot.slane %v4095_v8, 4  ;;  %v7274_v32 = vrot.slane %v3321_v40, 1  ;;  %v4101_v20 = vor.u32 %v4100_v0, %v4099_v34  ;;  %v4112_v40 = vrot.slane %v7142_v13, 4 }
 0x280   : > { %v3910_v8 = vrot.slane %v7079_v39, 3  ;;  %v3912_v12 = vrot.slane %v7070_v48, 3  ;;  %v4117_v34 = vor.u32 %v4116_v38, %v4115_v6  ;;  %v4119_v0 = vrot.slane %v7189_v30, 3  ;;  %v5995_v39 = vld [vmem:[%s7609_s5 + $0x88] sm:$0xff]  }
 0x281   : > { %v3698_v6 = vrot.slane %v7064_v31, 3  ;;  %v3116_v48 = vrot.slane %v7167_v47, 1  ;;  %vm4461_vm1 = vcmask 1040384  }
 0x284   : > { %5732 = vmatmul.mubr.msk.bf16.vlgmr.msra.gmra.mxu1 %vm497_vm0, %v3303_v35  ;;  %v4108_v35 = vrot.slane %v7092_v33, 4 }
 0x285   : > { %5735 = vmatprep.mubr.msk.bf16.mxu1 %vm497_vm0, %v3307_v24  ;;  %5772 = vmatpush3.bf16.msra.mxu1 %v7123_v59  ;;  %v4092_v59 = vshrl.u32 %v7226_v58, 16  ;;  %v3907_v24 = vrot.slane %v7226_v58, 3  ;;  %v7301_v58 = vsel %vm4090_vm9, %v4101_v20, %v4105_v37 }
 0x286   : > { %5672 = vmatmul.mubr.msk.bf16.gmra.mxu0 %vm497_vm0, %v2806_v54  ;;  %5773 = vmatprep.subr.bf16.mxu1 %v5993_v46  ;;  %v3908_v54 = vrot.slane %v7050_v9, 3  ;;  %v6005_v9 = vld [vmem:[%s7609_s5 + $0xe0] sm:$0xff]  }
 0x287   : > { %5707 = vmatprep.mubr.msk.bf16.mxu0 %vm497_vm0, %v3107_v55  ;;  %v4094_v41 = vrot.slane %v4092_v59, 3  ;;  %v4107_v55 = vrot.slane %v7139_v17, 3 }
 0x288   : > { %v7312_v59 = vsel %vm3906_vm10, %v3907_v24, %v3908_v54  ;;  %v3918_v24 = vrot.slane %v7167_v47, 3 }
 0x289   : > { %5774 = vmatpush3.bf16.msra.mxu1 %v5993_v46  ;;  %v4098_v10 = vor.u32 %v4097_v14, %v4094_v41  ;;  %v5992_v46 = vld [vmem:[%s7609_s5 + $0x90] sm:$0xff]   ;;  %v3693_v41 = vshll.u32 %v7212_v49, 16 }
 0x28a   : > { %5775 = vmatprep.subr.bf16.mxu1 %v5994_v52 }
 0x28b   : > { %v7294_v3 = vsel %vm4090_vm9, %v4098_v10, %v4101_v20  ;;  %v3112_v20 = vrot.slane %v7127_v60, 1  ;;  %v3914_v10 = vrot.slane %v7127_v60, 3 }
 0x28c   : > { %5736 = vmatmul.mubr.msk.bf16.gmra.mxu1 %vm497_vm0, %v3311_v18  ;;  %v4109_v18 = vor.u32 %v4108_v35, %v4107_v55  ;;  %v3327_v55 = vor.u32 %v3326_v21, %v7274_v32  ;;  %v3916_v35 = vrot.slane %v7117_v23, 3 }
 0x28d   : > { %5739 = vmatprep.mubr.msk.bf16.mxu1 %vm497_vm0, %v3315_v11  ;;  %5776 = vmatpush3.bf16.msra.mxu1 %v5994_v52  ;;  %v4113_v52 = vor.u32 %v4112_v40, %v4111_v1  ;;  %v4120_v11 = vrot.slane %v7181_v25, 4  ;;  %v7358_v21 = vsel %vm3906_vm10, %v3912_v12, %v3914_v10  ;;  %v3695_v1 = vrot.slane %v3693_v41, 3 }
 0x28e   : > { %5708 = vmatmul.mubr.msk.bf16.vlgmr.msra.gmra.mxu0 %vm497_vm0, %v3109_v16  ;;  %5777 = vmatprep.subr.bf16.mxu1 %v5996_v27  ;;  %v7320_v16 = vsel %vm4090_vm9, %v4105_v37, %v4109_v18  ;;  %v3114_v37 = vrot.slane %v7117_v23, 1  ;;  %v3328_v23 = vsel %vm963_vm3, %v3318_v51, %v3327_v55  ;;  %v3505_v41 = vrot.slane %v7212_v49, 2  ;;  %v6000_v55 = vld [vmem:[#allocation3 + $0x38] ss:$0 sps:$4 sm:$0x77]  }
 0x28f   : > { %5711 = vmatprep.mubr.msk.bf16.mxu0 %vm497_vm0, %v7233_v36  ;;  %5748 = vmatpush3.bf16.msra.mxu0 %v7173_v29  ;;  %v7329_v14 = vsel %vm4090_vm9, %v4109_v18, %v4113_v52  ;;  %v7332_v29 = vsel %vm3906_vm10, %v3908_v54, %v3910_v8  ;;  %v7335_v36 = vsel %vm3906_vm10, %v3910_v8, %v3912_v12  ;;  %v3692_v54 = vrot.slane %v3690_v28, 2 }
 0x290   : > { %5749 = vmatprep.subr.bf16.mxu0 %v5992_v46  ;;  %v7339_v4 = vsel %vm4090_vm9, %v4113_v52, %v4117_v34  ;;  %v7341_v53 = vor.u32 %v4120_v11, %v4119_v0  ;;  %v7371_v28 = vsel %vm3906_vm10, %v3916_v35, %v3918_v24  ;;  %v3115_v40 = vsel %vm773_vm2, %v3112_v20, %v3114_v37  ;;  %v5998_v52 = vld [vmem:[%s7609_s5 + $0xd8] sm:$0xff]  }
 0x291   : > { %5778 = vmatpush3.bf16.msra.mxu1 %v5996_v27  ;;  %v3319_v27 = vsel %vm963_vm3, %v7241_v5, %v3318_v51  ;;  %v5997_v5 = vld [vmem:[%s7609_s5 + $0x80] sm:$0xff]   ;;  %v3113_v51 = vsel %vm773_vm2, %v3110_v19, %v3112_v20  ;;  %v3697_v18 = vrot.slane %v7084_v62, 2  ;;  %v3696_v38 = vor.u32 %v3695_v1, %v3692_v54 }
 0x292   : > { %5819 = vmatprep.subr.bf16.mxu1 %v7309_v15  ;;  %v7355_v60 = vsel %vm4090_vm9, %v4117_v34, %v7341_v53  ;;  %v3701_v8 = vrot.slane %v7103_v42, 2  ;;  %v3702_v12 = vrot.slane %v7089_v56, 3  ;;  %v3118_v62 = vrot.slane %v7216_v43, 1  ;;  %v6002_v43 = vld [vmem:[%s7609_s5 + $0xf0] sm:$0xff]  }
 0x293   : > { %5750 = vmatpush3.bf16.msra.mxu0 %v5992_v46  ;;  %v7366_v46 = vsel %vm3906_vm10, %v3914_v10, %v3916_v35  ;;  %v3699_v19 = vor.u32 %v3698_v6, %v3697_v18  ;;  %v3117_v34 = vsel %vm773_vm2, %v3114_v37, %v3116_v48  ;;  %v3705_v42 = vrot.slane %v7139_v17, 2 }
 0x294   : > { %5740 = vmatmul.mubr.msk.bf16.gmra.mxu1 %vm497_vm0, %v3319_v27  ;;  %5751 = vmatprep.subr.bf16.mxu0 %v5995_v39  ;;  %v3119_v0 = vsel %vm773_vm2, %v3116_v48, %v3118_v62  ;;  %v3706_v56 = vrot.slane %v7092_v33, 3  ;;  %v3709_v20 = vrot.slane %v7151_v22, 2  ;;  %v3710_v10 = vrot.slane %v7142_v13, 3  ;;  %v6003_v13 = vld [vmem:[%s7609_s5 + $0xe8] sm:$0xff]   ;;  %vm4462_vm2 = vmand %vm4461_vm1, %vm4405_vm15 }
 0x295   : > { %5743 = vmatprep.mubr.msk.bf16.mxu1 %vm497_vm0, %v3328_v23  ;;  %v3700_v31 = vsel %vm3688_vm11, %v3696_v38, %v3699_v19  ;;  %v3507_v17 = vsel %vm1179_vm4, %v3505_v41, %v3506_v61  ;;  %v3713_v49 = vrot.slane %v7178_v2, 2  ;;  %v3714_v22 = vrot.slane %v7145_v50, 3  ;;  %v6001_v23 = vld [vmem:[%s7609_s5 + $0xd0] sm:$0xff]  }
 0x296   : > { %5712 = vmatmul.mubr.msk.bf16.gmra.mxu0 %vm497_vm0, %v3113_v51  ;;  %v3707_v11 = vor.u32 %v3706_v56, %v3705_v42  ;;  %v3711_v37 = vor.u32 %v3710_v10, %v3709_v20  ;;  %v3722_v35 = vshrl.u32 %v6000_v55, 16  ;;  %v3725_v27 = vshll.u32 %v6000_v55, 16  ;;  %v6012_v42 = vld [vmem:[%s7611_s7] sm:$0xff]  }
 0x297   : > { %5715 = vmatprep.mubr.msk.bf16.mxu0 %vm497_vm0, %v3115_v40  ;;  %5752 = vmatpush3.bf16.msra.mxu0 %v5995_v39  ;;  %v3717_v2 = vrot.slane %v7189_v30, 2  ;;  %v3718_v61 = vrot.slane %v7181_v25, 3  ;;  %v6004_v30 = vld [vmem:[%s7609_s5 + $0xc8] sm:$0xff]   ;;  %v3518_v18 = vrot.slane %v6000_v55, 2  ;;  %vm4469_vm3 = vcmask 1041408  }
 0x298   : > { %5753 = vmatprep.subr.bf16.mxu0 %v5997_v5  ;;  %v3712_v50 = vsel %vm3688_vm11, %v3707_v11, %v3711_v37  ;;  %v3724_v1 = vrot.slane %v3722_v35, 2 }
 0x299   : > { %v3719_v25 = vor.u32 %v3718_v61, %v3717_v2  ;;  %v3519_v6 = vsel %vm1179_vm4, %v3516_v7, %v3518_v18  ;;  %vm4470_vm4 = vsmask.f32 1280 }
 0x29a   : > { %vm4471_vm5 = vmand %vm4469_vm3, %vm4470_vm4 }
 0x29b   : > { %5754 = vmatpush3.bf16.msra.mxu0 %v5997_v5  ;;  %v3727_v5 = vrot.slane %v3725_v27, 3 }
 0x29c   : > { %5744 = vmatmul.mubr.msk.bf16.gmra.mxu1 %vm497_vm0, %v7274_v32  ;;  %5795 = vmatprep.subr.bf16.mxu0 %v5998_v52  ;;  %v3703_v32 = vor.u32 %v3702_v12, %v3701_v8 }
 0x29d   : > { %5779 = vmatprep.mubr.msk.bf16.mxu1 %vm497_vm0, %v3700_v31  ;;  %v3728_v51 = vor.u32 %v3727_v5, %v3724_v1 }
 0x29e   : > { %5716 = vmatmul.mubr.msk.bf16.gmra.mxu0 %vm497_vm0, %v3117_v34  ;;  %v3704_v39 = vsel %vm3688_vm11, %v3699_v19, %v3703_v32  ;;  %v3708_v33 = vsel %vm3688_vm11, %v3703_v32, %v3707_v11 }
 0x29f   : > { %5719 = vmatprep.mubr.msk.bf16.mxu0 %vm497_vm0, %v3119_v0 }
 0x2a4   : > { %5780 = vmatmul.mubr.msk.bf16.vlgmr.msra.gmra.mxu1 %vm497_vm0, %v3704_v39 }
 0x2a5   : > { %5783 = vmatprep.mubr.msk.bf16.mxu1 %vm497_vm0, %v3708_v33  ;;  %5820 = vmatpush3.bf16.msra.mxu1 %v7309_v15  ;;  %v3715_v15 = vor.u32 %v3714_v22, %v3713_v49 }
 0x2a6   : > { %5720 = vmatmul.mubr.msk.bf16.gmra.mxu0 %vm497_vm0, %v3118_v62  ;;  %5821 = vmatprep.subr.bf16.mxu1 %v6002_v43 }
 0x2a7   : > { %5755 = vmatprep.mubr.msk.bf16.mxu0 %vm497_vm0, %v3507_v17  ;;  %v3716_v54 = vsel %vm3688_vm11, %v3711_v37, %v3715_v15  ;;  %v3720_v40 = vsel %vm3688_vm11, %v3715_v15, %v3719_v25 }
 0x2a9   : > { %5822 = vmatpush3.bf16.msra.mxu1 %v6002_v43 }
 0x2aa   : > { %5823 = vmatprep.subr.bf16.mxu1 %v6003_v13 }
 0x2ac   : > { %5784 = vmatmul.mubr.msk.bf16.gmra.mxu1 %vm497_vm0, %v3712_v50 }
 0x2ad   : > { %5787 = vmatprep.mubr.msk.bf16.mxu1 %vm497_vm0, %v3716_v54  ;;  %5824 = vmatpush3.bf16.msra.mxu1 %v6003_v13 }
 0x2ae   : > { %5756 = vmatmul.mubr.msk.bf16.vlgmr.msra.gmra.mxu0 %vm497_vm0, %v7238_v44  ;;  %5825 = vmatprep.subr.bf16.mxu1 %v6005_v9  ;;  %v3729_v44 = vsel %vm3688_vm11, %v3719_v25, %v3728_v51 }
 0x2af   : > { %5759 = vmatprep.mubr.msk.bf16.mxu0 %vm497_vm0, %v7245_v57  ;;  %5796 = vmatpush3.bf16.msra.mxu0 %v5998_v52  ;;  %v6006_v57 = vld [vmem:[%s7609_s5 + $0xc0] sm:$0xff]  }
 0x2b0   : > { %5797 = vmatprep.subr.bf16.mxu0 %v6001_v23 }
 0x2b1   : > { %5826 = vmatpush3.bf16.msra.mxu1 %v6005_v9 }
 0x2b3   : > { %5798 = vmatpush3.bf16.msra.mxu0 %v6001_v23 }
 0x2b4   : > { %5788 = vmatmul.mubr.msk.bf16.gmra.mxu1 %vm497_vm0, %v3720_v40  ;;  %5799 = vmatprep.subr.bf16.mxu0 %v6004_v30 }
 0x2b5   : > { %5791 = vmatprep.mubr.msk.bf16.mxu1 %vm497_vm0, %v3729_v44 }
 0x2b6   : > { %5760 = vmatmul.mubr.msk.bf16.gmra.mxu0 %vm497_vm0, %v7260_v45  ;;  %v6007_v45 = vld [vmem:[#allocation3 + $0x38] ss:$0 sps:$4 sm:$0xff]  }
 0x2b7   : > { %5763 = vmatprep.mubr.msk.bf16.mxu0 %vm497_vm0, %v7267_v26  ;;  %5800 = vmatpush3.bf16.msra.mxu0 %v6004_v30  ;;  %v4124_v26 = vshrl.u32 %v6007_v45, 16 }
 0x2b8   : > { %5801 = vmatprep.subr.bf16.mxu0 %v6006_v57 }
 0x2b9   : > { %v4126_v7 = vrot.slane %v4124_v26, 3 }
 0x2bb   : > { %5802 = vmatpush3.bf16.msra.mxu0 %v6006_v57 }
 0x2bc   : > { %5792 = vmatmul.mubr.msk.bf16.gmra.mxu1 %vm497_vm0, %v3724_v1 }
 0x2bd   : > { %5827 = vmatprep.mubr.msk.bf16.mxu1 %vm497_vm0, %v7294_v3 }
 0x2be   : > { %5764 = vmatmul.mubr.msk.bf16.gmra.mxu0 %vm497_vm0, %v7284_v63  ;;  %v4127_v63 = vshll.u32 %v6007_v45, 16 }
 0x2bf   : > { %5767 = vmatprep.mubr.msk.bf16.mxu0 %vm497_vm0, %v3519_v6 }
 0x2c0   : > { %v4129_v3 = vrot.slane %v4127_v63, 4 }
 0x2c4   : > { %5828 = vmatmul.mubr.msk.bf16.vlgmr.msra.gmra.mxu1 %vm497_vm0, %v7301_v58  ;;  %v4130_v58 = vor.u32 %v4129_v3, %v4126_v7 }
 0x2c5   : > { %5831 = vmatprep.mubr.msk.bf16.mxu1 %vm497_vm0, %v7320_v16  ;;  %v3920_v16 = vrot.slane %v6007_v45, 3 }
 0x2c6   : > { %5768 = vmatmul.mubr.msk.bf16.gmra.mxu0 %vm497_vm0, %v3518_v18 }
 0x2c7   : > { %5803 = vmatprep.mubr.msk.bf16.mxu0 %vm497_vm0, %v7312_v59  ;;  %v4131_v59 = vsel %vm4090_vm9, %v7341_v53, %v4130_v58  ;;  %vm4488_vm9 = vsmask.f32 3328 }
 0x2c8   : > { %vm4489_vm11 = vmand %vm4487_vm8, %vm4488_vm9 }
 0x2cc   : > { %5832 = vmatmul.mubr.msk.bf16.gmra.mxu1 %vm497_vm0, %v7329_v14  ;;  %v3921_v14 = vsel %vm3906_vm10, %v3918_v24, %v3920_v16  ;;  %vm4480_vm10 = vmand %vm4478_vm6, %vm4479_vm7 }
 0x2cd   : > { %5835 = vmatprep.mubr.msk.bf16.mxu1 %vm497_vm0, %v7339_v4 }
 0x2ce   : > { %5804 = vmatmul.mubr.msk.bf16.vlgmr.msra.gmra.mxu0 %vm497_vm0, %v7332_v29 }
 0x2cf   : > { %5807 = vmatprep.mubr.msk.bf16.mxu0 %vm497_vm0, %v7335_v36 }
 0x2d4   : > { %5836 = vmatmul.mubr.msk.bf16.gmra.mxu1 %vm497_vm0, %v7355_v60 }
 0x2d5   : > { %5839 = vmatprep.mubr.msk.bf16.mxu1 %vm497_vm0, %v4131_v59 }
 0x2d6   : > { %5808 = vmatmul.mubr.msk.bf16.gmra.mxu0 %vm497_vm0, %v7358_v21  ;;  %v6083_v21 = vmov 0.0  }
 0x2d7   : > { %5811 = vmatprep.mubr.msk.bf16.mxu0 %vm497_vm0, %v7366_v46  ;;  %5843 = vmatprep.subr.bf16.mxu0 %v6083_v21  ;;  %v6008_v46 = vld [vmem:[%s7611_s7 + $0x8] sm:$0xff]  }
 0x2d8   : > { %5844 = vmatpush3.bf16.msra.mxu0 %v6008_v46 }
 0x2d9   : > { %5845 = vmatprep.subr.bf16.mxu0 %v6083_v21 }
 0x2dc   : > { %5840 = vmatmul.mubr.msk.bf16.gmra.mxu1 %vm497_vm0, %v4126_v7  ;;  %5846 = vmatpush3.bf16.msra.mxu0 %v6012_v42 }
 0x2de   : > { %5812 = vmatmul.mubr.msk.bf16.gmra.mxu0 %vm497_vm0, %v7371_v28 }
 0x2df   : > { %5815 = vmatprep.mubr.msk.bf16.mxu0 %vm497_vm0, %v3921_v14 }
 0x2e6   : > { %5816 = vmatmul.mubr.msk.bf16.gmra.mxu0 %vm497_vm0, %v3920_v16  ;;  %vm4406_vm0 = vmand %vm4404_vm14, %vm4405_vm15 }
 0x2e7   : > { %5847 = vmatprep.mubr.msk.bf16.mxu0 %vm6084_vm12, %v6083_v21  ;;  %vm4514_vm12 = vcmask 261120  }
 0x324   : > { %v5685_v29 = vpop.f32.mrf.mxu1 }
 0x326   : > { %v3026_v36 = vpop.f32.mrf.mxu1 }
 0x328   : > { %v5686_v4 = vpop.f32.mrf.mxu1 }
 0x32a   : > { %v3029_v53 = vpop.f32.mrf.mxu1 }
 0x32c   : > { %v5689_v60 = vpop.f32.mrf.mxu1 }
 0x32d   : > { %v5661_v38 = vpop.f32.mrf.mxu0 }
 0x32e   : > { %v3042_v28 = vpop.f32.mrf.mxu1  ;;  %v3035_v47 = vadd.f32 %v5685_v29, %v5661_v38 }
 0x32f   : > { %v2890_v52 = vpop.f32.mrf.mxu0 }
 0x330   : > { %v5690_v24 = vpop.f32.mrf.mxu1  ;;  %v3027_v48 = vadd.f32 %v3026_v36, %v2890_v52 }
 0x331   : > { %v5662_v8 = vpop.f32.mrf.mxu0 }
 0x332   : > { %v3045_v19 = vpop.f32.mrf.mxu1 }
 0x333   : > { %v2893_v31 = vpop.f32.mrf.mxu0 }
 0x334   : > { %v5693_v12 = vpop.f32.mrf.mxu1 }
 0x335   : > { %v5665_v34 = vpop.f32.mrf.mxu0 }
 0x336   : > { %v3058_v62 = vpop.f32.mrf.mxu1  ;;  %v3051_v0 = vadd.f32 %v5689_v60, %v5665_v34 }
 0x337   : > { %v2906_v32 = vpop.f32.mrf.mxu0 }
 0x338   : > { %v5694_v56 = vpop.f32.mrf.mxu1  ;;  %v3043_v11 = vadd.f32 %v3042_v28, %v2906_v32 }
 0x339   : > { %v5666_v43 = vpop.f32.mrf.mxu0 }
 0x33a   : > { %v3061_v41 = vpop.f32.mrf.mxu1 }
 0x33b   : > { %v2909_v20 = vpop.f32.mrf.mxu0 }
 0x33c   : > { %v5697_v39 = vpop.f32.mrf.mxu1 }
 0x33d   : > { %v5669_v33 = vpop.f32.mrf.mxu0 }
 0x33e   : > { %v3074_v10 = vpop.f32.mrf.mxu1  ;;  %v3067_v17 = vadd.f32 %v5693_v12, %v5669_v33 }
 0x33f   : > { %v2922_v22 = vpop.f32.mrf.mxu0 }
 0x340   : > { %v5698_v49 = vpop.f32.mrf.mxu1  ;;  %v3059_v55 = vadd.f32 %v3058_v62, %v2922_v22 }
 0x341   : > { %v5670_v37 = vpop.f32.mrf.mxu0 }
 0x342   : > { %v3077_v13 = vpop.f32.mrf.mxu1 }
 0x343   : > { %v2925_v35 = vpop.f32.mrf.mxu0 }
 0x344   : > { %v5733_v15 = vpop.f32.mrf.mxu1 }
 0x346   : > { %v3411_v27 = vpop.f32.mrf.mxu1  ;;  %v5673_v9 = vpop.f32.mrf.mxu0 }
 0x347   : > { %v3083_v50 = vadd.f32 %v5697_v39, %v5673_v9 }
 0x348   : > { %v5734_v2 = vpop.f32.mrf.mxu1  ;;  %v2938_v61 = vpop.f32.mrf.mxu0 }
 0x349   : > { %v3075_v54 = vadd.f32 %v3074_v10, %v2938_v61 }
 0x34a   : > { %v3414_v23 = vpop.f32.mrf.mxu1  ;;  %v5674_v1 = vpop.f32.mrf.mxu0 }
 0x34c   : > { %v5737_v5 = vpop.f32.mrf.mxu1  ;;  %v2941_v25 = vpop.f32.mrf.mxu0 }
 0x34e   : > { %v3427_v30 = vpop.f32.mrf.mxu1  ;;  %v5709_v51 = vpop.f32.mrf.mxu0 }
 0x34f   : > { %v3266_v40 = vadd.f32 %v5709_v51, %v3035_v47 }
 0x350   : > { %v5738_v44 = vpop.f32.mrf.mxu1  ;;  %v3202_v57 = vpop.f32.mrf.mxu0 }
 0x351   : > { %v3264_v18 = vadd.f32 %v3202_v57, %v3027_v48  ;;  %v7497_v6 = vadd.f32 %v5733_v15, %v3266_v40 }
 0x352   : > { %v3430_v45 = vpop.f32.mrf.mxu1  ;;  %v5710_v26 = vpop.f32.mrf.mxu0 }
 0x353   : > { %v7499_v63 = vadd.f32 %v3411_v27, %v3264_v18 }
 0x354   : > { %v5741_v7 = vpop.f32.mrf.mxu1  ;;  %v3205_v3 = vpop.f32.mrf.mxu0 }
 0x356   : > { %v3443_v58 = vpop.f32.mrf.mxu1  ;;  %v5713_v59 = vpop.f32.mrf.mxu0 }
 0x357   : > { %v3270_v16 = vadd.f32 %v5713_v59, %v3051_v0 }
 0x358   : > { %v5742_v14 = vpop.f32.mrf.mxu1  ;;  %v3218_v29 = vpop.f32.mrf.mxu0 }
 0x359   : > { %v3268_v36 = vadd.f32 %v3218_v29, %v3043_v11  ;;  %v7501_v4 = vadd.f32 %v5737_v5, %v3270_v16 }
 0x35a   : > { %v3446_v53 = vpop.f32.mrf.mxu1  ;;  %v5714_v60 = vpop.f32.mrf.mxu0 }
 0x35b   : > { %v7503_v21 = vadd.f32 %v3427_v30, %v3268_v36 }
 0x35c   : > { %v5745_v46 = vpop.f32.mrf.mxu1  ;;  %v3221_v28 = vpop.f32.mrf.mxu0 }
 0x35e   : > { %v3459_v38 = vpop.f32.mrf.mxu1  ;;  %v5717_v47 = vpop.f32.mrf.mxu0 }
 0x35f   : > { %v3274_v24 = vadd.f32 %v5717_v47, %v3067_v17 }
 0x360   : > { %v5746_v52 = vpop.f32.mrf.mxu1  ;;  %v3234_v48 = vpop.f32.mrf.mxu0 }
 0x361   : > { %v3272_v19 = vadd.f32 %v3234_v48, %v3059_v55  ;;  %v7505_v8 = vadd.f32 %v5741_v7, %v3274_v24  ;;  %v7528_v52 = vld [vmem:[%s7610_s6] ss:$0 sm:$0xff] }
 0x362   : > { %v3462_v12 = vpop.f32.mrf.mxu1  ;;  %v5718_v31 = vpop.f32.mrf.mxu0 }
 0x363   : > { %v7507_v62 = vadd.f32 %v3443_v58, %v3272_v19 }
 0x364   : > { %v5781_v34 = vpop.f32.mrf.mxu1  ;;  %v3237_v0 = vpop.f32.mrf.mxu0 }
 0x366   : > { %v3812_v42 = vpop.f32.mrf.mxu1  ;;  %v5721_v56 = vpop.f32.mrf.mxu0 }
 0x367   : > { %v3278_v32 = vadd.f32 %v5721_v56, %v3083_v50 }
 0x368   : > { %v5782_v11 = vpop.f32.mrf.mxu1  ;;  %v3250_v41 = vpop.f32.mrf.mxu0 }
 0x369   : > { %v3276_v43 = vadd.f32 %v3250_v41, %v3075_v54  ;;  %v7509_v39 = vadd.f32 %v5745_v46, %v3278_v32 }
 0x36a   : > { %v3815_v20 = vpop.f32.mrf.mxu1  ;;  %v5722_v10 = vpop.f32.mrf.mxu0 }
 0x36b   : > { %v7511_v33 = vadd.f32 %v3459_v38, %v3276_v43 }
 0x36c   : > { %v5785_v17 = vpop.f32.mrf.mxu1  ;;  %v3253_v49 = vpop.f32.mrf.mxu0 }
 0x36e   : > { %v3828_v22 = vpop.f32.mrf.mxu1  ;;  %v5757_v55 = vpop.f32.mrf.mxu0 }
 0x36f   : > { %v3666_v16 = vadd.f32 %v5757_v55, %v7497_v6 }
 0x370   : > { %v5786_v13 = vpop.f32.mrf.mxu1  ;;  %v3602_v37 = vpop.f32.mrf.mxu0 }
 0x371   : > { %v3664_v36 = vadd.f32 %v3602_v37, %v7499_v63  ;;  %v3876_v46 = vadd.f32 %v5781_v34, %v3666_v16 }
 0x372   : > { %v3831_v15 = vpop.f32.mrf.mxu1  ;;  %v5758_v35 = vpop.f32.mrf.mxu0 }
 0x373   : > { %v3874_v24 = vadd.f32 %v3812_v42, %v3664_v36 }
 0x374   : > { %v7513_v27 = vpop.f32.mrf.mxu1  ;;  %v3605_v9 = vpop.f32.mrf.mxu0 }
 0x376   : > { %v7515_v50 = vpop.f32.mrf.mxu1  ;;  %v5761_v2 = vpop.f32.mrf.mxu0 }
 0x377   : > { %v3670_v31 = vadd.f32 %v5761_v2, %v7501_v4 }
 0x378   : > { %v5790_v61 = vpop.f32.mrf.mxu1  ;;  %v3618_v54 = vpop.f32.mrf.mxu0 }
 0x379   : > { %v3668_v63 = vadd.f32 %v3618_v54, %v7503_v21  ;;  %v3880_v10 = vadd.f32 %v5785_v17, %v3670_v31 }
 0x37a   : > { %v3847_v23 = vpop.f32.mrf.mxu1  ;;  %v5762_v1 = vpop.f32.mrf.mxu0 }
 0x37b   : > { %v3878_v55 = vadd.f32 %v3828_v22, %v3668_v63 }
 0x37c   : > { %v7517_v5 = vpop.f32.mrf.mxu1  ;;  %v3621_v25 = vpop.f32.mrf.mxu0 }
 0x37e   : > { %v7519_v30 = vpop.f32.mrf.mxu1  ;;  %v5765_v51 = vpop.f32.mrf.mxu0 }
 0x37f   : > { %v3674_v4 = vadd.f32 %v5765_v51, %v7505_v8 }
 0x380   : > { %v5794_v40 = vpop.f32.mrf.mxu1  ;;  %v3634_v44 = vpop.f32.mrf.mxu0 }
 0x381   : > { %v3672_v17 = vadd.f32 %v3634_v44, %v7507_v62  ;;  %v3884_v8 = vadd.f32 %v7513_v27, %v3674_v4 }
 0x382   : > { %v3863_v57 = vpop.f32.mrf.mxu1  ;;  %v5766_v18 = vpop.f32.mrf.mxu0 }
 0x384   : > { %v5829_v45 = vpop.f32.mrf.mxu1  ;;  %v3637_v26 = vpop.f32.mrf.mxu0 }
 0x386   : > { %v4214_v7 = vpop.f32.mrf.mxu1  ;;  %v5769_v3 = vpop.f32.mrf.mxu0 }
 0x388   : > { %v5830_v58 = vpop.f32.mrf.mxu1  ;;  %v7521_v59 = vpop.f32.mrf.mxu0 }
 0x389   : > { %v3678_v58 = vadd.f32 %v5769_v3, %v7509_v39 }
 0x38a   : > { %v4217_v14 = vpop.f32.mrf.mxu1  ;;  %v5770_v29 = vpop.f32.mrf.mxu0 }
 0x38b   : > { %v3882_v29 = vadd.f32 %v7515_v50, %v3672_v17  ;;  %v3888_v3 = vadd.f32 %v7517_v5, %v3678_v58 }
 0x38c   : > { %v5833_v53 = vpop.f32.mrf.mxu1  ;;  %v3653_v60 = vpop.f32.mrf.mxu0 }
 0x38e   : > { %v4230_v28 = vpop.f32.mrf.mxu1  ;;  %v5805_v38 = vpop.f32.mrf.mxu0 }
 0x38f   : > { %v4068_v47 = vadd.f32 %v5805_v38, %v3876_v46 }
 0x390   : > { %v5834_v48 = vpop.f32.mrf.mxu1  ;;  %v4004_v19 = vpop.f32.mrf.mxu0 }
 0x391   : > { %v4278_v12 = vadd.f32 %v5829_v45, %v4068_v47  ;;  %v4066_v6 = vadd.f32 %v4004_v19, %v3874_v24 }
 0x392   : > { %v4233_v0 = vpop.f32.mrf.mxu1  ;;  %v5806_v56 = vpop.f32.mrf.mxu0 }
 0x393   : > { %v4300_v34 = vadd.f32 %v7528_v52, %v4278_v12  ;;  %v4276_v32 = vadd.f32 %v4214_v7, %v4066_v6 }
 0x394   : > { %v5837_v11 = vpop.f32.mrf.mxu1  ;;  %v4007_v42 = vpop.f32.mrf.mxu0 }
 0x395   : > { %v4315_v41 = vmax.f32 %v4300_v34, 0.0  ;;  %v4298_v43 = vadd.f32 %v7528_v52, %v4276_v32 }
 0x396   : > { %v4246_v20 = vpop.f32.mrf.mxu1  ;;  %v5809_v49 = vpop.f32.mrf.mxu0 }
 0x397   : > { %v5149_v13 = vpack.c.bf16 %v4315_v41, %v4315_v41  ;;  %v4313_v37 = vmax.f32 %v4298_v43, 0.0  ;;  %v4072_v21 = vadd.f32 %v5809_v49, %v3880_v10 }
 0x398   : > { %v5838_v15 = vpop.f32.mrf.mxu1  ;;  %v4020_v35 = vpop.f32.mrf.mxu0 }
 0x399   : > { %4392 = vst.msk [vmem:[#allocation4 + $0x8] sm:$0xf] %vm4389_vm13, %v5149_v13  ;;  %v5147_v9 = vpack.c.bf16 %v4313_v37, %v4313_v37  ;;  %v4070_v2 = vadd.f32 %v4020_v35, %v3878_v55  ;;  %v4282_v61 = vadd.f32 %v5833_v53, %v4072_v21  ;;  %v3676_v53 = vadd.f32 %v7521_v59, %v7511_v33 }
 0x39a   : > { %v4249_v54 = vpop.f32.mrf.mxu1  ;;  %v5810_v23 = vpop.f32.mrf.mxu0 }
 0x39b   : > { %4390 = vst.msk [vmem:[#allocation4] sm:$0xf] %vm4389_vm13, %v5147_v9  ;;  %v4280_v1 = vadd.f32 %v4230_v28, %v4070_v2  ;;  %v4304_v22 = vadd.f32 %v7528_v52, %v4282_v61  ;;  %v3886_v24 = vadd.f32 %v7519_v30, %v3676_v53  ;;  %v4407_v30 = vld [vmem:[#allocation4 + $0x38] sm:$0x1] }
 0x39c   : > { %v5841_v25 = vpop.f32.mrf.mxu1  ;;  %v4023_v40 = vpop.f32.mrf.mxu0 }
 0x39d   : > { %v4302_v51 = vadd.f32 %v7528_v52, %v4280_v1  ;;  %v4319_v57 = vmax.f32 %v4304_v22, 0.0 }
 0x39e   : > { %v4262_v18 = vpop.f32.mrf.mxu1  ;;  %v5813_v45 = vpop.f32.mrf.mxu0 }
 0x39f   : > { %v4317_v26 = vmax.f32 %v4302_v51, 0.0  ;;  %v4076_v7 = vadd.f32 %v5813_v45, %v3884_v8  ;;  %v5153_v16 = vpack.c.bf16 %v4319_v57, %v4319_v57 }
 0x3a0   : > { %v5842_v14 = vpop.f32.mrf.mxu1  ;;  %v4036_v62 = vpop.f32.mrf.mxu0  ;;  %v6009_v32 = vld [vmem:[#allocation4 + $0x8] ss:$0 sps:$4 sm:$0x11]  }
 0x3a1   : > { %v5151_v44 = vpack.c.bf16 %v4317_v26, %v4317_v26  ;;  %v4286_v36 = vadd.f32 %v5837_v11, %v4076_v7  ;;  %4396 = vst.msk [vmem:[#allocation4 + $0x18] sm:$0xf] %vm4389_vm13, %v5153_v16  ;;  %v4074_v27 = vadd.f32 %v4036_v62, %v3882_v29  ;;  %v4422_v13 = vshll.u32 %v6009_v32, 16  ;;  %v5108_v26 = vld [vmem:[%s7612_s8] ss:$0 sm:$0xff] }
 0x3a2   : > { %v5814_v60 = vpop.f32.mrf.mxu0  ;;  %v4265_v11 = vpop.f32.mrf.mxu1  ;;  %v4410_v55 = vld [vmem:[#allocation4] sm:$0x1] }
 0x3a3   : > { %4394 = vst.msk [vmem:[#allocation4 + $0x10] sm:$0xf] %vm4389_vm13, %v5151_v44  ;;  %v4308_v46 = vadd.f32 %v7528_v52, %v4286_v36  ;;  %v4284_v28 = vadd.f32 %v4246_v20, %v4074_v27  ;;  %v4463_v9 = vsel %vm4462_vm2, %v4410_v55, %v4422_v13 }
 0x3a4   : > { %v4039_v39 = vpop.f32.mrf.mxu0 }
 0x3a5   : > { %v4323_v38 = vmax.f32 %v4308_v46, 0.0  ;;  %v4306_v50 = vadd.f32 %v7528_v52, %v4284_v28 }
 0x3a6   : > { %v5817_v47 = vpop.f32.mrf.mxu0 }
 0x3a7   : > { %v5157_v48 = vpack.c.bf16 %v4323_v38, %v4323_v38  ;;  %v4080_v33 = vadd.f32 %v5817_v47, %v3888_v3  ;;  %v4321_v59 = vmax.f32 %v4306_v50, 0.0 }
 0x3a8   : > { %v4052_v19 = vpop.f32.mrf.mxu0  ;;  %v6011_v41 = vld [vmem:[#allocation4 + $0x18] ss:$0 sps:$4 sm:$0x11]  }
 0x3a9   : > { %4400 = vst.msk [vmem:[#allocation4 + $0x28] sm:$0xf] %vm4389_vm13, %v5157_v48  ;;  %v4290_v12 = vadd.f32 %v5841_v25, %v4080_v33  ;;  %v4078_v6 = vadd.f32 %v4052_v19, %v3886_v24  ;;  %v5155_v31 = vpack.c.bf16 %v4321_v59, %v4321_v59  ;;  %v4433_v4 = vshll.u32 %v6011_v41, 16 }
 0x3aa   : > { %v5818_v63 = vpop.f32.mrf.mxu0  ;;  %v6010_v42 = vld [vmem:[#allocation4 + $0x10] ss:$0 sps:$4 sm:$0x11]  }
 0x3ab   : > { %v4312_v0 = vadd.f32 %v7528_v52, %v4290_v12  ;;  %4398 = vst.msk [vmem:[#allocation4 + $0x20] sm:$0xf] %vm4389_vm13, %v5155_v31  ;;  %v4288_v5 = vadd.f32 %v4262_v18, %v4078_v6  ;;  %v4428_v37 = vrot.slane %v6010_v42, 7 }
 0x3ac   : > { %v4055_v56 = vpop.f32.mrf.mxu0 }
 0x3ad   : > { %v4327_v34 = vmax.f32 %v4312_v0, 0.0  ;;  %v4310_v43 = vadd.f32 %v7528_v52, %v4288_v5  ;;  %v4435_v52 = vrot.slane %v4433_v4, 7  ;;  %v4467_v61 = vsel %vm4461_vm1, %v4463_v9, %v4428_v37 }
 0x3af   : > { %v5161_v20 = vpack.c.bf16 %v4327_v34, %v4327_v34  ;;  %v4325_v10 = vmax.f32 %v4310_v43, 0.0  ;;  %v4472_v1 = vsel %vm4471_vm5, %v4467_v61, %v4435_v52 }
 0x3b0   : > { %v6014_v15 = vld [vmem:[#allocation4 + $0x28] ss:$0 sps:$4 sm:$0x11]  }
 0x3b1   : > { %v4408_v49 = vsel %vm4406_vm0, %v5161_v20, %v4407_v30  ;;  %v5159_v21 = vpack.c.bf16 %v4325_v10, %v4325_v10  ;;  %v4445_v2 = vshll.u32 %v6014_v15, 16 }
 0x3b2   : > { %4409 = vst [vmem:[#allocation4 + $0x38] sm:$0x1] %v4408_v49  ;;  %v6013_v35 = vld [vmem:[#allocation4 + $0x20] ss:$0 sps:$4 sm:$0x11]  }
 0x3b3   : > { %4402 = vst.msk [vmem:[#allocation4 + $0x30] sm:$0xf] %vm4389_vm13, %v5159_v21  ;;  %v4440_v54 = vrot.slane %v6013_v35, 6  ;;  %v4447_v17 = vrot.slane %v4445_v2, 6  ;;  %vm4558_vm13 = vcmask 80896  }
 0x3b5   : > { %v4476_v40 = vsel %vm4469_vm3, %v4472_v1, %v4440_v54 }
 0x3b6   : > { %v4481_v57 = vsel %vm4480_vm10, %v4476_v40, %v4447_v17 }
 0x3b9   : > { %v6016_v23 = vld [vmem:[#allocation4 + $0x38] ss:$0 sps:$4 sm:$0x11]  }
 0x3ba   : > { %v6015_v22 = vld [vmem:[#allocation4 + $0x30] ss:$0 sps:$4 sm:$0x11]   ;;  %v4457_v25 = vshll.u32 %v6016_v23, 16 }
 0x3bb   : > { %v4452_v8 = vrot.slane %v6015_v22, 5 }
 0x3bc   : > { %v4459_v51 = vrot.slane %v4457_v25, 5 }
 0x3bd   : > { %v4485_v18 = vsel %vm4478_vm6, %v4481_v57, %v4452_v8 }
 0x3be   : > { %v4490_v45 = vsel %vm4489_vm11, %v4485_v18, %v4459_v51 }
 0x3bf   : > { %5848 = vmatmul.mubr.msk.bf16.vlgmr.msra.gmra.mxu0 %vm4514_vm12, %v4490_v45 }
 0x47f   : > { %v4552_v7 = vpop.f32.mrf.mxu0 }
 0x480   : > { %v4553_v58 = vadd.f32 %v5108_v26, %v4552_v7 }
 0x481   : > { %v5849_v16 = vpop.f32.mrf.mxu0 }
 0x482   : > { %v4559_v14 = vsel %vm4558_vm13, %v4553_v58, -inf }
 0x483   : > { %4560 = vmax.xlane.f32.xlu0 %v4559_v14  ;;  %v4555_v29 = vpop.f32.mrf.mxu0 }
 0x485   : > { %v5850_v62 = vpop.f32.mrf.mxu0 }
 0x50c   : > { %v4561_v44 = vpop.xlane.xlu0 %4560 }
 0x50d   : > { %v4562_v36 = vsub.f32 %v4553_v58, %v4561_v44 }
 0x50f   : > { %v4563_v53 = vmul.f32 1.442695, %v4562_v36 }
 0x511   : > { %6017 = vpow2.f32 %v4563_v53 }
 0x51e   : > { %v6018_v27 = vpop.eup %6017 }
 0x51f   : > { %v4565_v60 = vsel %vm4558_vm13, %v6018_v27, 0.0 }
 0x520   : > { %4566 = vadd.xlane.f32.xlu0 %v4565_v60 }
 0x5a9   : > { %v4567_v46 = vpop.xlane.xlu0 %4566 }
 0x5aa   : > { %6019 = vlog2.f32 %v4567_v46 }
 0x5b7   : > { %v6020_v28 = vpop.eup %6019 }
 0x5b8   : > { %v4569_v39 = vmul.f32 0.6931472, %v6020_v28 }
 0x5ba   : > { %v4570_v3 = vsub.f32 %v4562_v36, %v4569_v39 }
 0x5bc   : > { %4571 = vst.msk [vmem:[%s326_s26] sm:$0xff] %vm4558_vm13, %v4570_v3 }
 0x5bd   : > { %6034 = shalt.err (!%p6031_p3)
}
 0x5be   : > { %s6035_s25 = scalar_lea.hbm %s4584_s23, 128  ;;  %s6039_s26 = scalar_lea.hbm %s7613_s9, 256 }
 0x5bf   : > { %p6036_p4 = scmp.ne.s32.totalorder %s4584_s23, %s6035_s25  ;;  %p6040_p9 = scmp.lt.s32.totalorder %s4584_s23, %s7613_s9 }
 0x5c0   : > { %p6041_p10 = scmp.lt.s32.totalorder %s6039_s26, %s6035_s25 }
 0x5c1   : > { %p6037_p7 = pnand %p6036_p4, %p6174_p5 }
 0x5c2   : > { %p6042_p11 = por %p6041_p10, %p6040_p9 }
 0x5c3   : > { %p6038_p8 = pneg %p6037_p7 }
 0x5c5   : > { %p6043_p12 = pnand %p6042_p11, %p6038_p8 }
 0x5c7   : > { %6046 = shalt.err (!%p6043_p12)
}
 0x5c8   : > { %5851 = dma.vmem_to_hbm [thread:$0]  (%p6174_p5), %s4587_s27, 128, %s4584_s23, %s4573_s16  }
 0x5c9 PF: > { %p5857_p13 = scmp.ge.s32.totalorder %s6081_s12, 2  ;;  %s4598_s17 = sand.u32 1, %s6069_s30  }
 0x5ca   : > { %s4599_s21 = scalar_lea.sflag [#allocation6], %s4598_s17 }
 0x5cb   : > { %p5854_p0 = pnand %p5857_p13, %p6178_p6 }
 0x5cd   : > { %p5855_p1 = pneg %p5854_p0 }
 0x5cf   : > { %6064 = dma.done.wait (%p5855_p1), %s4599_s21, 128  }
 0x5d0   : > { %6066 = vsyncadd (%p5855_p1), %s4599_s21, 4294967168  ;;  %p19_p2 = scmp.ge.s32.totalorder %s6161_s15, 4   ;;  %s7642_s30 = smov %s6073_s10 }
 0x5d1   : > { %s7643_s10 = smov %s6077_s11  ;;  %s7644_s11 = smov %s6172_s18 }
 0x5d2   : > { %s7645_s12 = smov %s6161_s15  ;;  %21 = sbr.rel (!%p19_p2) target bundleno = 3 (0x3), region = 106 }
 0x5d7   :  { %4604 = vsyncpa [#allocation6], 1 }
 0x5d8   :  { %4606 = vsyncpa [#allocation6 + $0x1], 1 }

</bundles_post_ra>
